<compile_context>
chip_gen: v7x
topology: tpu7x:2x2x1
jax: 0.10.0
libtpu: 0.0.40
codegen_flags: <defaults>
</compile_context>

<pallas_src>
import numpy as np
import jax
import jax.numpy as jnp
from jax import lax
from jax.experimental import pallas as pl
from jax.experimental.pallas import tpu as pltpu

_BN_EPS = 1e-5
_BN_SCALE = float(1.0 / np.sqrt(1.0 + _BN_EPS))  # eval-mode BN with default stats


def _mm(a, b):
    return jnp.dot(a, b, precision=jax.lax.Precision.HIGHEST)


def _make_kernel(F, C, S, offsets):
    """Build the per-batch-sample kernel (static config captured by closure)."""
    CS = C * S

    def kernel(x_gate_ref, x_spat_ref, pool_m_ref,
               ca_w1_ref, ca_b1_ref, ca_w2_ref, ca_b2_ref,
               fc_w_ref, fc_b_ref, fca_w_ref, fca_b_ref,
               c1_w_ref, c1_b_ref, taps_ref, dconv_b_ref, mask_ref,
               last_w_ref, last_b_ref, fc2_w_ref, fc2_b_ref,
               fsa_w_ref, fsa_b_ref, rep_cs_ref, tile_cs_ref,
               out_ref):
        # ---- fusion sum (both layouts are tiny; sums stay in-kernel) ----
        x_g = x_gate_ref[0]                                   # (F, C*S) lane-dense
        xsum_flat = jnp.sum(x_g, axis=0, keepdims=True)       # (1, C*S)

        # ---------------- channel branch: sigmoid(BAM_ca(x)) -> fc ----------------
        pooled = _mm(xsum_flat, pool_m_ref[...])              # AdaptiveAvgPool2d -> (1, C)
        h1 = jnp.maximum((_mm(pooled, ca_w1_ref[...]) + ca_b1_ref[...]) * _BN_SCALE, 0.0)
        ca_out = jax.nn.sigmoid(_mm(h1, ca_w2_ref[...]) + ca_b2_ref[...])      # (1, C)
        ca_p = jax.nn.sigmoid(_mm(ca_out, fc_w_ref[...]) + fc_b_ref[...])      # (1, d)
        # all F fca gates fused into one matmul: (1, d) @ (d, F*C)
        wca_all = jax.nn.sigmoid(_mm(ca_p, fca_w_ref[...]) + fca_b_ref[...])   # (1, F*C)

        # ---------------- spatial branch: sigmoid(BAM_sa(x)) -> fc2 ----------------
        xs = jnp.sum(x_spat_ref[0], axis=0)                   # (C, S)
        y1 = jnp.maximum((_mm(c1_w_ref[...], xs) + c1_b_ref[...]) * _BN_SCALE, 0.0)  # (Cr, S)
        # dilated 3x3 conv = 9 masked static lane-rotations + ONE (Cr,9Cr)@(9Cr,S) matmul
        shifted = []
        for k in range(9):
            om = offsets[k] % S
            if om == 0:
                shifted.append(y1)
            else:
                shifted.append(jnp.concatenate([y1[:, om:], y1[:, :om]], axis=1))
        z = jnp.concatenate(shifted, axis=0) * mask_ref[...]                   # (9*Cr, S)
        y2 = jnp.maximum((_mm(taps_ref[...], z) + dconv_b_ref[...]) * _BN_SCALE, 0.0)  # (Cr, S)
        sa_out = jax.nn.sigmoid(_mm(last_w_ref[...], y2) + last_b_ref[...])    # (1, S)
        sa_fc = jax.nn.sigmoid(_mm(sa_out, fc2_w_ref[...]) + fc2_b_ref[...])   # (1, dsa)
        # all F fsa gates fused into one matmul: (1, dsa) @ (dsa, F*S)
        wsa_all = jax.nn.sigmoid(_mm(sa_fc, fsa_w_ref[...]) + fsa_b_ref[...])  # (1, F*S)

        # ------- fused softmax gating over the fusion dim, lane-dense C*S layout -------
        rep_cs = rep_cs_ref[...]                               # (C, C*S) 0/1: repeat each c S times
        tile_cs = tile_cs_ref[...]                             # (S, C*S) 0/1: tile s pattern C times
        logits = []
        for f in range(F):
            wca_f = wca_all[:, f * C:(f + 1) * C]              # (1, C)
            wsa_f = wsa_all[:, f * S:(f + 1) * S]              # (1, S)
            logits.append(_mm(wca_f, rep_cs) + _mm(wsa_f, tile_cs))            # (1, C*S)
        lg = jnp.concatenate(logits, axis=0)                   # (F, C*S)
        m = jnp.max(lg, axis=0, keepdims=True)
        e = jnp.exp(lg - m)
        den = jnp.sum(e, axis=0, keepdims=True)
        inv = pl.reciprocal(den, approx=True)
        inv = inv * (2.0 - den * inv)                          # one Newton step -> ~f32 accurate
        p = e * inv                                            # softmax over fusion dim
        out_ref[0, :, :] = jnp.sum(x_g * (1.0 + p), axis=0, keepdims=True)     # (1, C*S) dense store

    return kernel


def _const_spec(shape):
    zero = (0,) * len(shape)
    return pl.BlockSpec(tuple(int(d) for d in shape), lambda b: zero)


def attention_2d_unique(x_input, params, dia_val=2):
    """x_input: (fusion_num, batch, channel, H, W) float32."""
    F, B, C, H, W = (int(d) for d in x_input.shape)
    S = H * W
    CS = C * S
    Cr = int(params["conv1_w"].shape[0])

    x_input = x_input.astype(jnp.float32)
    # layout plumbing (wrapper side): lane-dense per-sample gating slab + spatial-branch slab
    x_gate = x_input.reshape(F, B, CS).transpose(1, 0, 2)          # (B, F, C*S)
    x_spat = x_input.reshape(F, B, C, S).transpose(1, 0, 2, 3)     # (B, F, C, S)

    # ---- host-side constant / weight repackaging (pure layout, no activation compute) ----
    idx = np.arange(CS)
    pool_m = np.zeros((CS, C), np.float32)
    pool_m[idx, idx // S] = 1.0 / S                                # mean over spatial per channel
    rep_cs = np.zeros((C, CS), np.float32)
    rep_cs[idx // S, idx] = 1.0                                    # broadcast (1,C) -> (1,C*S)
    tile_cs = np.zeros((S, CS), np.float32)
    tile_cs[idx % S, idx] = 1.0                                    # broadcast (1,S) -> (1,C*S)

    # dilated-conv geometry: static lane offsets + boundary masks
    offsets = []
    mask = np.zeros((9, S), np.float32)
    for kh in range(3):
        for kw in range(3):
            k = kh * 3 + kw
            dh, dw = (kh - 1) * dia_val, (kw - 1) * dia_val
            offsets.append(dh * W + dw)
            for h in range(H):
                for w in range(W):
                    if 0 <= h + dh < H and 0 <= w + dw < W:
                        mask[k, h * W + w] = 1.0
    mask_full = np.repeat(mask, Cr, axis=0)                        # (9*Cr, S)

    # taps2d[co, k*Cr + ci] = dconv_w[co, ci, kh, kw], k = kh*3 + kw
    wd = np.asarray(jax.device_get(params["dconv_w_oihw"]))        # (Cr, Cr, 3, 3)
    taps2d = np.transpose(wd, (0, 2, 3, 1)).reshape(Cr, 9 * Cr)

    # fuse the F per-fusion gate weights along the output (N) axis
    fca_cat = jnp.concatenate([params["fca_wT"][f] for f in range(F)], axis=1)   # (d, F*C)
    fca_b_cat = jnp.concatenate([params["fca_b"][f] for f in range(F)], axis=1)  # (1, F*C)
    fsa_cat = jnp.concatenate([params["fsa_wT"][f] for f in range(F)], axis=1)   # (dsa, F*S)
    fsa_b_cat = jnp.concatenate([params["fsa_b"][f] for f in range(F)], axis=1)  # (1, F*S)

    args = (
        x_gate, x_spat,
        jnp.asarray(pool_m),
        params["ca_w1T"], params["ca_b1"], params["ca_w2T"], params["ca_b2"],
        params["fc_wT"], params["fc_b"], fca_cat, fca_b_cat,
        params["conv1_w"], params["conv1_b"], jnp.asarray(taps2d),
        params["dconv_b"].reshape(Cr, 1), jnp.asarray(mask_full),
        params["last_w"], params["last_b"],
        params["fc2_wT"], params["fc2_b"], fsa_cat, fsa_b_cat,
        jnp.asarray(rep_cs), jnp.asarray(tile_cs),
    )

    in_specs = [
        pl.BlockSpec((1, F, CS), lambda b: (b, 0, 0)),
        pl.BlockSpec((1, F, C, S), lambda b: (b, 0, 0, 0)),
    ] + [_const_spec(a.shape) for a in args[2:]]

    kernel = _make_kernel(F, C, S, offsets)

    out = pl.pallas_call(
        kernel,
        grid=(B,),
        in_specs=in_specs,
        out_specs=pl.BlockSpec((1, 1, CS), lambda b: (b, 0, 0)),
        out_shape=jax.ShapeDtypeStruct((B, 1, CS), jnp.float32),
        compiler_params=pltpu.CompilerParams(
            dimension_semantics=("parallel",),
            vmem_limit_bytes=32 * 1024 * 1024,
        ),
    )(*args)
    return out.reshape(B, C, H, W)


def init_params(key, *, channel, img_size, fusion_num, L=32,
                reduction_ca_Attention=4, reduction_sa_Attention=4,
                reduction_ca=4, reduction_sa=4):
    C = channel
    H, W = img_size
    S = H * W
    F = fusion_num
    d = max(L, C // reduction_ca_Attention)
    dsa = max(H, S // reduction_sa_Attention)
    Cr_ca = C // reduction_ca
    Cr_sa = C // reduction_sa

    ks = jax.random.split(key, 18)

    def rnd(k, shape, scale=0.2):
        return scale * jax.random.normal(k, shape, dtype=jnp.float32)

    p = {}
    # BAM_ca: Linear(C, C//r) -> BN1d -> ReLU -> Linear(C//r, C)  (weights stored transposed)
    p["ca_w1T"] = rnd(ks[0], (C, Cr_ca)); p["ca_b1"] = rnd(ks[1], (1, Cr_ca))
    p["ca_w2T"] = rnd(ks[2], (Cr_ca, C)); p["ca_b2"] = rnd(ks[3], (1, C))
    # fc / fcas
    p["fc_wT"] = rnd(ks[4], (C, d)); p["fc_b"] = rnd(ks[5], (1, d))
    p["fca_wT"] = rnd(ks[6], (F, d, C)); p["fca_b"] = rnd(ks[7], (F, 1, C))
    # BAM_sa: Conv1x1 -> BN -> ReLU -> dilated Conv3x3 -> BN -> ReLU -> Conv1x1(->1)
    p["conv1_w"] = rnd(ks[8], (Cr_sa, C)); p["conv1_b"] = rnd(ks[9], (Cr_sa, 1))
    p["dconv_w_oihw"] = rnd(ks[10], (Cr_sa, Cr_sa, 3, 3))
    p["dconv_b"] = rnd(ks[11], (Cr_sa,))
    p["last_w"] = rnd(ks[12], (1, Cr_sa)); p["last_b"] = rnd(ks[13], (1, 1))
    # fc2 / fsas
    p["fc2_wT"] = rnd(ks[14], (S, dsa)); p["fc2_b"] = rnd(ks[15], (1, dsa))
    p["fsa_wT"] = rnd(ks[16], (F, dsa, S)); p["fsa_b"] = rnd(ks[17], (F, 1, S))
    return p


def reference_forward(x_input, p, dia_val=2):
    """Plain-JAX reference matching the PyTorch module (BAM, ADD_type=1)."""
    F, B, C, H, W = x_input.shape
    S = H * W
    PH = jax.lax.Precision.HIGHEST
    dn = ("NCHW", "OIHW", "NCHW")
    bn = _BN_SCALE

    x = x_input.sum(0)
    # channel attention
    pooled = x.mean(axis=(2, 3))
    h1 = jax.nn.relu((_mm(pooled, p["ca_w1T"]) + p["ca_b1"]) * bn)
    ca_out = jax.nn.sigmoid(_mm(h1, p["ca_w2T"]) + p["ca_b2"])
    ca_p = jax.nn.sigmoid(_mm(ca_out, p["fc_wT"]) + p["fc_b"])
    # spatial attention with a real dilated convolution
    w1x1 = p["conv1_w"].reshape(-1, C, 1, 1)
    y1 = jax.nn.relu((lax.conv_general_dilated(x, w1x1, (1, 1), "VALID",
                                               dimension_numbers=dn, precision=PH)
                      + p["conv1_b"].reshape(1, -1, 1, 1)) * bn)
    y2 = jax.nn.relu((lax.conv_general_dilated(
        y1, p["dconv_w_oihw"], (1, 1), ((dia_val, dia_val), (dia_val, dia_val)),
        rhs_dilation=(dia_val, dia_val), dimension_numbers=dn, precision=PH)
        + p["dconv_b"].reshape(1, -1, 1, 1)) * bn)
    wlast = p["last_w"].reshape(1, -1, 1, 1)
    sa = (lax.conv_general_dilated(y2, wlast, (1, 1), "VALID",
                                   dimension_numbers=dn, precision=PH)
          + p["last_b"].reshape(1, 1, 1, 1))
    sa_out = jax.nn.sigmoid(sa)                               # (B, 1, H, W)
    sa_fc = jax.nn.sigmoid(_mm(sa_out.reshape(B, S), p["fc2_wT"]) + p["fc2_b"])

    weights = []
    for f in range(F):
        wca = jax.nn.sigmoid(_mm(ca_p, p["fca_wT"][f]) + p["fca_b"][f]).reshape(B, C, 1, 1)
        wsa = jax.nn.sigmoid(_mm(sa_fc, p["fsa_wT"][f]) + p["fsa_b"][f]).reshape(B, 1, H, W)
        weights.append(wca + wsa)
    wall = jax.nn.softmax(jnp.stack(weights, 0), axis=0)
    return (x_input * (1.0 + wall)).sum(0)


if __name__ == "__main__":
    # small shapes consistent with the module: fusion_num=4, batch=2, channel=32, img 4x4
    F, B, C, H, W = 4, 2, 32, 4, 4
    key = jax.random.PRNGKey(0)
    kx, kp = jax.random.split(key)
    x_input = jax.random.normal(kx, (F, B, C, H, W), dtype=jnp.float32)
    params = init_params(kp, channel=C, img_size=[H, W], fusion_num=F)

    out = attention_2d_unique(x_input, params, dia_val=2)
    out = jax.block_until_ready(out)

    ref = reference_forward(x_input, params, dia_val=2)
    err = float(jnp.max(jnp.abs(out - ref)))
    assert out.shape == (B, C, H, W)
    assert np.isfinite(np.asarray(out)).all()
    assert err < 1e-3, f"kernel/reference mismatch: {err}"
    print("KERNEL_OK")
</pallas_src>

<mosaic_0001>
module attributes {stable_mosaic.version = 11 : i64} {
  func.func @kernel(%arg0: i32, %arg1: memref<1x4x512xf32, #tpu.memory_space<vmem>>, %arg2: memref<1x4x32x16xf32, #tpu.memory_space<vmem>>, %arg3: memref<512x32xf32, #tpu.memory_space<vmem>>, %arg4: memref<32x8xf32, #tpu.memory_space<vmem>>, %arg5: memref<1x8xf32, #tpu.memory_space<vmem>>, %arg6: memref<8x32xf32, #tpu.memory_space<vmem>>, %arg7: memref<1x32xf32, #tpu.memory_space<vmem>>, %arg8: memref<32x32xf32, #tpu.memory_space<vmem>>, %arg9: memref<1x32xf32, #tpu.memory_space<vmem>>, %arg10: memref<32x128xf32, #tpu.memory_space<vmem>>, %arg11: memref<1x128xf32, #tpu.memory_space<vmem>>, %arg12: memref<8x32xf32, #tpu.memory_space<vmem>>, %arg13: memref<8x1xf32, #tpu.memory_space<vmem>>, %arg14: memref<8x72xf32, #tpu.memory_space<vmem>>, %arg15: memref<8x1xf32, #tpu.memory_space<vmem>>, %arg16: memref<72x16xf32, #tpu.memory_space<vmem>>, %arg17: memref<1x8xf32, #tpu.memory_space<vmem>>, %arg18: memref<1x1xf32, #tpu.memory_space<vmem>>, %arg19: memref<16x4xf32, #tpu.memory_space<vmem>>, %arg20: memref<1x4xf32, #tpu.memory_space<vmem>>, %arg21: memref<4x64xf32, #tpu.memory_space<vmem>>, %arg22: memref<1x64xf32, #tpu.memory_space<vmem>>, %arg23: memref<32x512xf32, #tpu.memory_space<vmem>>, %arg24: memref<16x512xf32, #tpu.memory_space<vmem>>, %arg25: memref<1x1x512xf32, #tpu.memory_space<vmem>>) attributes {dimension_semantics = [#tpu.dimension_semantics<parallel>], iteration_bounds = array<i64: 2>, scalar_prefetch = 0 : i64, scratch_operands = 0 : i64, tpu.core_type = #tpu.core_type<tc>, window_params = [{transform_indices = @transform_0, window_bounds = array<i64: 1, 4, 512>}, {transform_indices = @transform_1, window_bounds = array<i64: 1, 4, 32, 16>}, {pipeline_mode = #tpu.pipeline_mode<synchronous>, transform_indices = @transform_2, window_bounds = array<i64: 512, 32>}, {pipeline_mode = #tpu.pipeline_mode<synchronous>, transform_indices = @transform_3, window_bounds = array<i64: 32, 8>}, {pipeline_mode = #tpu.pipeline_mode<synchronous>, transform_indices = @transform_4, window_bounds = array<i64: 1, 8>}, {pipeline_mode = #tpu.pipeline_mode<synchronous>, transform_indices = @transform_5, window_bounds = array<i64: 8, 32>}, {pipeline_mode = #tpu.pipeline_mode<synchronous>, transform_indices = @transform_6, window_bounds = array<i64: 1, 32>}, {pipeline_mode = #tpu.pipeline_mode<synchronous>, transform_indices = @transform_7, window_bounds = array<i64: 32, 32>}, {pipeline_mode = #tpu.pipeline_mode<synchronous>, transform_indices = @transform_8, window_bounds = array<i64: 1, 32>}, {pipeline_mode = #tpu.pipeline_mode<synchronous>, transform_indices = @transform_9, window_bounds = array<i64: 32, 128>}, {pipeline_mode = #tpu.pipeline_mode<synchronous>, transform_indices = @transform_10, window_bounds = array<i64: 1, 128>}, {pipeline_mode = #tpu.pipeline_mode<synchronous>, transform_indices = @transform_11, window_bounds = array<i64: 8, 32>}, {pipeline_mode = #tpu.pipeline_mode<synchronous>, transform_indices = @transform_12, window_bounds = array<i64: 8, 1>}, {pipeline_mode = #tpu.pipeline_mode<synchronous>, transform_indices = @transform_13, window_bounds = array<i64: 8, 72>}, {pipeline_mode = #tpu.pipeline_mode<synchronous>, transform_indices = @transform_14, window_bounds = array<i64: 8, 1>}, {pipeline_mode = #tpu.pipeline_mode<synchronous>, transform_indices = @transform_15, window_bounds = array<i64: 72, 16>}, {pipeline_mode = #tpu.pipeline_mode<synchronous>, transform_indices = @transform_16, window_bounds = array<i64: 1, 8>}, {pipeline_mode = #tpu.pipeline_mode<synchronous>, transform_indices = @transform_17, window_bounds = array<i64: 1, 1>}, {pipeline_mode = #tpu.pipeline_mode<synchronous>, transform_indices = @transform_18, window_bounds = array<i64: 16, 4>}, {pipeline_mode = #tpu.pipeline_mode<synchronous>, transform_indices = @transform_19, window_bounds = array<i64: 1, 4>}, {pipeline_mode = #tpu.pipeline_mode<synchronous>, transform_indices = @transform_20, window_bounds = array<i64: 4, 64>}, {pipeline_mode = #tpu.pipeline_mode<synchronous>, transform_indices = @transform_21, window_bounds = array<i64: 1, 64>}, {pipeline_mode = #tpu.pipeline_mode<synchronous>, transform_indices = @transform_22, window_bounds = array<i64: 32, 512>}, {pipeline_mode = #tpu.pipeline_mode<synchronous>, transform_indices = @transform_23, window_bounds = array<i64: 16, 512>}, {transform_indices = @transform_24, window_bounds = array<i64: 1, 1, 512>}]} {
    %c0 = arith.constant 0 : index
    %c0_0 = arith.constant 0 : index
    %c0_1 = arith.constant 0 : index
    %0 = vector.load %arg1[%c0, %c0_0, %c0_1] : memref<1x4x512xf32, #tpu.memory_space<vmem>>, vector<1x4x512xf32>
    %1 = vector.shape_cast %0 : vector<1x4x512xf32> to vector<4x512xf32>
    %cst = arith.constant dense<0.000000e+00> : vector<512xf32>
    %2 = vector.multi_reduction <add>, %1, %cst [0] : vector<4x512xf32> to vector<512xf32>
    %3 = vector.shape_cast %2 : vector<512xf32> to vector<1x512xf32>
    %c0_2 = arith.constant 0 : index
    %c0_3 = arith.constant 0 : index
    %4 = vector.load %arg3[%c0_2, %c0_3] : memref<512x32xf32, #tpu.memory_space<vmem>>, vector<512x32xf32>
    %cst_4 = arith.constant dense<0.000000e+00> : vector<1x32xf32>
    %5 = tpu.matmul %3, %4, %cst_4 {dimension_numbers = #tpu.dot_dimension_numbers<[1], [0], [0], [1], [0, 0, 1, 1], [], []>, precision = #tpu.contract_precision<fp32>} : vector<1x512xf32>, vector<512x32xf32>, vector<1x32xf32> -> vector<1x32xf32>
    %c0_5 = arith.constant 0 : index
    %c0_6 = arith.constant 0 : index
    %6 = vector.load %arg4[%c0_5, %c0_6] : memref<32x8xf32, #tpu.memory_space<vmem>>, vector<32x8xf32>
    %cst_7 = arith.constant dense<0.000000e+00> : vector<1x8xf32>
    %7 = tpu.matmul %5, %6, %cst_7 {dimension_numbers = #tpu.dot_dimension_numbers<[1], [0], [0], [1], [0, 0, 1, 1], [], []>, precision = #tpu.contract_precision<fp32>} : vector<1x32xf32>, vector<32x8xf32>, vector<1x8xf32> -> vector<1x8xf32>
    %c0_8 = arith.constant 0 : index
    %c0_9 = arith.constant 0 : index
    %8 = vector.load %arg5[%c0_8, %c0_9] : memref<1x8xf32, #tpu.memory_space<vmem>>, vector<1x8xf32>
    %9 = arith.addf %7, %8 : vector<1x8xf32>
    %cst_10 = arith.constant 0.999994993 : f32
    %10 = vector.broadcast %cst_10 : f32 to vector<1x8xf32>
    %11 = arith.mulf %9, %10 : vector<1x8xf32>
    %cst_11 = arith.constant 0.000000e+00 : f32
    %12 = vector.broadcast %cst_11 : f32 to vector<1x8xf32>
    %13 = arith.maximumf %11, %12 : vector<1x8xf32>
    %c0_12 = arith.constant 0 : index
    %c0_13 = arith.constant 0 : index
    %14 = vector.load %arg6[%c0_12, %c0_13] : memref<8x32xf32, #tpu.memory_space<vmem>>, vector<8x32xf32>
    %cst_14 = arith.constant dense<0.000000e+00> : vector<1x32xf32>
    %15 = tpu.matmul %13, %14, %cst_14 {dimension_numbers = #tpu.dot_dimension_numbers<[1], [0], [0], [1], [0, 0, 1, 1], [], []>, precision = #tpu.contract_precision<fp32>} : vector<1x8xf32>, vector<8x32xf32>, vector<1x32xf32> -> vector<1x32xf32>
    %c0_15 = arith.constant 0 : index
    %c0_16 = arith.constant 0 : index
    %16 = vector.load %arg7[%c0_15, %c0_16] : memref<1x32xf32, #tpu.memory_space<vmem>>, vector<1x32xf32>
    %17 = arith.addf %15, %16 : vector<1x32xf32>
    %18 = arith.negf %17 : vector<1x32xf32>
    %19 = math.exp %18 : vector<1x32xf32>
    %cst_17 = arith.constant 1.000000e+00 : f32
    %20 = vector.broadcast %cst_17 : f32 to vector<1x32xf32>
    %21 = arith.addf %20, %19 : vector<1x32xf32>
    %22 = arith.divf %20, %21 : vector<1x32xf32>
    %c0_18 = arith.constant 0 : index
    %c0_19 = arith.constant 0 : index
    %23 = vector.load %arg8[%c0_18, %c0_19] : memref<32x32xf32, #tpu.memory_space<vmem>>, vector<32x32xf32>
    %cst_20 = arith.constant dense<0.000000e+00> : vector<1x32xf32>
    %24 = tpu.matmul %22, %23, %cst_20 {dimension_numbers = #tpu.dot_dimension_numbers<[1], [0], [0], [1], [0, 0, 1, 1], [], []>, precision = #tpu.contract_precision<fp32>} : vector<1x32xf32>, vector<32x32xf32>, vector<1x32xf32> -> vector<1x32xf32>
    %c0_21 = arith.constant 0 : index
    %c0_22 = arith.constant 0 : index
    %25 = vector.load %arg9[%c0_21, %c0_22] : memref<1x32xf32, #tpu.memory_space<vmem>>, vector<1x32xf32>
    %26 = arith.addf %24, %25 : vector<1x32xf32>
    %27 = arith.negf %26 : vector<1x32xf32>
    %28 = math.exp %27 : vector<1x32xf32>
    %cst_23 = arith.constant 1.000000e+00 : f32
    %29 = vector.broadcast %cst_23 : f32 to vector<1x32xf32>
    %30 = arith.addf %29, %28 : vector<1x32xf32>
    %31 = arith.divf %29, %30 : vector<1x32xf32>
    %c0_24 = arith.constant 0 : index
    %c0_25 = arith.constant 0 : index
    %32 = vector.load %arg10[%c0_24, %c0_25] : memref<32x128xf32, #tpu.memory_space<vmem>>, vector<32x128xf32>
    %cst_26 = arith.constant dense<0.000000e+00> : vector<1x128xf32>
    %33 = tpu.matmul %31, %32, %cst_26 {dimension_numbers = #tpu.dot_dimension_numbers<[1], [0], [0], [1], [0, 0, 1, 1], [], []>, precision = #tpu.contract_precision<fp32>} : vector<1x32xf32>, vector<32x128xf32>, vector<1x128xf32> -> vector<1x128xf32>
    %c0_27 = arith.constant 0 : index
    %c0_28 = arith.constant 0 : index
    %34 = vector.load %arg11[%c0_27, %c0_28] : memref<1x128xf32, #tpu.memory_space<vmem>>, vector<1x128xf32>
    %35 = arith.addf %33, %34 : vector<1x128xf32>
    %36 = arith.negf %35 : vector<1x128xf32>
    %37 = math.exp %36 : vector<1x128xf32>
    %cst_29 = arith.constant 1.000000e+00 : f32
    %38 = vector.broadcast %cst_29 : f32 to vector<1x128xf32>
    %39 = arith.addf %38, %37 : vector<1x128xf32>
    %40 = arith.divf %38, %39 : vector<1x128xf32>
    %c0_30 = arith.constant 0 : index
    %c0_31 = arith.constant 0 : index
    %c0_32 = arith.constant 0 : index
    %c0_33 = arith.constant 0 : index
    %41 = vector.load %arg2[%c0_30, %c0_31, %c0_32, %c0_33] : memref<1x4x32x16xf32, #tpu.memory_space<vmem>>, vector<1x4x32x16xf32>
    %42 = vector.shape_cast %41 : vector<1x4x32x16xf32> to vector<4x32x16xf32>
    %cst_34 = arith.constant dense<0.000000e+00> : vector<32x16xf32>
    %43 = vector.multi_reduction <add>, %42, %cst_34 [0] : vector<4x32x16xf32> to vector<32x16xf32>
    %c0_35 = arith.constant 0 : index
    %c0_36 = arith.constant 0 : index
    %44 = vector.load %arg12[%c0_35, %c0_36] : memref<8x32xf32, #tpu.memory_space<vmem>>, vector<8x32xf32>
    %cst_37 = arith.constant dense<0.000000e+00> : vector<8x16xf32>
    %45 = tpu.matmul %44, %43, %cst_37 {dimension_numbers = #tpu.dot_dimension_numbers<[1], [0], [0], [1], [0, 0, 1, 1], [], []>, precision = #tpu.contract_precision<fp32>} : vector<8x32xf32>, vector<32x16xf32>, vector<8x16xf32> -> vector<8x16xf32>
    %c0_38 = arith.constant 0 : index
    %c0_39 = arith.constant 0 : index
    %46 = vector.load %arg13[%c0_38, %c0_39] : memref<8x1xf32, #tpu.memory_space<vmem>>, vector<8x1xf32>
    %47 = vector.broadcast %46 : vector<8x1xf32> to vector<8x16xf32>
    %48 = arith.addf %45, %47 : vector<8x16xf32>
    %cst_40 = arith.constant 0.999994993 : f32
    %49 = vector.broadcast %cst_40 : f32 to vector<8x16xf32>
    %50 = arith.mulf %48, %49 : vector<8x16xf32>
    %cst_41 = arith.constant 0.000000e+00 : f32
    %51 = vector.broadcast %cst_41 : f32 to vector<8x16xf32>
    %52 = arith.maximumf %50, %51 : vector<8x16xf32>
    %53 = vector.extract_strided_slice %52 {offsets = [0, 6], sizes = [8, 10], strides = [1, 1]} : vector<8x16xf32> to vector<8x10xf32>
    %54 = vector.extract_strided_slice %52 {offsets = [0, 0], sizes = [8, 6], strides = [1, 1]} : vector<8x16xf32> to vector<8x6xf32>
    %55 = tpu.concatenate %53, %54 in 1 : vector<8x10xf32>, vector<8x6xf32> -> vector<8x16xf32>
    %56 = vector.extract_strided_slice %52 {offsets = [0, 8], sizes = [8, 8], strides = [1, 1]} : vector<8x16xf32> to vector<8x8xf32>
    %57 = vector.extract_strided_slice %52 {offsets = [0, 0], sizes = [8, 8], strides = [1, 1]} : vector<8x16xf32> to vector<8x8xf32>
    %58 = tpu.concatenate %56, %57 in 1 : vector<8x8xf32>, vector<8x8xf32> -> vector<8x16xf32>
    %59 = vector.extract_strided_slice %52 {offsets = [0, 10], sizes = [8, 6], strides = [1, 1]} : vector<8x16xf32> to vector<8x6xf32>
    %60 = vector.extract_strided_slice %52 {offsets = [0, 0], sizes = [8, 10], strides = [1, 1]} : vector<8x16xf32> to vector<8x10xf32>
    %61 = tpu.concatenate %59, %60 in 1 : vector<8x6xf32>, vector<8x10xf32> -> vector<8x16xf32>
    %62 = vector.extract_strided_slice %52 {offsets = [0, 14], sizes = [8, 2], strides = [1, 1]} : vector<8x16xf32> to vector<8x2xf32>
    %63 = vector.extract_strided_slice %52 {offsets = [0, 0], sizes = [8, 14], strides = [1, 1]} : vector<8x16xf32> to vector<8x14xf32>
    %64 = tpu.concatenate %62, %63 in 1 : vector<8x2xf32>, vector<8x14xf32> -> vector<8x16xf32>
    %65 = vector.extract_strided_slice %52 {offsets = [0, 2], sizes = [8, 14], strides = [1, 1]} : vector<8x16xf32> to vector<8x14xf32>
    %66 = vector.extract_strided_slice %52 {offsets = [0, 0], sizes = [8, 2], strides = [1, 1]} : vector<8x16xf32> to vector<8x2xf32>
    %67 = tpu.concatenate %65, %66 in 1 : vector<8x14xf32>, vector<8x2xf32> -> vector<8x16xf32>
    %68 = vector.extract_strided_slice %52 {offsets = [0, 6], sizes = [8, 10], strides = [1, 1]} : vector<8x16xf32> to vector<8x10xf32>
    %69 = vector.extract_strided_slice %52 {offsets = [0, 0], sizes = [8, 6], strides = [1, 1]} : vector<8x16xf32> to vector<8x6xf32>
    %70 = tpu.concatenate %68, %69 in 1 : vector<8x10xf32>, vector<8x6xf32> -> vector<8x16xf32>
    %71 = vector.extract_strided_slice %52 {offsets = [0, 8], sizes = [8, 8], strides = [1, 1]} : vector<8x16xf32> to vector<8x8xf32>
    %72 = vector.extract_strided_slice %52 {offsets = [0, 0], sizes = [8, 8], strides = [1, 1]} : vector<8x16xf32> to vector<8x8xf32>
    %73 = tpu.concatenate %71, %72 in 1 : vector<8x8xf32>, vector<8x8xf32> -> vector<8x16xf32>
    %74 = vector.extract_strided_slice %52 {offsets = [0, 10], sizes = [8, 6], strides = [1, 1]} : vector<8x16xf32> to vector<8x6xf32>
    %75 = vector.extract_strided_slice %52 {offsets = [0, 0], sizes = [8, 10], strides = [1, 1]} : vector<8x16xf32> to vector<8x10xf32>
    %76 = tpu.concatenate %74, %75 in 1 : vector<8x6xf32>, vector<8x10xf32> -> vector<8x16xf32>
    %77 = tpu.concatenate %55, %58, %61, %64, %52, %67, %70, %73, %76 in 0 : vector<8x16xf32>, vector<8x16xf32>, vector<8x16xf32>, vector<8x16xf32>, vector<8x16xf32>, vector<8x16xf32>, vector<8x16xf32>, vector<8x16xf32>, vector<8x16xf32> -> vector<72x16xf32>
    %c0_42 = arith.constant 0 : index
    %c0_43 = arith.constant 0 : index
    %78 = vector.load %arg16[%c0_42, %c0_43] : memref<72x16xf32, #tpu.memory_space<vmem>>, vector<72x16xf32>
    %79 = arith.mulf %77, %78 : vector<72x16xf32>
    %c0_44 = arith.constant 0 : index
    %c0_45 = arith.constant 0 : index
    %80 = vector.load %arg14[%c0_44, %c0_45] : memref<8x72xf32, #tpu.memory_space<vmem>>, vector<8x72xf32>
    %cst_46 = arith.constant dense<0.000000e+00> : vector<8x16xf32>
    %81 = tpu.matmul %80, %79, %cst_46 {dimension_numbers = #tpu.dot_dimension_numbers<[1], [0], [0], [1], [0, 0, 1, 1], [], []>, precision = #tpu.contract_precision<fp32>} : vector<8x72xf32>, vector<72x16xf32>, vector<8x16xf32> -> vector<8x16xf32>
    %c0_47 = arith.constant 0 : index
    %c0_48 = arith.constant 0 : index
    %82 = vector.load %arg15[%c0_47, %c0_48] : memref<8x1xf32, #tpu.memory_space<vmem>>, vector<8x1xf32>
    %83 = vector.broadcast %82 : vector<8x1xf32> to vector<8x16xf32>
    %84 = arith.addf %81, %83 : vector<8x16xf32>
    %cst_49 = arith.constant 0.999994993 : f32
    %85 = vector.broadcast %cst_49 : f32 to vector<8x16xf32>
    %86 = arith.mulf %84, %85 : vector<8x16xf32>
    %cst_50 = arith.constant 0.000000e+00 : f32
    %87 = vector.broadcast %cst_50 : f32 to vector<8x16xf32>
    %88 = arith.maximumf %86, %87 : vector<8x16xf32>
    %c0_51 = arith.constant 0 : index
    %c0_52 = arith.constant 0 : index
    %89 = vector.load %arg17[%c0_51, %c0_52] : memref<1x8xf32, #tpu.memory_space<vmem>>, vector<1x8xf32>
    %cst_53 = arith.constant dense<0.000000e+00> : vector<1x16xf32>
    %90 = tpu.matmul %89, %88, %cst_53 {dimension_numbers = #tpu.dot_dimension_numbers<[1], [0], [0], [1], [0, 0, 1, 1], [], []>, precision = #tpu.contract_precision<fp32>} : vector<1x8xf32>, vector<8x16xf32>, vector<1x16xf32> -> vector<1x16xf32>
    %c0_54 = arith.constant 0 : index
    %c0_55 = arith.constant 0 : index
    %91 = vector.load %arg18[%c0_54, %c0_55] : memref<1x1xf32, #tpu.memory_space<vmem>>, vector<1x1xf32>
    %92 = vector.broadcast %91 : vector<1x1xf32> to vector<1x16xf32>
    %93 = arith.addf %90, %92 : vector<1x16xf32>
    %94 = arith.negf %93 : vector<1x16xf32>
    %95 = math.exp %94 : vector<1x16xf32>
    %cst_56 = arith.constant 1.000000e+00 : f32
    %96 = vector.broadcast %cst_56 : f32 to vector<1x16xf32>
    %97 = arith.addf %96, %95 : vector<1x16xf32>
    %98 = arith.divf %96, %97 : vector<1x16xf32>
    %c0_57 = arith.constant 0 : index
    %c0_58 = arith.constant 0 : index
    %99 = vector.load %arg19[%c0_57, %c0_58] : memref<16x4xf32, #tpu.memory_space<vmem>>, vector<16x4xf32>
    %cst_59 = arith.constant dense<0.000000e+00> : vector<1x4xf32>
    %100 = tpu.matmul %98, %99, %cst_59 {dimension_numbers = #tpu.dot_dimension_numbers<[1], [0], [0], [1], [0, 0, 1, 1], [], []>, precision = #tpu.contract_precision<fp32>} : vector<1x16xf32>, vector<16x4xf32>, vector<1x4xf32> -> vector<1x4xf32>
    %c0_60 = arith.constant 0 : index
    %c0_61 = arith.constant 0 : index
    %101 = vector.load %arg20[%c0_60, %c0_61] : memref<1x4xf32, #tpu.memory_space<vmem>>, vector<1x4xf32>
    %102 = arith.addf %100, %101 : vector<1x4xf32>
    %103 = arith.negf %102 : vector<1x4xf32>
    %104 = math.exp %103 : vector<1x4xf32>
    %cst_62 = arith.constant 1.000000e+00 : f32
    %105 = vector.broadcast %cst_62 : f32 to vector<1x4xf32>
    %106 = arith.addf %105, %104 : vector<1x4xf32>
    %107 = arith.divf %105, %106 : vector<1x4xf32>
    %c0_63 = arith.constant 0 : index
    %c0_64 = arith.constant 0 : index
    %108 = vector.load %arg21[%c0_63, %c0_64] : memref<4x64xf32, #tpu.memory_space<vmem>>, vector<4x64xf32>
    %cst_65 = arith.constant dense<0.000000e+00> : vector<1x64xf32>
    %109 = tpu.matmul %107, %108, %cst_65 {dimension_numbers = #tpu.dot_dimension_numbers<[1], [0], [0], [1], [0, 0, 1, 1], [], []>, precision = #tpu.contract_precision<fp32>} : vector<1x4xf32>, vector<4x64xf32>, vector<1x64xf32> -> vector<1x64xf32>
    %c0_66 = arith.constant 0 : index
    %c0_67 = arith.constant 0 : index
    %110 = vector.load %arg22[%c0_66, %c0_67] : memref<1x64xf32, #tpu.memory_space<vmem>>, vector<1x64xf32>
    %111 = arith.addf %109, %110 : vector<1x64xf32>
    %112 = arith.negf %111 : vector<1x64xf32>
    %113 = math.exp %112 : vector<1x64xf32>
    %cst_68 = arith.constant 1.000000e+00 : f32
    %114 = vector.broadcast %cst_68 : f32 to vector<1x64xf32>
    %115 = arith.addf %114, %113 : vector<1x64xf32>
    %116 = arith.divf %114, %115 : vector<1x64xf32>
    %c0_69 = arith.constant 0 : index
    %c0_70 = arith.constant 0 : index
    %117 = vector.load %arg23[%c0_69, %c0_70] : memref<32x512xf32, #tpu.memory_space<vmem>>, vector<32x512xf32>
    %c0_71 = arith.constant 0 : index
    %c0_72 = arith.constant 0 : index
    %118 = vector.load %arg24[%c0_71, %c0_72] : memref<16x512xf32, #tpu.memory_space<vmem>>, vector<16x512xf32>
    %119 = vector.extract_strided_slice %40 {offsets = [0, 0], sizes = [1, 32], strides = [1, 1]} : vector<1x128xf32> to vector<1x32xf32>
    %120 = vector.extract_strided_slice %116 {offsets = [0, 0], sizes = [1, 16], strides = [1, 1]} : vector<1x64xf32> to vector<1x16xf32>
    %cst_73 = arith.constant dense<0.000000e+00> : vector<1x512xf32>
    %121 = tpu.matmul %119, %117, %cst_73 {dimension_numbers = #tpu.dot_dimension_numbers<[1], [0], [0], [1], [0, 0, 1, 1], [], []>, precision = #tpu.contract_precision<fp32>} : vector<1x32xf32>, vector<32x512xf32>, vector<1x512xf32> -> vector<1x512xf32>
    %cst_74 = arith.constant dense<0.000000e+00> : vector<1x512xf32>
    %122 = tpu.matmul %120, %118, %cst_74 {dimension_numbers = #tpu.dot_dimension_numbers<[1], [0], [0], [1], [0, 0, 1, 1], [], []>, precision = #tpu.contract_precision<fp32>} : vector<1x16xf32>, vector<16x512xf32>, vector<1x512xf32> -> vector<1x512xf32>
    %123 = arith.addf %121, %122 : vector<1x512xf32>
    %124 = vector.extract_strided_slice %40 {offsets = [0, 32], sizes = [1, 32], strides = [1, 1]} : vector<1x128xf32> to vector<1x32xf32>
    %125 = vector.extract_strided_slice %116 {offsets = [0, 16], sizes = [1, 16], strides = [1, 1]} : vector<1x64xf32> to vector<1x16xf32>
    %cst_75 = arith.constant dense<0.000000e+00> : vector<1x512xf32>
    %126 = tpu.matmul %124, %117, %cst_75 {dimension_numbers = #tpu.dot_dimension_numbers<[1], [0], [0], [1], [0, 0, 1, 1], [], []>, precision = #tpu.contract_precision<fp32>} : vector<1x32xf32>, vector<32x512xf32>, vector<1x512xf32> -> vector<1x512xf32>
    %cst_76 = arith.constant dense<0.000000e+00> : vector<1x512xf32>
    %127 = tpu.matmul %125, %118, %cst_76 {dimension_numbers = #tpu.dot_dimension_numbers<[1], [0], [0], [1], [0, 0, 1, 1], [], []>, precision = #tpu.contract_precision<fp32>} : vector<1x16xf32>, vector<16x512xf32>, vector<1x512xf32> -> vector<1x512xf32>
    %128 = arith.addf %126, %127 : vector<1x512xf32>
    %129 = vector.extract_strided_slice %40 {offsets = [0, 64], sizes = [1, 32], strides = [1, 1]} : vector<1x128xf32> to vector<1x32xf32>
    %130 = vector.extract_strided_slice %116 {offsets = [0, 32], sizes = [1, 16], strides = [1, 1]} : vector<1x64xf32> to vector<1x16xf32>
    %cst_77 = arith.constant dense<0.000000e+00> : vector<1x512xf32>
    %131 = tpu.matmul %129, %117, %cst_77 {dimension_numbers = #tpu.dot_dimension_numbers<[1], [0], [0], [1], [0, 0, 1, 1], [], []>, precision = #tpu.contract_precision<fp32>} : vector<1x32xf32>, vector<32x512xf32>, vector<1x512xf32> -> vector<1x512xf32>
    %cst_78 = arith.constant dense<0.000000e+00> : vector<1x512xf32>
    %132 = tpu.matmul %130, %118, %cst_78 {dimension_numbers = #tpu.dot_dimension_numbers<[1], [0], [0], [1], [0, 0, 1, 1], [], []>, precision = #tpu.contract_precision<fp32>} : vector<1x16xf32>, vector<16x512xf32>, vector<1x512xf32> -> vector<1x512xf32>
    %133 = arith.addf %131, %132 : vector<1x512xf32>
    %134 = vector.extract_strided_slice %40 {offsets = [0, 96], sizes = [1, 32], strides = [1, 1]} : vector<1x128xf32> to vector<1x32xf32>
    %135 = vector.extract_strided_slice %116 {offsets = [0, 48], sizes = [1, 16], strides = [1, 1]} : vector<1x64xf32> to vector<1x16xf32>
    %cst_79 = arith.constant dense<0.000000e+00> : vector<1x512xf32>
    %136 = tpu.matmul %134, %117, %cst_79 {dimension_numbers = #tpu.dot_dimension_numbers<[1], [0], [0], [1], [0, 0, 1, 1], [], []>, precision = #tpu.contract_precision<fp32>} : vector<1x32xf32>, vector<32x512xf32>, vector<1x512xf32> -> vector<1x512xf32>
    %cst_80 = arith.constant dense<0.000000e+00> : vector<1x512xf32>
    %137 = tpu.matmul %135, %118, %cst_80 {dimension_numbers = #tpu.dot_dimension_numbers<[1], [0], [0], [1], [0, 0, 1, 1], [], []>, precision = #tpu.contract_precision<fp32>} : vector<1x16xf32>, vector<16x512xf32>, vector<1x512xf32> -> vector<1x512xf32>
    %138 = arith.addf %136, %137 : vector<1x512xf32>
    %139 = tpu.concatenate %123, %128, %133, %138 in 0 : vector<1x512xf32>, vector<1x512xf32>, vector<1x512xf32>, vector<1x512xf32> -> vector<4x512xf32>
    %cst_81 = arith.constant dense<0xFF800000> : vector<512xf32>
    %140 = vector.multi_reduction <maximumf>, %139, %cst_81 [0] : vector<4x512xf32> to vector<512xf32>
    %141 = vector.shape_cast %140 : vector<512xf32> to vector<1x512xf32>
    %142 = vector.broadcast %141 : vector<1x512xf32> to vector<4x512xf32>
    %143 = arith.subf %139, %142 : vector<4x512xf32>
    %144 = math.exp %143 : vector<4x512xf32>
    %cst_82 = arith.constant dense<0.000000e+00> : vector<512xf32>
    %145 = vector.multi_reduction <add>, %144, %cst_82 [0] : vector<4x512xf32> to vector<512xf32>
    %146 = vector.shape_cast %145 : vector<512xf32> to vector<1x512xf32>
    %147 = tpu.reciprocal %146 {approx = true} : vector<1x512xf32> -> vector<1x512xf32>
    %148 = arith.mulf %146, %147 : vector<1x512xf32>
    %cst_83 = arith.constant 2.000000e+00 : f32
    %149 = vector.broadcast %cst_83 : f32 to vector<1x512xf32>
    %150 = arith.subf %149, %148 : vector<1x512xf32>
    %151 = arith.mulf %147, %150 : vector<1x512xf32>
    %152 = vector.broadcast %151 : vector<1x512xf32> to vector<4x512xf32>
    %153 = arith.mulf %144, %152 : vector<4x512xf32>
    %cst_84 = arith.constant 1.000000e+00 : f32
    %154 = vector.broadcast %cst_84 : f32 to vector<4x512xf32>
    %155 = arith.addf %154, %153 : vector<4x512xf32>
    %156 = arith.mulf %1, %155 : vector<4x512xf32>
    %cst_85 = arith.constant dense<0.000000e+00> : vector<512xf32>
    %157 = vector.multi_reduction <add>, %156, %cst_85 [0] : vector<4x512xf32> to vector<512xf32>
    %158 = vector.shape_cast %157 : vector<512xf32> to vector<1x512xf32>
    %c0_86 = arith.constant 0 : index
    %c0_87 = arith.constant 0 : index
    %c0_88 = arith.constant 0 : index
    %159 = vector.load %arg25[%c0_86, %c0_87, %c0_88] : memref<1x1x512xf32, #tpu.memory_space<vmem>>, vector<1x1x512xf32>
    %160 = vector.shape_cast %159 : vector<1x1x512xf32> to vector<1x512xf32>
    %161 = vector.shape_cast %158 : vector<1x512xf32> to vector<1x1x512xf32>
    tpu.vector_store %arg25[%c0_86, %c0_87, %c0_88], %161 {strides = array<i32>} : memref<1x1x512xf32, #tpu.memory_space<vmem>>, vector<1x1x512xf32>,
    return
  }
  func.func @transform_0(%arg0: i32) -> (i32, i32, i32) {
    %c0_i32 = arith.constant 0 : i32
    %c0_i32_0 = arith.constant 0 : i32
    %c0_i32_1 = arith.constant 0 : i32
    return %arg0, %c0_i32, %c0_i32_0 : i32, i32, i32
  }
  func.func @transform_1(%arg0: i32) -> (i32, i32, i32, i32) {
    %c0_i32 = arith.constant 0 : i32
    %c0_i32_0 = arith.constant 0 : i32
    %c0_i32_1 = arith.constant 0 : i32
    %c0_i32_2 = arith.constant 0 : i32
    return %arg0, %c0_i32, %c0_i32_0, %c0_i32_1 : i32, i32, i32, i32
  }
  func.func @transform_2(%arg0: i32) -> (i32, i32) {
    %c0_i32 = arith.constant 0 : i32
    %c0_i32_0 = arith.constant 0 : i32
    %c0_i32_1 = arith.constant 0 : i32
    return %c0_i32, %c0_i32_0 : i32, i32
  }
  func.func @transform_3(%arg0: i32) -> (i32, i32) {
    %c0_i32 = arith.constant 0 : i32
    %c0_i32_0 = arith.constant 0 : i32
    %c0_i32_1 = arith.constant 0 : i32
    return %c0_i32, %c0_i32_0 : i32, i32
  }
  func.func @transform_4(%arg0: i32) -> (i32, i32) {
    %c0_i32 = arith.constant 0 : i32
    %c0_i32_0 = arith.constant 0 : i32
    %c0_i32_1 = arith.constant 0 : i32
    return %c0_i32, %c0_i32_0 : i32, i32
  }
  func.func @transform_5(%arg0: i32) -> (i32, i32) {
    %c0_i32 = arith.constant 0 : i32
    %c0_i32_0 = arith.constant 0 : i32
    %c0_i32_1 = arith.constant 0 : i32
    return %c0_i32, %c0_i32_0 : i32, i32
  }
  func.func @transform_6(%arg0: i32) -> (i32, i32) {
    %c0_i32 = arith.constant 0 : i32
    %c0_i32_0 = arith.constant 0 : i32
    %c0_i32_1 = arith.constant 0 : i32
    return %c0_i32, %c0_i32_0 : i32, i32
  }
  func.func @transform_7(%arg0: i32) -> (i32, i32) {
    %c0_i32 = arith.constant 0 : i32
    %c0_i32_0 = arith.constant 0 : i32
    %c0_i32_1 = arith.constant 0 : i32
    return %c0_i32, %c0_i32_0 : i32, i32
  }
  func.func @transform_8(%arg0: i32) -> (i32, i32) {
    %c0_i32 = arith.constant 0 : i32
    %c0_i32_0 = arith.constant 0 : i32
    %c0_i32_1 = arith.constant 0 : i32
    return %c0_i32, %c0_i32_0 : i32, i32
  }
  func.func @transform_9(%arg0: i32) -> (i32, i32) {
    %c0_i32 = arith.constant 0 : i32
    %c0_i32_0 = arith.constant 0 : i32
    %c0_i32_1 = arith.constant 0 : i32
    return %c0_i32, %c0_i32_0 : i32, i32
  }
  func.func @transform_10(%arg0: i32) -> (i32, i32) {
    %c0_i32 = arith.constant 0 : i32
    %c0_i32_0 = arith.constant 0 : i32
    %c0_i32_1 = arith.constant 0 : i32
    return %c0_i32, %c0_i32_0 : i32, i32
  }
  func.func @transform_11(%arg0: i32) -> (i32, i32) {
    %c0_i32 = arith.constant 0 : i32
    %c0_i32_0 = arith.constant 0 : i32
    %c0_i32_1 = arith.constant 0 : i32
    return %c0_i32, %c0_i32_0 : i32, i32
  }
  func.func @transform_12(%arg0: i32) -> (i32, i32) {
    %c0_i32 = arith.constant 0 : i32
    %c0_i32_0 = arith.constant 0 : i32
    %c0_i32_1 = arith.constant 0 : i32
    return %c0_i32, %c0_i32_0 : i32, i32
  }
  func.func @transform_13(%arg0: i32) -> (i32, i32) {
    %c0_i32 = arith.constant 0 : i32
    %c0_i32_0 = arith.constant 0 : i32
    %c0_i32_1 = arith.constant 0 : i32
    return %c0_i32, %c0_i32_0 : i32, i32
  }
  func.func @transform_14(%arg0: i32) -> (i32, i32) {
    %c0_i32 = arith.constant 0 : i32
    %c0_i32_0 = arith.constant 0 : i32
    %c0_i32_1 = arith.constant 0 : i32
    return %c0_i32, %c0_i32_0 : i32, i32
  }
  func.func @transform_15(%arg0: i32) -> (i32, i32) {
    %c0_i32 = arith.constant 0 : i32
    %c0_i32_0 = arith.constant 0 : i32
    %c0_i32_1 = arith.constant 0 : i32
    return %c0_i32, %c0_i32_0 : i32, i32
  }
  func.func @transform_16(%arg0: i32) -> (i32, i32) {
    %c0_i32 = arith.constant 0 : i32
    %c0_i32_0 = arith.constant 0 : i32
    %c0_i32_1 = arith.constant 0 : i32
    return %c0_i32, %c0_i32_0 : i32, i32
  }
  func.func @transform_17(%arg0: i32) -> (i32, i32) {
    %c0_i32 = arith.constant 0 : i32
    %c0_i32_0 = arith.constant 0 : i32
    %c0_i32_1 = arith.constant 0 : i32
    return %c0_i32, %c0_i32_0 : i32, i32
  }
  func.func @transform_18(%arg0: i32) -> (i32, i32) {
    %c0_i32 = arith.constant 0 : i32
    %c0_i32_0 = arith.constant 0 : i32
    %c0_i32_1 = arith.constant 0 : i32
    return %c0_i32, %c0_i32_0 : i32, i32
  }
  func.func @transform_19(%arg0: i32) -> (i32, i32) {
    %c0_i32 = arith.constant 0 : i32
    %c0_i32_0 = arith.constant 0 : i32
    %c0_i32_1 = arith.constant 0 : i32
    return %c0_i32, %c0_i32_0 : i32, i32
  }
  func.func @transform_20(%arg0: i32) -> (i32, i32) {
    %c0_i32 = arith.constant 0 : i32
    %c0_i32_0 = arith.constant 0 : i32
    %c0_i32_1 = arith.constant 0 : i32
    return %c0_i32, %c0_i32_0 : i32, i32
  }
  func.func @transform_21(%arg0: i32) -> (i32, i32) {
    %c0_i32 = arith.constant 0 : i32
    %c0_i32_0 = arith.constant 0 : i32
    %c0_i32_1 = arith.constant 0 : i32
    return %c0_i32, %c0_i32_0 : i32, i32
  }
  func.func @transform_22(%arg0: i32) -> (i32, i32) {
    %c0_i32 = arith.constant 0 : i32
    %c0_i32_0 = arith.constant 0 : i32
    %c0_i32_1 = arith.constant 0 : i32
    return %c0_i32, %c0_i32_0 : i32, i32
  }
  func.func @transform_23(%arg0: i32) -> (i32, i32) {
    %c0_i32 = arith.constant 0 : i32
    %c0_i32_0 = arith.constant 0 : i32
    %c0_i32_1 = arith.constant 0 : i32
    return %c0_i32, %c0_i32_0 : i32, i32
  }
  func.func @transform_24(%arg0: i32) -> (i32, i32, i32) {
    %c0_i32 = arith.constant 0 : i32
    %c0_i32_0 = arith.constant 0 : i32
    %c0_i32_1 = arith.constant 0 : i32
    return %arg0, %c0_i32, %c0_i32_0 : i32, i32, i32
  }
}

</mosaic_0001>

<bundles_post_ra>
// kernel: tpu_custom_call.1
= control target key start
LH: loop header
LB: loop body
LE: loop exit
PB: predicated region body
PF: predicated region fallthrough
CT: control target
= control target key end

     0   :  { %s21588_s0 = inlined_call_operand.vmem [shape: f32[2,4,512], index: 0, kind: input, shape index: {}]   ;;  %s21589_s1 = inlined_call_operand.vmem [shape: f32[2,4,32,16], index: 1, kind: input, shape index: {}]   ;;  %s21590_s2 = inlined_call_operand.vmem [shape: f32[512,32], index: 2, kind: input, shape index: {}]   ;;  %s21591_s3 = inlined_call_operand.vmem [shape: f32[32,8], index: 3, kind: input, shape index: {}]   ;;  %s21592_s4 = inlined_call_operand.vmem [shape: f32[1,8], index: 4, kind: input, shape index: {}]   ;;  %s21593_s5 = inlined_call_operand.vmem [shape: f32[8,32], index: 5, kind: input, shape index: {}]   ;;  %s21594_s6 = inlined_call_operand.vmem [shape: f32[1,32], index: 6, kind: input, shape index: {}]   ;;  %s21595_s7 = inlined_call_operand.vmem [shape: f32[32,32], index: 7, kind: input, shape index: {}]   ;;  %s21596_s8 = inlined_call_operand.vmem [shape: f32[1,32], index: 8, kind: input, shape index: {}]   ;;  %s21597_s9 = inlined_call_operand.vmem [shape: f32[32,128], index: 9, kind: input, shape index: {}]   ;;  %s21598_s10 = inlined_call_operand.vmem [shape: f32[1,128], index: 10, kind: input, shape index: {}]   ;;  %s21599_s11 = inlined_call_operand.vmem [shape: f32[8,32], index: 11, kind: input, shape index: {}]   ;;  %s21600_s12 = inlined_call_operand.vmem [shape: f32[8,1], index: 12, kind: input, shape index: {}]   ;;  %s21601_s13 = inlined_call_operand.vmem [shape: f32[8,72], index: 13, kind: input, shape index: {}]   ;;  %s21602_s14 = inlined_call_operand.vmem [shape: f32[8,1], index: 14, kind: input, shape index: {}]   ;;  %s21603_s15 = inlined_call_operand.vmem [shape: f32[72,16], index: 15, kind: input, shape index: {}]   ;;  %s21604_s16 = inlined_call_operand.vmem [shape: f32[1,8], index: 16, kind: input, shape index: {}]   ;;  %s21605_s17 = inlined_call_operand.<no memory space> [shape: f32[1,1], index: 17, kind: input, shape index: {}]   ;;  %s21606_s18 = inlined_call_operand.vmem [shape: f32[16,4], index: 18, kind: input, shape index: {}]   ;;  %s21607_s19 = inlined_call_operand.vmem [shape: f32[1,4], index: 19, kind: input, shape index: {}]   ;;  %s21608_s20 = inlined_call_operand.vmem [shape: f32[4,64], index: 20, kind: input, shape index: {}]   ;;  %s21609_s21 = inlined_call_operand.vmem [shape: f32[1,64], index: 21, kind: input, shape index: {}]   ;;  %s21610_s22 = inlined_call_operand.vmem [shape: f32[32,512], index: 22, kind: input, shape index: {}]   ;;  %s21611_s23 = inlined_call_operand.vmem [shape: f32[16,512], index: 23, kind: input, shape index: {}]   ;;  %s21612_s24 = inlined_call_operand.hbm [shape: f32[2,1,512], index: 24, kind: output, shape index: {}]  }
   0x1   :  { %21739 = sst [smem:[#allocation60_spill]] %s21588_s0  ;;  %v29_v0 = vstv %s21605_s17 }
   0x2   :  { %21740 = sst [smem:[#allocation61_spill]] %s21589_s1  ;;  %30 = vst [vmem:[#allocation2] sm:$0x1] %v29_v0 }
   0x3   :  { %21741 = sst [smem:[#allocation62_spill]] %s21590_s2 }
   0x4   :  { %21742 = sst [smem:[#allocation63_spill]] %s21591_s3 }
   0x5   :  { %21743 = sst [smem:[#allocation64_spill]] %s21592_s4 }
   0x6   :  { %21744 = sst [smem:[#allocation65_spill]] %s21593_s5 }
   0x7   :  { %21745 = sst [smem:[#allocation66_spill]] %s21594_s6 }
   0x8   :  { %21746 = sst [smem:[#allocation67_spill]] %s21595_s7 }
   0x9   :  { %21747 = sst [smem:[#allocation68_spill]] %s21596_s8 }
   0xa   :  { %31 = vsyncpa [#allocation4], 0 }
   0xb   :  { %33 = vsyncpa [#allocation4 + $0x1], 0  ;;  %s18714_s27 = smov 0   ;;  %s18716_s28 = smov 0  }
   0xc   :  { %s18718_s6 = smov 0   ;;  %s18720_s2 = smov 0  }
   0xd LB: > { %21748 = sst [smem:[#allocation6_spill]] %s18559_s6  ;;  %s18735_s17 = sadd.s32 4294967295, %s18563_s2   ;;  %s18563_s2 = sphi %s18720_s2, %s22083_s2   ;;  %s18559_s6 = sphi %s18718_s6, %s22085_s6   ;;  %s18555_s28 = sphi %s18716_s28, %s22087_s28   ;;  %s18551_s27 = sphi %s18714_s27, %s22086_s27  }
   0xe   : > { %s15729_s29 = sadd.s32 4294967294, %s18563_s2   ;;  %s18739_s0 = sadd.s32 1, %s18563_s2  }
   0xf   : > { %21749 = sst [smem:[#allocation7_spill]] %s18739_s0  ;;  %s560_s7 = sadd.s32 1, %s18559_s6 }
  0x10   : > { %s557_s30 = ssub.s32 %s18563_s2, %s18739_s0  ;;  %p570_p0 = scmp.ne.s32.totalorder %s18559_s6, %s18555_s28 }
  0x11   : > { %p558_p1 = scmp.eq.s32.totalorder %s557_s30, 0  ;;  %p571_p2 = scmp.eq.s32.totalorder %s18735_s17, 1 }
  0x12   : > { %p576_p3 = scmp.ne.s32.totalorder %s18555_s28, %s18551_s27  ;;  %p577_p4 = scmp.eq.s32.totalorder %s15729_s29, 1 }
  0x13   : > { %s18750_s3 = scalar_select %p558_p1, %s18559_s6, %s560_s7  }
  0x14   : > { %p18752_p5 = por %p571_p2, %p570_p0  ;;  %p18756_p6 = por %p577_p4, %p576_p3 }
  0x15   : > { %21750 = sst [smem:[#allocation8_spill]] %s18750_s3  ;;  %p15732_p7 = scmp.ge.s32.totalorder %s18563_s2, 1 }
  0x16   : > { %s21752_s8 = scalar_select %p18756_p6, 1, 0 }
  0x17   : > { %p677_p8 = scmp.lt.s32.totalorder %s18563_s2, 3 }
  0x18   : > { %21753 = sst [smem:[#allocation9_spill]] %s21752_s8 }
  0x19   : > { %p678_p9 = pnand %p15732_p7, %p677_p8 }
  0x1b   : > { %681 = sbr.rel (%p678_p9) target bundleno = 3398 (0xd46), region = 116 }
  0x22   : > { %s21754_s5 = sld [smem:[#allocation62_spill]]  ;;  %p748_p10 = scmp.lt.s32.totalorder %s18735_s17, 1  ;;  %vm766_vm0 = vcmask 1043456   ;;  %vm18566_vm1 = vmmov 0   ;;  %vm2588_vm2 = vcmask 261120   ;;  %vm3081_vm3 = vcmask 64512  }
  0x23   : > { %s21762_s8 = sld [smem:[#allocation60_spill]]  ;;  %s22036_s29 = sld [smem:[#allocation63_spill]]  ;;  %vm4551_vm4 = vcmask 130048   ;;  %vm5084_vm5 = vcmask 80896   ;;  %vm5099_vm6 = vcmask 48128   ;;  %vm5142_vm7 = vcmask 588800  }
  0x24   : > { %s18986_s7 = scalar_select %p748_p10, %s18735_s17, 1  ;;  %vm5107_vm8 = vcmask 15360   ;;  %vm5115_vm9 = vcmask 113664   ;;  %vm6637_vm10 = vcmask 31744   ;;  %vm15458_vm11 = vcmask 1040384  }
  0x25   : > { %s22037_s26 = sld [smem:[#allocation65_spill]]  ;;  %s22038_s0 = sld [smem:[#allocation64_spill]]  ;;  %vm15463_vm12 = vcmask 1041408   ;;  %vm15468_vm13 = vcmask 1042432  }
  0x26   : > { %s15749_s1 = sshll.u32 %s18986_s7, 4  ;;  %s15750_s30 = sshll.u32 %s18986_s7, 7 }
  0x27   : > { %s18570_s6 = smov 122   ;;  %s18574_s7 = smov 6  }
  0x28   : > { %v811_v1 = vld [vmem:[%s21754_s5 + $0x80] sm:$0xff]  ;;  %v812_v2 = vld [vmem:[%s21754_s5 + $0x88] sm:$0xff]  ;;  %v813_v8 = vld [vmem:[%s21754_s5 + $0x90] sm:$0xff] }
  0x29   : > { %v795_v3 = vld [vmem:[%s21754_s5] sm:$0xff]  ;;  %v908_v4 = vand.u32 4294901760, %v811_v1  ;;  %v911_v5 = vand.u32 4294901760, %v812_v2  ;;  %v796_v6 = vld [vmem:[%s21754_s5 + $0x8] sm:$0xff]  ;;  %v814_v9 = vld [vmem:[%s21754_s5 + $0x98] sm:$0xff]  ;;  %v914_v11 = vand.u32 4294901760, %v813_v8  ;;  %s19043_s4 = scalar_lea.vmem %s21762_s8, %s15749_s1 }
  0x2a   : > { %v860_v7 = vand.u32 4294901760, %v795_v3  ;;  %v863_v10 = vand.u32 4294901760, %v796_v6  ;;  %v917_v12 = vand.u32 4294901760, %v814_v9  ;;  %v797_v13 = vld [vmem:[%s21754_s5 + $0x10] sm:$0xff]  ;;  %v798_v14 = vld [vmem:[%s21754_s5 + $0x18] sm:$0xff]  ;;  %v815_v19 = vld [vmem:[%s21754_s5 + $0xa0] sm:$0xff] }
  0x2b   : > { %v18786_v15 = vpack.c.bf16 %v911_v5, %v908_v4  ;;  %v866_v17 = vand.u32 4294901760, %v797_v13  ;;  %v869_v18 = vand.u32 4294901760, %v798_v14  ;;  %v816_v20 = vld [vmem:[%s21754_s5 + $0xa8] sm:$0xff]  ;;  %v799_v24 = vld [vmem:[%s21754_s5 + $0x20] sm:$0xff]  ;;  %v18809_v26 = vsub.f32 %v813_v8, %v914_v11  ;;  %v817_v38 = vld [vmem:[%s21754_s5 + $0xb0] sm:$0xff]  ;;  %s22040_s8 = sld [smem:[#allocation66_spill]] }
  0x2c   : > { %v18788_v16 = vsub.f32 %v795_v3, %v860_v7  ;;  %v18796_v21 = vpack.c.bf16 %v863_v10, %v860_v7  ;;  %v18798_v22 = vsub.f32 %v796_v6, %v863_v10  ;;  %v18800_v23 = vpack.c.bf16 %v917_v12, %v914_v11  ;;  %v800_v25 = vld [vmem:[%s21754_s5 + $0x28] sm:$0xff]  ;;  %v818_v43 = vld [vmem:[%s21754_s5 + $0xb8] sm:$0xff]  ;;  %v801_v56 = vld [vmem:[%s21754_s5 + $0x30] sm:$0xff]  ;;  %s18576_s1 = smov 2  }
  0x2d   : > { %16929 = vmatprep.subr.bf16.mxu0 %v18786_v15  ;;  %v18811_v27 = vsub.f32 %v814_v9, %v917_v12  ;;  %v18813_v28 = vpack.c.bf16 %v869_v18, %v866_v17  ;;  %v18815_v29 = vsub.f32 %v797_v13, %v866_v17  ;;  %v920_v30 = vand.u32 4294901760, %v815_v19  ;;  %v802_v57 = vld [vmem:[%s21754_s5 + $0x38] sm:$0xff]  ;;  %v819_v6 = vld [vmem:[%s21754_s5 + $0xc0] sm:$0xff]  ;;  %v820_v7 = vld [vmem:[%s21754_s5 + $0xc8] sm:$0xff] }
  0x2e   : > { %16931 = vmatpush3.bf16.msra.mxu0 %v18796_v21  ;;  %v923_v31 = vand.u32 4294901760, %v816_v20  ;;  %v18818_v32 = vsub.f32 %v811_v1, %v908_v4  ;;  %v18820_v33 = vsub.f32 %v812_v2, %v911_v5  ;;  %v872_v34 = vand.u32 4294901760, %v799_v24  ;;  %v803_v12 = vld [vmem:[%s21754_s5 + $0x40] sm:$0xff] }
  0x2f   : > { %16933 = vmatprep.subr.bf16.mxu0 %v18800_v23  ;;  %v875_v35 = vand.u32 4294901760, %v800_v25  ;;  %v21637_v36 = vand.u32 4294901760, %v18788_v16  ;;  %v21636_v37 = vand.u32 4294901760, %v18798_v22  ;;  %v18828_v39 = vsub.f32 %v798_v14, %v869_v18 }
  0x30   : > { %v18830_v40 = vpack.c.bf16 %v923_v31, %v920_v30  ;;  %v18832_v41 = vsub.f32 %v815_v19, %v920_v30  ;;  %v21639_v42 = vand.u32 4294901760, %v18818_v32  ;;  %v18838_v44 = vsub.f32 %v816_v20, %v923_v31  ;;  %v804_v30 = vld [vmem:[%s21754_s5 + $0x48] sm:$0xff] }
  0x31   : > { %v21638_v45 = vand.u32 4294901760, %v18820_v33  ;;  %v18841_v46 = vpack.c.bf16 %v875_v35, %v872_v34  ;;  %v18843_v47 = vsub.f32 %v799_v24, %v872_v34  ;;  %v975_v49 = vsub.f32 %v18788_v16, %v21637_v36 }
  0x32   : > { %16935 = vmatpush3.bf16.msra.mxu0 %v18813_v28  ;;  %v1087_v48 = vsub.f32 %v18818_v32, %v21639_v42  ;;  %v982_v50 = vsub.f32 %v18798_v22, %v21636_v37  ;;  %v926_v51 = vand.u32 4294901760, %v817_v38  ;;  %v929_v53 = vand.u32 4294901760, %v818_v43  ;;  %v758_v42 = vld [vmem:[%s19043_s4] sm:$0xff] }
  0x33   : > { %16937 = vmatprep.subr.bf16.mxu0 %v18830_v40  ;;  %v1094_v52 = vsub.f32 %v18820_v33, %v21638_v45  ;;  %v21635_v54 = vand.u32 4294901760, %v18809_v26  ;;  %v21632_v55 = vand.u32 4294901760, %v18811_v27  ;;  %v18867_v59 = vsub.f32 %v800_v25, %v875_v35 }
  0x34   : > { %v1088_v58 = vand.u32 4294901760, %v1087_v48  ;;  %v976_v60 = vand.u32 4294901760, %v975_v49  ;;  %v983_v61 = vand.u32 4294901760, %v982_v50  ;;  %v18869_v63 = vpack.c.bf16 %v929_v53, %v926_v51 }
  0x35   : > { %v1095_v62 = vand.u32 4294901760, %v1094_v52  ;;  %v18871_v0 = vsub.f32 %v817_v38, %v926_v51  ;;  %v1101_v1 = vsub.f32 %v18809_v26, %v21635_v54  ;;  %v1108_v3 = vsub.f32 %v18811_v27, %v21632_v55 }
  0x36   : > { %16939 = vmatpush3.bf16.msra.mxu0 %v18841_v46  ;;  %v16962_v2 = vpack.c.bf16 %v983_v61, %v976_v60  ;;  %v878_v4 = vand.u32 4294901760, %v801_v56  ;;  %v881_v5 = vand.u32 4294901760, %v802_v57  ;;  %v21631_v10 = vand.u32 4294901760, %v18815_v29 }
  0x37   : > { %v16960_v8 = vpack.c.bf16 %v1095_v62, %v1088_v58  ;;  %16941 = vmatprep.subr.bf16.mxu0 %v18869_v63  ;;  %v1102_v9 = vand.u32 4294901760, %v1101_v1  ;;  %v21628_v11 = vand.u32 4294901760, %v18828_v39  ;;  %v18892_v13 = vsub.f32 %v818_v43, %v929_v53  ;;  %v822_v58 = vld [vmem:[%s21754_s5 + $0xd8] sm:$0xff] }
  0x38   : > { %v1109_v14 = vand.u32 4294901760, %v1108_v3  ;;  %v18894_v17 = vpack.c.bf16 %v881_v5, %v878_v4  ;;  %v18896_v18 = vsub.f32 %v801_v56, %v878_v4  ;;  %v989_v19 = vsub.f32 %v18815_v29, %v21631_v10 }
  0x39   : > { %16961 = vmatprep.subr.bf16.mxu1 %v16960_v8  ;;  %v996_v20 = vsub.f32 %v18828_v39, %v21628_v11  ;;  %v932_v24 = vand.u32 4294901760, %v819_v6  ;;  %v935_v25 = vand.u32 4294901760, %v820_v7  ;;  %v21627_v34 = vand.u32 4294901760, %v18832_v41 }
  0x3a   : > { %21755 = vst [vmem:[#allocation10_spill] sm:$0xff] %v18894_v17  ;;  %16963 = vmatpush3.bf16.msra.mxu1 %v16962_v2  ;;  %v16964_v31 = vpack.c.bf16 %v1109_v14, %v1102_v9  ;;  %16943 = vmatpush3.bf16.msra.mxu0 %v18894_v17  ;;  %v21625_v35 = vand.u32 4294901760, %v18838_v44  ;;  %v884_v38 = vand.u32 4294901760, %v803_v12  ;;  %v18910_v43 = vsub.f32 %v802_v57, %v881_v5  ;;  %v821_v57 = vld [vmem:[%s21754_s5 + $0xd0] sm:$0xff] }
  0x3b   : > { %v990_v48 = vand.u32 4294901760, %v989_v19  ;;  %v997_v49 = vand.u32 4294901760, %v996_v20  ;;  %v18912_v50 = vpack.c.bf16 %v935_v25, %v932_v24  ;;  %v18914_v51 = vsub.f32 %v819_v6, %v932_v24  ;;  %v805_v2 = vld [vmem:[%s21754_s5 + $0x50] sm:$0xff]  ;;  %v806_v19 = vld [vmem:[%s21754_s5 + $0x58] sm:$0xff] }
  0x3c   : > { %16965 = vmatprep.subr.bf16.mxu1 %v16964_v31  ;;  %v1115_v52 = vsub.f32 %v18832_v41, %v21627_v34  ;;  %v1122_v53 = vsub.f32 %v18838_v44, %v21625_v35  ;;  %v887_v56 = vand.u32 4294901760, %v804_v30  ;;  %v18929_v61 = vsub.f32 %v820_v7, %v935_v25 }
  0x3d   : > { %21756 = vst [vmem:[#allocation11_spill] sm:$0xff] %v18912_v50  ;;  %v16966_v60 = vpack.c.bf16 %v997_v49, %v990_v48  ;;  %16945 = vmatprep.subr.bf16.mxu0 %v18912_v50  ;;  %v21624_v62 = vand.u32 4294901760, %v18843_v47  ;;  %v21622_v1 = vand.u32 4294901760, %v18867_v59  ;;  %v18938_v6 = vsub.f32 %v803_v12, %v884_v38 }
  0x3e   : > { %v1116_v3 = vand.u32 4294901760, %v1115_v52  ;;  %v1123_v4 = vand.u32 4294901760, %v1122_v53  ;;  %v18936_v5 = vpack.c.bf16 %v887_v56, %v884_v38  ;;  %v938_v9 = vand.u32 4294901760, %v821_v57 }
  0x3f   : > { %16967 = vmatpush3.bf16.msra.mxu1 %v16966_v60  ;;  %v1003_v7 = vsub.f32 %v18843_v47, %v21624_v62  ;;  %v1010_v8 = vsub.f32 %v18867_v59, %v21622_v1  ;;  %v941_v14 = vand.u32 4294901760, %v822_v58  ;;  %v21621_v12 = vand.u32 4294901760, %v18871_v0 }
  0x40   : > { %21757 = vst [vmem:[#allocation12_spill] sm:$0xff] %v18936_v5  ;;  %v16968_v20 = vpack.c.bf16 %v1123_v4, %v1116_v3  ;;  %16947 = vmatpush3.bf16.msra.mxu0 %v18936_v5  ;;  %v21620_v24 = vand.u32 4294901760, %v18892_v13  ;;  %v890_v25 = vand.u32 4294901760, %v805_v2  ;;  %v18953_v31 = vsub.f32 %v804_v30, %v887_v56  ;;  %v823_v30 = vld [vmem:[%s21754_s5 + $0xe0] sm:$0xff]  ;;  %v824_v56 = vld [vmem:[%s21754_s5 + $0xe8] sm:$0xff] }
  0x41   : > { %v1004_v38 = vand.u32 4294901760, %v1003_v7  ;;  %v1011_v48 = vand.u32 4294901760, %v1010_v8  ;;  %v18955_v49 = vpack.c.bf16 %v941_v14, %v938_v9  ;;  %v18957_v52 = vsub.f32 %v821_v57, %v938_v9  ;;  %v807_v9 = vld [vmem:[%s21754_s5 + $0x60] sm:$0xff] }
  0x42   : > { %16969 = vmatprep.subr.bf16.mxu1 %v16968_v20  ;;  %v1129_v53 = vsub.f32 %v18871_v0, %v21621_v12  ;;  %v1136_v60 = vsub.f32 %v18892_v13, %v21620_v24  ;;  %v893_v3 = vand.u32 4294901760, %v806_v19  ;;  %v18972_v4 = vsub.f32 %v822_v58, %v941_v14 }
  0x43   : > { %21758 = vst [vmem:[#allocation13_spill] sm:$0xff] %v18955_v49  ;;  %v16970_v57 = vpack.c.bf16 %v1011_v48, %v1004_v38  ;;  %16949 = vmatprep.subr.bf16.mxu0 %v18955_v49  ;;  %v21623_v7 = vand.u32 4294901760, %v18896_v18  ;;  %v21626_v8 = vand.u32 4294901760, %v18910_v43  ;;  %v18981_v1 = vsub.f32 %v805_v2, %v890_v25 }
  0x44   : > { %v1130_v20 = vand.u32 4294901760, %v1129_v53  ;;  %v1137_v24 = vand.u32 4294901760, %v1136_v60  ;;  %v18979_v12 = vpack.c.bf16 %v893_v3, %v890_v25  ;;  %v944_v38 = vand.u32 4294901760, %v823_v30  ;;  %v808_v53 = vld [vmem:[%s21754_s5 + $0x68] sm:$0xff] }
  0x45   : > { %16971 = vmatpush3.bf16.msra.mxu1 %v16970_v57  ;;  %v1017_v58 = vsub.f32 %v18896_v18, %v21623_v7  ;;  %v1024_v14 = vsub.f32 %v18910_v43, %v21626_v8  ;;  %v947_v48 = vand.u32 4294901760, %v824_v56  ;;  %v21630_v25 = vand.u32 4294901760, %v18914_v51 }
  0x46   : > { %21759 = vst [vmem:[#allocation14_spill] sm:$0xff] %v18979_v12  ;;  %v16972_v2 = vpack.c.bf16 %v1137_v24, %v1130_v20  ;;  %16951 = vmatpush3.bf16.msra.mxu0 %v18979_v12  ;;  %v21629_v60 = vand.u32 4294901760, %v18929_v61  ;;  %v896_v57 = vand.u32 4294901760, %v807_v9  ;;  %v19000_v7 = vsub.f32 %v806_v19, %v893_v3  ;;  %v825_v19 = vld [vmem:[%s21754_s5 + $0xf0] sm:$0xff]  ;;  %v826_v3 = vld [vmem:[%s21754_s5 + $0xf8] sm:$0xff] }
  0x47   : > { %v1018_v62 = vand.u32 4294901760, %v1017_v58  ;;  %v1025_v35 = vand.u32 4294901760, %v1024_v14  ;;  %v19002_v8 = vpack.c.bf16 %v947_v48, %v944_v38  ;;  %v19004_v34 = vsub.f32 %v823_v30, %v944_v38 }
  0x48   : > { %16973 = vmatprep.subr.bf16.mxu1 %v16972_v2  ;;  %v1143_v24 = vsub.f32 %v18914_v51, %v21630_v25  ;;  %v1150_v20 = vsub.f32 %v18929_v61, %v21629_v60  ;;  %v899_v11 = vand.u32 4294901760, %v808_v53  ;;  %v19020_v58 = vsub.f32 %v824_v56, %v947_v48  ;;  %v809_v2 = vld [vmem:[%s21754_s5 + $0x70] sm:$0xff] }
  0x49   : > { %21760 = vst [vmem:[#allocation15_spill] sm:$0xff] %v19002_v8  ;;  %v16974_v30 = vpack.c.bf16 %v1025_v35, %v1018_v62  ;;  %16953 = vmatprep.subr.bf16.mxu0 %v19002_v8  ;;  %v21634_v14 = vand.u32 4294901760, %v18938_v6  ;;  %v21633_v38 = vand.u32 4294901760, %v18953_v31  ;;  %v19029_v55 = vsub.f32 %v807_v9, %v896_v57 }
  0x4a   : > { %v1144_v60 = vand.u32 4294901760, %v1143_v24  ;;  %v1151_v25 = vand.u32 4294901760, %v1150_v20  ;;  %v19027_v10 = vpack.c.bf16 %v899_v11, %v896_v57  ;;  %v950_v56 = vand.u32 4294901760, %v825_v19  ;;  %v810_v24 = vld [vmem:[%s21754_s5 + $0x78] sm:$0xff] }
  0x4b   : > { %16975 = vmatpush3.bf16.msra.mxu1 %v16974_v30  ;;  %v1031_v35 = vsub.f32 %v18938_v6, %v21634_v14  ;;  %v1038_v62 = vsub.f32 %v18953_v31, %v21633_v38  ;;  %v953_v48 = vand.u32 4294901760, %v826_v3  ;;  %v21645_v57 = vand.u32 4294901760, %v18957_v52 }
  0x4c   : > { %21761 = vst [vmem:[#allocation16_spill] sm:$0xff] %v19027_v10  ;;  %v16976_v9 = vpack.c.bf16 %v1151_v25, %v1144_v60  ;;  %16955 = vmatpush3.bf16.msra.mxu0 %v19027_v10  ;;  %v21642_v20 = vand.u32 4294901760, %v18972_v4  ;;  %v902_v30 = vand.u32 4294901760, %v809_v2  ;;  %v19048_v38 = vsub.f32 %v808_v53, %v899_v11 }
  0x4d   : > { %v1032_v14 = vand.u32 4294901760, %v1031_v35  ;;  %v1039_v54 = vand.u32 4294901760, %v1038_v62  ;;  %v19050_v37 = vpack.c.bf16 %v953_v48, %v950_v56  ;;  %v19052_v36 = vsub.f32 %v825_v19, %v950_v56 }
  0x4e   : > { %16977 = vmatprep.subr.bf16.mxu1 %v16976_v9  ;;  %v1157_v25 = vsub.f32 %v18957_v52, %v21645_v57  ;;  %v1164_v60 = vsub.f32 %v18972_v4, %v21642_v20  ;;  %v905_v45 = vand.u32 4294901760, %v810_v24  ;;  %v19062_v11 = vsub.f32 %v826_v3, %v953_v48 }
  0x4f   : > { %21763 = vst [vmem:[#allocation17_spill] sm:$0xff] %v19050_v37  ;;  %21764 = vst [vmem:[#allocation18_spill] sm:$0xff] %v19052_v36  ;;  %v16978_v10 = vpack.c.bf16 %v1039_v54, %v1032_v14  ;;  %16957 = vmatprep.subr.bf16.mxu0 %v19050_v37  ;;  %v21643_v53 = vand.u32 4294901760, %v18981_v1  ;;  %v21644_v19 = vand.u32 4294901760, %v19000_v7  ;;  %v19068_v9 = vsub.f32 %v809_v2, %v902_v30 }
  0x50   : > { %21765 = vst [vmem:[#allocation19_spill] sm:$0xff] %v19062_v11  ;;  %v1158_v35 = vand.u32 4294901760, %v1157_v25  ;;  %v1165_v62 = vand.u32 4294901760, %v1164_v60  ;;  %v19066_v56 = vpack.c.bf16 %v905_v45, %v902_v30  ;;  %v762_v3 = vcombine.high %v758_v42, %v758_v42 }
  0x51   : > { %16979 = vmatpush3.bf16.msra.mxu1 %v16978_v10  ;;  %v1045_v20 = vsub.f32 %v18981_v1, %v21643_v53  ;;  %v1052_v54 = vsub.f32 %v19000_v7, %v21644_v19  ;;  %v21657_v14 = vand.u32 4294901760, %v19004_v34  ;;  %v21654_v25 = vand.u32 4294901760, %v19020_v58 }
  0x52   : > { %21766 = vst [vmem:[#allocation20_spill] sm:$0xff] %v19066_v56  ;;  %v16980_v48 = vpack.c.bf16 %v1165_v62, %v1158_v35  ;;  %16959 = vmatpush3.bf16.msra.mxu0 %v19066_v56  ;;  %v16992_v2 = vpack.c.bf16 %v18820_v33, %v18818_v32  ;;  %v767_v10 = vsel %vm766_vm0, %v758_v42, 0.0  ;;  %v774_v53 = vsel %vm766_vm0, %v762_v3, 0.0 }
  0x53   : > { %v1046_v30 = vand.u32 4294901760, %v1045_v20  ;;  %v1053_v60 = vand.u32 4294901760, %v1052_v54  ;;  %v1171_v19 = vsub.f32 %v19004_v34, %v21657_v14  ;;  %v775_v57 = vrot.slane %v774_v53, 4 }
  0x54   : > { %16981 = vmatprep.subr.bf16.mxu1 %v16980_v48  ;;  %v1178_v35 = vsub.f32 %v19020_v58, %v21654_v25  ;;  %16993 = vmatprep.subr.bf16.mxu0 %v16992_v2  ;;  %v768_v62 = vrot.slane %v767_v10, 4  ;;  %v21656_v56 = vand.u32 4294901760, %v19029_v55  ;;  %v19090_v37 = vsub.f32 %v810_v24, %v905_v45 }
  0x55   : > { %v16982_v42 = vpack.c.bf16 %v1053_v60, %v1046_v30  ;;  %v1172_v20 = vand.u32 4294901760, %v1171_v19  ;;  %v21655_v54 = vand.u32 4294901760, %v19048_v38  ;;  %v776_v3 = vadd.f32 %v775_v57, %v774_v53 }
  0x56   : > { %v1179_v8 = vand.u32 4294901760, %v1178_v35  ;;  %v769_v12 = vadd.f32 %v768_v62, %v767_v10  ;;  %v1059_v48 = vsub.f32 %v19029_v55, %v21656_v56  ;;  %v1184_v25 = vand.u32 4294901760, %v19052_v36 }
  0x57   : > { %16983 = vmatpush3.bf16.msra.mxu1 %v16982_v42  ;;  %v1066_v2 = vsub.f32 %v19048_v38, %v21655_v54  ;;  %v1191_v45 = vand.u32 4294901760, %v19062_v11  ;;  %v777_v24 = vrot.slane %v776_v3, 2  ;;  %v1072_v35 = vand.u32 4294901760, %v19068_v9 }
  0x58   : > { %v16984_v19 = vpack.c.bf16 %v1179_v8, %v1172_v20  ;;  %v770_v30 = vrot.slane %v769_v12, 2  ;;  %v1060_v60 = vand.u32 4294901760, %v1059_v48  ;;  %v1185_v53 = vsub.f32 %v19052_v36, %v1184_v25 }
  0x59   : > { %v1067_v57 = vand.u32 4294901760, %v1066_v2  ;;  %v1192_v10 = vsub.f32 %v19062_v11, %v1191_v45  ;;  %v778_v62 = vadd.f32 %v777_v24, %v776_v3  ;;  %v1079_v54 = vand.u32 4294901760, %v19090_v37 }
  0x5a   : > { %16985 = vmatprep.subr.bf16.mxu1 %v16984_v19  ;;  %v771_v42 = vadd.f32 %v770_v30, %v769_v12  ;;  %v1186_v14 = vand.u32 4294901760, %v1185_v53  ;;  %v1073_v5 = vsub.f32 %v19068_v9, %v1072_v35  ;;  %v21768_v19 = vand.u32 4294901760, %v18818_v32 }
  0x5b   : > { %v16986_v56 = vpack.c.bf16 %v1067_v57, %v1060_v60  ;;  %v1193_v49 = vand.u32 4294901760, %v1192_v10  ;;  %v779_v8 = vrot.slane %v778_v62, 1  ;;  %v1080_v48 = vsub.f32 %v19090_v37, %v1079_v54 }
  0x5c   : > { %v772_v20 = vrot.slane %v771_v42, 1  ;;  %v1074_v36 = vand.u32 4294901760, %v1073_v5  ;;  %v21769_v30 = vand.u32 4294901760, %v18820_v33  ;;  %v21770_v5 = vand.u32 4294901760, %v18788_v16 }
  0x5d   : > { %16987 = vmatpush3.bf16.msra.mxu1 %v16986_v56  ;;  %v16988_v2 = vpack.c.bf16 %v1193_v49, %v1186_v14  ;;  %v780_v11 = vadd.f32 %v779_v8, %v778_v62  ;;  %v1081_v17 = vand.u32 4294901760, %v1080_v48  ;;  %v21771_v56 = vand.u32 4294901760, %v18798_v22 }
  0x5e   : > { %v773_v50 = vadd.f32 %v772_v20, %v771_v42  ;;  %v19115_v60 = vpack.c.bf16 %v21769_v30, %v21768_v19  ;;  %v21772_v32 = vand.u32 4294901760, %v18809_v26  ;;  %v21773_v33 = vand.u32 4294901760, %v18811_v27 }
  0x5f   : > { %16989 = vmatprep.subr.bf16.mxu1 %v16988_v2  ;;  %v19107_v3 = vand.u32 4294901760, %v780_v11  ;;  %v16990_v24 = vpack.c.bf16 %v1081_v17, %v1074_v36  ;;  %v19126_v14 = vpack.c.bf16 %v21771_v56, %v21770_v5  ;;  %v21774_v17 = vand.u32 4294901760, %v18815_v29 }
  0x60   : > { %v19109_v12 = vand.u32 4294901760, %v773_v50  ;;  %v19133_v36 = vpack.c.bf16 %v21773_v33, %v21772_v32  ;;  %v21776_v53 = vand.u32 4294901760, %v18832_v41  ;;  %v21777_v10 = vand.u32 4294901760, %v18838_v44 }
  0x61   : > { %v956_v57 = vsub.f32 %v780_v11, %v19107_v3  ;;  %16991 = vmatpush3.bf16.msra.mxu1 %v16990_v24  ;;  %1196 = vmatprep.mubr.f32.mxu1 %v19107_v3  ;;  %v21778_v42 = vand.u32 4294901760, %v18843_v47  ;;  %v21779_v8 = vand.u32 4294901760, %v18867_v59  ;;  %v21780_v24 = vand.u32 4294901760, %v18871_v0 }
  0x62   : > { %21767 = vst [vmem:[#allocation21_spill] sm:$0xff] %v19109_v12  ;;  %v19119_v49 = vsub.f32 %v773_v50, %v19109_v12  ;;  %17025 = vmatprep.subr.bf16.mxu1 %v18786_v15  ;;  %v21775_v50 = vand.u32 4294901760, %v18828_v39  ;;  %v19145_v62 = vpack.c.bf16 %v21777_v10, %v21776_v53  ;;  %v21781_v19 = vand.u32 4294901760, %v18892_v13 }
  0x63   : > { %v19151_v20 = vpack.c.bf16 %v21779_v8, %v21778_v42  ;;  %v957_v48 = vand.u32 4294901760, %v956_v57  ;;  %v21782_v5 = vand.u32 4294901760, %v18896_v18  ;;  %v21783_v56 = vand.u32 4294901760, %v18910_v43 }
  0x64   : > { %v19139_v11 = vpack.c.bf16 %v21775_v50, %v21774_v17  ;;  %v19158_v30 = vpack.c.bf16 %v21781_v19, %v21780_v24  ;;  %1198 = vmatmul.mubr.f32.vlgmr.msra.gmra.mrb[0].mxu1 %v19109_v12  ;;  %v21784_v33 = vand.u32 4294901760, %v18914_v51  ;;  %v21785_v17 = vand.u32 4294901760, %v18929_v61 }
  0x65   : > { %v19164_v32 = vpack.c.bf16 %v21783_v56, %v21782_v5  ;;  %v21786_v53 = vand.u32 4294901760, %v18938_v6  ;;  %v21787_v10 = vand.u32 4294901760, %v18953_v31  ;;  %v21789_v8 = vand.u32 4294901760, %v18957_v52  ;;  %17027 = vmatpush3.bf16.msra.mxu1 %v18796_v21  ;;  %1440 = vmatprep.mubr.f32.mxu1 %v957_v48 }
  0x66   : > { %v19171_v50 = vpack.c.bf16 %v21785_v17, %v21784_v33  ;;  %v21790_v24 = vand.u32 4294901760, %v18972_v4  ;;  %v21792_v5 = vand.u32 4294901760, %v18981_v1  ;;  %v21793_v56 = vand.u32 4294901760, %v19000_v7  ;;  %17029 = vmatprep.subr.bf16.mxu1 %v18800_v23 }
  0x67   : > { %v19177_v42 = vpack.c.bf16 %v21787_v10, %v21786_v53  ;;  %v958_v33 = vsub.f32 %v956_v57, %v957_v48  ;;  %v21795_v17 = vand.u32 4294901760, %v19119_v49  ;;  %v21796_v53 = vand.u32 4294901760, %v19004_v34 }
  0x68   : > { %v19183_v19 = vpack.c.bf16 %v21790_v24, %v21789_v8  ;;  %v19189_v2 = vpack.c.bf16 %v21793_v56, %v21792_v5  ;;  %v21797_v10 = vand.u32 4294901760, %v19020_v58  ;;  %v21798_v24 = vand.u32 4294901760, %v19029_v55 }
  0x69   : > { %21788 = vst [vmem:[#allocation22_spill] sm:$0xff] %v19177_v42  ;;  %v964_v12 = vsub.f32 %v19119_v49, %v21795_v17  ;;  %v21799_v5 = vand.u32 4294901760, %v19048_v38  ;;  %v19210_v17 = vpack.c.bf16 %v1079_v54, %v1072_v35  ;;  %v16994_v42 = vpack.c.bf16 %v18798_v22, %v18788_v16  ;;  %17031 = vmatpush3.bf16.msra.mxu1 %v18813_v28  ;;  %v19265_v35 = vld [vmem:[%s21754_s5 + $0x190] sm:$0xff] }
  0x6a   : > { %21791 = vst [vmem:[#allocation23_spill] sm:$0xff] %v19183_v19  ;;  %21794 = vst [vmem:[#allocation24_spill] sm:$0xff] %v19189_v2  ;;  %v19199_v8 = vpack.c.bf16 %v21797_v10, %v21796_v53  ;;  %v19208_v2 = vpack.c.bf16 %v1191_v45, %v1184_v25  ;;  %v959_v19 = vand.u32 4294901760, %v958_v33  ;;  %v16996_v53 = vpack.c.bf16 %v18811_v27, %v18809_v26  ;;  %v21800_v26 = vld [vmem:[#allocation10_spill] sm:$0xff]  ;;  %v21801_v27 = vld [vmem:[#allocation11_spill] sm:$0xff] }
  0x6b   : > { %v19206_v56 = vpack.c.bf16 %v21799_v5, %v21798_v24  ;;  %v965_v48 = vand.u32 4294901760, %v964_v12  ;;  %17033 = vmatprep.subr.bf16.mxu1 %v18830_v40  ;;  %v16998_v25 = vpack.c.bf16 %v18828_v39, %v18815_v29  ;;  %v17000_v54 = vpack.c.bf16 %v18838_v44, %v18832_v41  ;;  %v19233_v29 = vld [vmem:[%s21754_s5 + $0x180] sm:$0xff]  ;;  %v19238_v39 = vld [vmem:[%s21754_s5 + $0x188] sm:$0xff]  ;;  %21804 = vst [vmem:[#allocation10_spill] sm:$0xff] %v19265_v35  ;;  %v19270_v12 = vld [vmem:[%s21754_s5 + $0x198] sm:$0xff] }
  0x6c   : > { %960 = vmatprep.mubr.f32.mxu0 %v959_v19  ;;  %v17002_v16 = vpack.c.bf16 %v18867_v59, %v18843_v47  ;;  %v17004_v22 = vpack.c.bf16 %v18892_v13, %v18871_v0  ;;  %v17006_v41 = vpack.c.bf16 %v18910_v43, %v18896_v18  ;;  %v17008_v44 = vpack.c.bf16 %v18929_v61, %v18914_v51  ;;  %v19247_v47 = vld [vmem:[%s21754_s5 + $0x100] sm:$0xff]  ;;  %v19252_v59 = vld [vmem:[%s21754_s5 + $0x108] sm:$0xff]  ;;  %v19288_v19 = vld [vmem:[%s21754_s5 + $0x110] sm:$0xff] }
  0x6d   : > { %966 = vmatmul.mubr.f32.vlgmr.msra.gmra.mrb[0].mxu0 %v965_v48  ;;  %17035 = vmatpush3.bf16.msra.mxu1 %v18841_v46  ;;  %v21802_v0 = vld [vmem:[#allocation12_spill] sm:$0xff]  ;;  %v21678_v13 = vand.u32 4294901760, %v19233_v29  ;;  %v21673_v18 = vand.u32 4294901760, %v19238_v39  ;;  %v21803_v43 = vld [vmem:[#allocation13_spill] sm:$0xff]  ;;  %v17010_v51 = vpack.c.bf16 %v18953_v31, %v18938_v6  ;;  %v21672_v61 = vand.u32 4294901760, %v19247_v47  ;;  %21805 = vst [vmem:[#allocation11_spill] sm:$0xff] %v19270_v12 }
  0x6e   : > { %16995 = vmatpush3.bf16.msra.mxu0 %v16994_v42  ;;  %1333 = vmatprep.mubr.f32.mxu0 %v956_v57  ;;  %v21670_v45 = vand.u32 4294901760, %v19252_v59  ;;  %v17012_v57 = vpack.c.bf16 %v18972_v4, %v18957_v52  ;;  %v21806_v42 = vld [vmem:[#allocation14_spill] sm:$0xff]  ;;  %21807 = vst [vmem:[#allocation12_spill] sm:$0xff] %v19288_v19  ;;  %v21808_v33 = vld [vmem:[#allocation15_spill] sm:$0xff]  ;;  %v21671_v52 = vand.u32 4294901760, %v19265_v35  ;;  %v21674_v4 = vand.u32 4294901760, %v19270_v12 }
  0x6f   : > { %16997 = vmatprep.subr.bf16.mxu0 %v16996_v53  ;;  %17037 = vmatprep.subr.bf16.mxu1 %v18869_v63  ;;  %v19278_v6 = vsub.f32 %v19233_v29, %v21678_v13  ;;  %v19283_v31 = vsub.f32 %v19238_v39, %v21673_v18  ;;  %v19296_v10 = vld [vmem:[%s21754_s5 + $0x118] sm:$0xff]  ;;  %v17014_v24 = vpack.c.bf16 %v19000_v7, %v18981_v1  ;;  %v19318_v7 = vld [vmem:[%s21754_s5 + $0x1a0] sm:$0xff] }
  0x70   : > { %21809 = vst [vmem:[#allocation13_spill] sm:$0xff] %v19296_v10  ;;  %v19303_v5 = vsub.f32 %v19247_v47, %v21672_v61  ;;  %v19308_v48 = vsub.f32 %v19252_v59, %v21670_v45  ;;  %v17016_v53 = vpack.c.bf16 %v19020_v58, %v19004_v34  ;;  %v21676_v1 = vand.u32 4294901760, %v19296_v10  ;;  %21811 = vst [vmem:[#allocation14_spill] sm:$0xff] %v19318_v7  ;;  %v21815_v61 = vld [vmem:[#allocation19_spill] sm:$0xff] }
  0x71   : > { %17039 = vmatpush3.bf16.msra.mxu1 %v21800_v26  ;;  %v19326_v34 = vsub.f32 %v19265_v35, %v21671_v52  ;;  %v19331_v58 = vsub.f32 %v19270_v12, %v21674_v4  ;;  %v21814_v52 = vld [vmem:[#allocation18_spill] sm:$0xff] }
  0x72   : > { %16999 = vmatpush3.bf16.msra.mxu0 %v16998_v25  ;;  %17041 = vmatprep.subr.bf16.mxu1 %v21801_v27  ;;  %v21675_v25 = vand.u32 4294901760, %v19288_v19  ;;  %v21680_v45 = vand.u32 4294901760, %v19308_v48  ;;  %v17020_v18 = vpack.c.bf16 %v21815_v61, %v21814_v52  ;;  %v19354_v4 = vsub.f32 %v19296_v10, %v21676_v1  ;;  %v19365_v52 = vld [vmem:[%s21754_s5 + $0x120] sm:$0xff]  ;;  %v19372_v1 = vld [vmem:[%s21754_s5 + $0x128] sm:$0xff] }
  0x73   : > { %17001 = vmatprep.subr.bf16.mxu0 %v17000_v54  ;;  %v21810_v54 = vld [vmem:[#allocation16_spill] sm:$0xff]  ;;  %v21829_v10 = vand.u32 4294901760, %v19326_v34  ;;  %v21830_v12 = vand.u32 4294901760, %v19331_v58 }
  0x74   : > { %21817 = vst [vmem:[#allocation16_spill] sm:$0xff] %v19365_v52 }
  0x75   : > { %17043 = vmatpush3.bf16.msra.mxu1 %v21802_v0 }
  0x76   : > { %17003 = vmatpush3.bf16.msra.mxu0 %v17002_v16  ;;  %17045 = vmatprep.subr.bf16.mxu1 %v21803_v43  ;;  %v21677_v16 = vand.u32 4294901760, %v19278_v6 }
  0x77   : > { %17005 = vmatprep.subr.bf16.mxu0 %v17004_v22  ;;  %v21679_v22 = vand.u32 4294901760, %v19283_v31 }
  0x79   : > { %17047 = vmatpush3.bf16.msra.mxu1 %v21806_v42  ;;  %v1956_v61 = vsub.f32 %v19283_v31, %v21679_v22  ;;  %v17022_v22 = vpack.c.bf16 %v19090_v37, %v19068_v9  ;;  %v19395_v37 = vld [vmem:[%s21754_s5 + $0x1b0] sm:$0xff]  ;;  %v19400_v9 = vld [vmem:[%s21754_s5 + $0x1b8] sm:$0xff] }
  0x7a   : > { %17007 = vmatpush3.bf16.msra.mxu0 %v17006_v41  ;;  %17049 = vmatprep.subr.bf16.mxu1 %v21808_v33  ;;  %v21812_v41 = vld [vmem:[#allocation17_spill] sm:$0xff]  ;;  %21821 = vst [vmem:[#allocation18_spill] sm:$0xff] %v19395_v37  ;;  %21822 = vst [vmem:[#allocation19_spill] sm:$0xff] %v19400_v9 }
  0x7b   : > { %17009 = vmatprep.subr.bf16.mxu0 %v17008_v44  ;;  %v17018_v44 = vpack.c.bf16 %v19048_v38, %v19029_v55  ;;  %v21816_v38 = vld [vmem:[#allocation20_spill] sm:$0xff]  ;;  %21818 = vst [vmem:[#allocation17_spill] sm:$0xff] %v19372_v1 }
  0x7d   : > { %17051 = vmatpush3.bf16.msra.mxu1 %v21810_v54 }
  0x7e   : > { %17011 = vmatpush3.bf16.msra.mxu0 %v17010_v51  ;;  %17053 = vmatprep.subr.bf16.mxu1 %v21812_v41  ;;  %v19338_v51 = vld [vmem:[%s21754_s5 + $0x1a8] sm:$0xff] }
  0x7f   : > { %17013 = vmatprep.subr.bf16.mxu0 %v17012_v57  ;;  %21813 = vst [vmem:[#allocation15_spill] sm:$0xff] %v19338_v51  ;;  %v21681_v57 = vand.u32 4294901760, %v19303_v5 }
  0x81   : > { %17055 = vmatpush3.bf16.msra.mxu1 %v21816_v38  ;;  %v1837_v55 = vsub.f32 %v19303_v5, %v21681_v57  ;;  %v19409_v57 = vld [vmem:[%s21754_s5 + $0x130] sm:$0xff] }
  0x82   : > { %17015 = vmatpush3.bf16.msra.mxu0 %v17014_v24  ;;  %v19347_v24 = vsub.f32 %v19288_v19, %v21675_v25  ;;  %17089 = vmatprep.subr.bf16.mxu1 %v18786_v15  ;;  %v1844_v15 = vsub.f32 %v19308_v48, %v21680_v45  ;;  %v21819_v25 = vand.u32 4294901760, %v19119_v49  ;;  %21823 = vst [vmem:[#allocation20_spill] sm:$0xff] %v19409_v57  ;;  %v21828_v45 = vand.u32 4294901760, %v19338_v51 }
  0x83   : > { %17017 = vmatprep.subr.bf16.mxu0 %v17016_v53  ;;  %v1949_v53 = vsub.f32 %v19278_v6, %v21677_v16  ;;  %v21820_v16 = vand.u32 4294901760, %v19318_v7  ;;  %v1963_v19 = vsub.f32 %v19326_v34, %v21829_v10  ;;  %v21832_v10 = vand.u32 4294901760, %v19365_v52 }
  0x84   : > { %1444 = vmatmul.mubr.f32.vlgmr.msra.gmra.mrb[2].mxu1 %v21819_v25 }
  0x85   : > { %v19389_v13 = vsub.f32 %v19318_v7, %v21820_v16  ;;  %17091 = vmatpush3.bf16.msra.mxu1 %v18796_v21  ;;  %1714 = vmatprep.mubr.f32.mxu1 %v19107_v3  ;;  %v1950_v25 = vand.u32 4294901760, %v1949_v53  ;;  %v1957_v16 = vand.u32 4294901760, %v1956_v61  ;;  %v21825_v21 = vand.u32 4294901760, %v19233_v29 }
  0x86   : > { %17019 = vmatpush3.bf16.msra.mxu0 %v17018_v44  ;;  %v19414_v44 = vld [vmem:[%s21754_s5 + $0x138] sm:$0xff]  ;;  %17093 = vmatprep.subr.bf16.mxu1 %v18800_v23  ;;  %v21826_v53 = vand.u32 4294901760, %v19238_v39  ;;  %v19427_v7 = vsub.f32 %v19338_v51, %v21828_v45  ;;  %v1838_v23 = vand.u32 4294901760, %v1837_v55  ;;  %v1845_v29 = vand.u32 4294901760, %v1844_v15  ;;  %v19440_v45 = vld [vmem:[%s21754_s5 + $0x1c0] sm:$0xff] }
  0x87   : > { %17021 = vmatprep.subr.bf16.mxu0 %v17020_v18  ;;  %21824 = vst [vmem:[#allocation25_spill] sm:$0xff] %v19414_v44  ;;  %v1970_v18 = vsub.f32 %v19331_v58, %v21830_v12  ;;  %21831 = vst [vmem:[#allocation27_spill] sm:$0xff] %v19440_v45  ;;  %v21833_v55 = vand.u32 4294901760, %v19347_v24  ;;  %v21834_v39 = vand.u32 4294901760, %v19372_v1  ;;  %v19471_v12 = vld [vmem:[%s19043_s4 + $0x8] sm:$0xff]  ;;  %v19671_v51 = vld [vmem:[%s21754_s5 + $0x178] sm:$0xff] }
  0x88   : > { %v19422_v61 = vpack.c.bf16 %v21826_v53, %v21825_v21  ;;  %v19446_v53 = vsub.f32 %v19365_v52, %v21832_v10  ;;  %v19454_v21 = vpack.c.bf16 %v1957_v16, %v1950_v25  ;;  %v21835_v10 = vand.u32 4294901760, %v19354_v4  ;;  %v19516_v16 = vld [vmem:[%s21754_s5 + $0x1d0] sm:$0xff] }
  0x89   : > { %v1851_v15 = vsub.f32 %v19347_v24, %v21833_v55  ;;  %17095 = vmatpush3.bf16.msra.mxu1 %v18813_v28  ;;  %v1964_v28 = vand.u32 4294901760, %v1963_v19  ;;  %v1971_v25 = vand.u32 4294901760, %v1970_v18  ;;  %v19484_v55 = vpack.c.bf16 %v1845_v29, %v1838_v23  ;;  %21843 = vst [vmem:[#allocation31_spill] sm:$0xff] %v19516_v16 }
  0x8a   : > { %21827 = vst [vmem:[#allocation26_spill] sm:$0xff] %v19422_v61  ;;  %17023 = vmatpush3.bf16.msra.mxu0 %v17022_v22  ;;  %v1858_v52 = vsub.f32 %v19354_v4, %v21835_v10  ;;  %v19467_v22 = vld [vmem:[%s21754_s5 + $0x1c8] sm:$0xff]  ;;  %17097 = vmatprep.subr.bf16.mxu1 %v18830_v40  ;;  %v19480_v10 = vld [vmem:[%s21754_s5 + $0x140] sm:$0xff]  ;;  %v21839_v19 = vand.u32 4294901760, %v19400_v9  ;;  %v21842_v23 = vand.u32 4294901760, %v19414_v44 }
  0x8b   : > { %17057 = vmatprep.subr.bf16.mxu0 %v19115_v60  ;;  %v19459_v60 = vsub.f32 %v19372_v1, %v21834_v39  ;;  %21836 = vst [vmem:[#allocation28_spill] sm:$0xff] %v19467_v22  ;;  %21837 = vst [vmem:[#allocation29_spill] sm:$0xff] %v19480_v10  ;;  %v19499_v39 = vld [vmem:[%s21754_s5 + $0x148] sm:$0xff]  ;;  %v19639_v1 = vld [vmem:[%s21754_s5 + $0x1f0] sm:$0xff] }
  0x8c   : > { %v19494_v18 = vsub.f32 %v19400_v9, %v21839_v19  ;;  %21840 = vst [vmem:[#allocation30_spill] sm:$0xff] %v19499_v39  ;;  %v19510_v29 = vsub.f32 %v19414_v44, %v21842_v23  ;;  %v21844_v9 = vand.u32 4294901760, %v19389_v13  ;;  %v763_v23 = vcombine.high %v19471_v12, %v19471_v12 }
  0x8d   : > { %1336 = vmatmul.mubr.f32.vlgmr.msra.gmra.mrb[2].mxu0 %v19119_v49  ;;  %v21838_v49 = vand.u32 4294901760, %v19395_v37  ;;  %17099 = vmatpush3.bf16.msra.mxu1 %v18841_v46  ;;  %v19533_v19 = vpack.c.bf16 %v1971_v25, %v1964_v28  ;;  %v21846_v46 = vand.u32 4294901760, %v19440_v45  ;;  %v19553_v25 = vld [vmem:[%s21754_s5 + $0x150] sm:$0xff]  ;;  %v19567_v28 = vld [vmem:[%s21754_s5 + $0x158] sm:$0xff] }
  0x8e   : > { %17059 = vmatpush3.bf16.msra.mxu0 %v19126_v14  ;;  %1610 = vmatprep.mubr.f32.mxu0 %v19107_v3  ;;  %v21841_v3 = vand.u32 4294901760, %v19409_v57  ;;  %21848 = vst [vmem:[#allocation33_spill] sm:$0xff] %v19553_v25  ;;  %21850 = vst [vmem:[#allocation34_spill] sm:$0xff] %v19567_v28  ;;  %v21871_v61 = vand.u32 4294901760, %v19567_v28 }
  0x8f   : > { %v19489_v40 = vsub.f32 %v19395_v37, %v21838_v49  ;;  %17061 = vmatprep.subr.bf16.mxu0 %v19133_v36  ;;  %v1852_v49 = vand.u32 4294901760, %v1851_v15  ;;  %v1859_v36 = vand.u32 4294901760, %v1858_v52  ;;  %v19528_v15 = vld [vmem:[%s21754_s5 + $0x1d8] sm:$0xff]  ;;  %17101 = vmatprep.subr.bf16.mxu1 %v18869_v63  ;;  %v19538_v52 = vsub.f32 %v19440_v45, %v21846_v46  ;;  %v19582_v63 = vld [vmem:[%s21754_s5 + $0x1e0] sm:$0xff] }
  0x90   : > { %v19505_v14 = vsub.f32 %v19409_v57, %v21841_v3  ;;  %v19522_v3 = vsub.f32 %v19389_v13, %v21844_v9  ;;  %21845 = vst [vmem:[#allocation32_spill] sm:$0xff] %v19528_v15  ;;  %v21847_v9 = vand.u32 4294901760, %v19427_v7  ;;  %v788_v46 = vsel %vm766_vm0, %v763_v23, 0.0  ;;  %21854 = vst [vmem:[#allocation37_spill] sm:$0xff] %v19582_v63 }
  0x91   : > { %v789_v37 = vrot.slane %v788_v46, 4  ;;  %17103 = vmatpush3.bf16.msra.mxu1 %v21800_v26  ;;  %v19570_v23 = vpack.c.bf16 %v1859_v36, %v1852_v49  ;;  %v21852_v45 = vand.u32 4294901760, %v19480_v10  ;;  %v21855_v49 = vand.u32 4294901760, %v19499_v39 }
  0x92   : > { %v19543_v57 = vsub.f32 %v19427_v7, %v21847_v9  ;;  %17063 = vmatpush3.bf16.msra.mxu0 %v19139_v11  ;;  %v21849_v9 = vand.u32 4294901760, %v19467_v22  ;;  %17105 = vmatprep.subr.bf16.mxu1 %v21801_v27  ;;  %v19600_v11 = vld [vmem:[%s21754_s5 + $0x160] sm:$0xff]  ;;  %v21859_v26 = vand.u32 4294901760, %v19446_v53 }
  0x93   : > { %17065 = vmatprep.subr.bf16.mxu0 %v19145_v62  ;;  %21851 = vst [vmem:[#allocation35_spill] sm:$0xff] %v19570_v23  ;;  %v19589_v36 = vsub.f32 %v19499_v39, %v21855_v49  ;;  %21858 = vst [vmem:[#allocation40_spill] sm:$0xff] %v19600_v11  ;;  %v790_v27 = vadd.f32 %v789_v37, %v788_v46  ;;  %v21860_v62 = vand.u32 4294901760, %v19459_v60  ;;  %v21864_v37 = vand.u32 4294901760, %v19528_v15  ;;  %v19658_v23 = vld [vmem:[%s21754_s5 + $0x170] sm:$0xff] }
  0x94   : > { %v19560_v44 = vsub.f32 %v19467_v22, %v21849_v9  ;;  %v19576_v9 = vsub.f32 %v19480_v10, %v21852_v45  ;;  %v19595_v45 = vld [vmem:[%s21754_s5 + $0x1e8] sm:$0xff]  ;;  %v19606_v49 = vsub.f32 %v19446_v53, %v21859_v26  ;;  %v21861_v10 = vand.u32 4294901760, %v19516_v16  ;;  %21869 = vst [vmem:[#allocation45_spill] sm:$0xff] %v19658_v23 }
  0x95   : > { %21856 = vst [vmem:[#allocation38_spill] sm:$0xff] %v19589_v36  ;;  %21857 = vst [vmem:[#allocation39_spill] sm:$0xff] %v19595_v45  ;;  %v19611_v39 = vsub.f32 %v19459_v60, %v21860_v62  ;;  %v19628_v46 = vsub.f32 %v19528_v15, %v21864_v37  ;;  %v21866_v62 = vand.u32 4294901760, %v19489_v40  ;;  %17107 = vmatpush3.bf16.msra.mxu1 %v21802_v0  ;;  %v21868_v37 = vand.u32 4294901760, %v19494_v18 }
  0x96   : > { %21853 = vst [vmem:[#allocation36_spill] sm:$0xff] %v19576_v9  ;;  %17067 = vmatpush3.bf16.msra.mxu0 %v19151_v20  ;;  %v19616_v22 = vsub.f32 %v19516_v16, %v21861_v10  ;;  %v19622_v20 = vld [vmem:[%s21754_s5 + $0x168] sm:$0xff]  ;;  %v791_v16 = vrot.slane %v790_v27, 2  ;;  %17109 = vmatprep.subr.bf16.mxu1 %v21803_v43  ;;  %v21870_v0 = vand.u32 4294901760, %v19553_v25  ;;  %v19677_v43 = vsub.f32 %v19567_v28, %v21871_v61 }
  0x97   : > { %21863 = vst [vmem:[#allocation42_spill] sm:$0xff] %v19622_v20  ;;  %17069 = vmatprep.subr.bf16.mxu0 %v19158_v30  ;;  %21865 = vst [vmem:[#allocation43_spill] sm:$0xff] %v19628_v46  ;;  %v19633_v26 = vsub.f32 %v19489_v40, %v21866_v62  ;;  %v19644_v30 = vld [vmem:[%s21754_s5 + $0x1f8] sm:$0xff]  ;;  %v19650_v62 = vsub.f32 %v19494_v18, %v21868_v37  ;;  %v781_v37 = vsel %vm766_vm0, %v19471_v12, 0.0  ;;  %v21872_v10 = vand.u32 4294901760, %v19582_v63  ;;  %s22039_s5 = sld [smem:[#allocation67_spill]] }
  0x98   : > { %21862 = vst [vmem:[#allocation41_spill] sm:$0xff] %v19616_v22  ;;  %21867 = vst [vmem:[#allocation44_spill] sm:$0xff] %v19644_v30  ;;  %v19664_v35 = vsub.f32 %v19553_v25, %v21870_v0  ;;  %v792_v15 = vadd.f32 %v791_v16, %v790_v27  ;;  %v21873_v0 = vand.u32 4294901760, %v19595_v45 }
  0x99   : > { %v19687_v16 = vsub.f32 %v19582_v63, %v21872_v10  ;;  %17111 = vmatpush3.bf16.msra.mxu1 %v21806_v42  ;;  %v21876_v63 = vld [vmem:[#allocation22_spill] sm:$0xff] }
  0x9a   : > { %17071 = vmatpush3.bf16.msra.mxu0 %v19164_v32  ;;  %v793_v61 = vrot.slane %v792_v15, 1  ;;  %v19695_v25 = vsub.f32 %v19595_v45, %v21873_v0  ;;  %17113 = vmatprep.subr.bf16.mxu1 %v21808_v33  ;;  %v21875_v32 = vand.u32 4294901760, %v19622_v20  ;;  %v782_v45 = vrot.slane %v781_v37, 4 }
  0x9b   : > { %17073 = vmatprep.subr.bf16.mxu0 %v19171_v50  ;;  %v21874_v50 = vand.u32 4294901760, %v19600_v11  ;;  %v21878_v33 = vand.u32 4294901760, %v19644_v30 }
  0x9c   : > { %v19708_v42 = vsub.f32 %v19622_v20, %v21875_v32  ;;  %v794_v0 = vadd.f32 %v793_v61, %v792_v15  ;;  %v21879_v20 = vld [vmem:[#allocation23_spill] sm:$0xff]  ;;  %v19747_v12 = vadd.f32 %v782_v45, %v781_v37  ;;  %v21885_v15 = vand.u32 4294901760, %v19278_v6 }
  0x9d   : > { %v19701_v28 = vsub.f32 %v19600_v11, %v21874_v50  ;;  %v21877_v50 = vand.u32 4294901760, %v19639_v1  ;;  %v19721_v10 = vsub.f32 %v19644_v30, %v21878_v33  ;;  %17115 = vmatpush3.bf16.msra.mxu1 %v21810_v54  ;;  %v21882_v33 = vand.u32 4294901760, %v19671_v51  ;;  %v21884_v30 = vld [vmem:[#allocation24_spill] sm:$0xff] }
  0x9e   : > { %17075 = vmatpush3.bf16.msra.mxu0 %v21876_v63  ;;  %v21880_v63 = vand.u32 4294901760, %v19658_v23  ;;  %17117 = vmatprep.subr.bf16.mxu1 %v21812_v41  ;;  %v21886_v32 = vand.u32 4294901760, %v19283_v31  ;;  %v21889_v45 = vand.u32 4294901760, %v19308_v48 }
  0x9f   : > { %v19716_v11 = vsub.f32 %v19639_v1, %v21877_v50  ;;  %17077 = vmatprep.subr.bf16.mxu0 %v21879_v20  ;;  %v19732_v50 = vand.u32 4294901760, %v794_v0  ;;  %v19738_v27 = vsub.f32 %v19671_v51, %v21882_v33  ;;  %v21891_v20 = vand.u32 4294901760, %v19326_v34 }
  0xa0   : > { %v19729_v61 = vsub.f32 %v19658_v23, %v21880_v63  ;;  %v19758_v41 = vpack.c.bf16 %v21886_v32, %v21885_v15  ;;  %v21892_v23 = vand.u32 4294901760, %v19331_v58  ;;  %v21894_v32 = vand.u32 4294901760, %v19347_v24 }
  0xa1   : > { %21881 = vst [vmem:[#allocation22_spill] sm:$0xff] %v19732_v50  ;;  %21883 = vst [vmem:[#allocation23_spill] sm:$0xff] %v19738_v27  ;;  %v19745_v63 = vsub.f32 %v794_v0, %v19732_v50  ;;  %v21888_v0 = vand.u32 4294901760, %v19303_v5  ;;  %v21895_v15 = vand.u32 4294901760, %v19354_v4  ;;  %17119 = vmatpush3.bf16.msra.mxu1 %v21816_v38  ;;  %v21900_v33 = vand.u32 4294901760, %v19446_v53 }
  0xa2   : > { %17079 = vmatpush3.bf16.msra.mxu0 %v21884_v30  ;;  %21887 = vst [vmem:[#allocation24_spill] sm:$0xff] %v19758_v41  ;;  %v19773_v54 = vpack.c.bf16 %v21892_v23, %v21891_v20  ;;  %v21901_v30 = vand.u32 4294901760, %v19459_v60  ;;  %v21903_v20 = vand.u32 4294901760, %v19489_v40  ;;  %v21906_v38 = vand.u32 4294901760, %v19505_v14  ;;  %17153 = vmatprep.subr.bf16.mxu1 %v19454_v21 }
  0xa3   : > { %v19764_v37 = vpack.c.bf16 %v21889_v45, %v21888_v0  ;;  %17081 = vmatprep.subr.bf16.mxu0 %v19199_v8  ;;  %v19779_v41 = vpack.c.bf16 %v21895_v15, %v21894_v32  ;;  %v21897_v8 = vand.u32 4294901760, %v19389_v13  ;;  %v21898_v0 = vand.u32 4294901760, %v19427_v7 }
  0xa4   : > { %21893 = vst [vmem:[#allocation47_spill] sm:$0xff] %v19773_v54  ;;  %v19792_v23 = vpack.c.bf16 %v21901_v30, %v21900_v33  ;;  %v21904_v54 = vand.u32 4294901760, %v19494_v18  ;;  %v21907_v15 = vand.u32 4294901760, %v19510_v29  ;;  %v21910_v30 = vand.u32 4294901760, %v19538_v52 }
  0xa5   : > { %21890 = vst [vmem:[#allocation46_spill] sm:$0xff] %v19764_v37  ;;  %21896 = vst [vmem:[#allocation48_spill] sm:$0xff] %v19779_v41  ;;  %v19786_v45 = vpack.c.bf16 %v21898_v0, %v21897_v8  ;;  %v21909_v8 = vand.u32 4294901760, %v19745_v63  ;;  %v21916_v21 = vand.u32 4294901760, %v19616_v22  ;;  %v21919_v33 = vand.u32 4294901760, %v19664_v35 }
  0xa6   : > { %21902 = vst [vmem:[#allocation50_spill] sm:$0xff] %v19792_v23  ;;  %v19798_v32 = vpack.c.bf16 %v21904_v54, %v21903_v20  ;;  %v19804_v41 = vpack.c.bf16 %v21907_v15, %v21906_v38  ;;  %v21911_v23 = vand.u32 4294901760, %v19560_v44  ;;  %v21913_v20 = vand.u32 4294901760, %v19576_v9  ;;  %17083 = vmatpush3.bf16.msra.mxu0 %v19206_v56 }
  0xa7   : > { %21899 = vst [vmem:[#allocation49_spill] sm:$0xff] %v19786_v45  ;;  %v1820_v0 = vsub.f32 %v19745_v63, %v21909_v8  ;;  %v21917_v15 = vand.u32 4294901760, %v19628_v46  ;;  %v21925_v56 = vand.u32 4294901760, %v19701_v28  ;;  %17085 = vmatprep.subr.bf16.mxu0 %v19208_v2  ;;  %v21935_v2 = vand.u32 4294901760, %v19522_v3 }
  0xa8   : > { %21905 = vst [vmem:[#allocation51_spill] sm:$0xff] %v19798_v32  ;;  %21908 = vst [vmem:[#allocation52_spill] sm:$0xff] %v19804_v41  ;;  %v19815_v54 = vpack.c.bf16 %v21911_v23, %v21910_v30  ;;  %v21914_v32 = vand.u32 4294901760, %v19589_v36  ;;  %v21920_v41 = vand.u32 4294901760, %v19677_v43  ;;  %v21922_v30 = vand.u32 4294901760, %v19687_v16 }
  0xa9   : > { %v19828_v8 = vpack.c.bf16 %v21917_v15, %v21916_v21  ;;  %v21928_v21 = vld [vmem:[#allocation21_spill] sm:$0xff]  ;;  %v1866_v15 = vand.u32 4294901760, %v19606_v49  ;;  %v21936_v49 = vand.u32 4294901760, %v19543_v57  ;;  %v21939_v3 = vand.u32 4294901760, %v19538_v52 }
  0xaa   : > { %21912 = vst [vmem:[#allocation53_spill] sm:$0xff] %v19815_v54  ;;  %v19821_v38 = vpack.c.bf16 %v21914_v32, %v21913_v20  ;;  %v19834_v23 = vpack.c.bf16 %v21920_v41, %v21919_v33  ;;  %v21923_v54 = vand.u32 4294901760, %v19695_v25  ;;  %v21926_v20 = vand.u32 4294901760, %v19708_v42  ;;  %1716 = vmatmul.mubr.f32.vlgmr.msra.gmra.mrb[4].mxu1 %v21928_v21  ;;  %17087 = vmatpush3.bf16.msra.mxu0 %v19210_v17 }
  0xab   : > { %21918 = vst [vmem:[#allocation55_spill] sm:$0xff] %v19828_v8  ;;  %v1873_v41 = vand.u32 4294901760, %v19611_v39  ;;  %v21929_v33 = vand.u32 4294901760, %v19716_v11  ;;  %17155 = vmatpush3.bf16.msra.mxu1 %v19484_v55  ;;  %v1992_v39 = vand.u32 4294901760, %v19633_v26  ;;  %2058 = vmatprep.mubr.f32.mxu1 %v19732_v50  ;;  %v1999_v55 = vand.u32 4294901760, %v19650_v62  ;;  %v21943_v62 = vld [vmem:[#allocation26_spill] sm:$0xff] }
  0xac   : > { %21915 = vst [vmem:[#allocation54_spill] sm:$0xff] %v19821_v38  ;;  %21921 = vst [vmem:[#allocation56_spill] sm:$0xff] %v19834_v23  ;;  %v19840_v32 = vpack.c.bf16 %v21923_v54, %v21922_v30  ;;  %v19846_v38 = vpack.c.bf16 %v21926_v20, %v21925_v56  ;;  %v21930_v23 = vand.u32 4294901760, %v19721_v10  ;;  %v21932_v30 = vand.u32 4294901760, %v19729_v61  ;;  %17157 = vmatprep.subr.bf16.mxu1 %v19533_v19 }
  0xad   : > { %v17160_v20 = vpack.c.bf16 %v21936_v49, %v21935_v2  ;;  %v2005_v57 = vsub.f32 %v19538_v52, %v21939_v3  ;;  %v21940_v26 = vand.u32 4294901760, %v19560_v44  ;;  %v21942_v2 = vand.u32 4294901760, %v19252_v59  ;;  %17121 = vmatprep.subr.bf16.mxu0 %v21943_v62  ;;  %v21946_v3 = vld [vmem:[#allocation11_spill] sm:$0xff]  ;;  %1612 = vmatmul.mubr.f32.vlgmr.msra.gmra.mrb[4].mxu0 %v21928_v21 }
  0xae   : > { %21924 = vst [vmem:[#allocation57_spill] sm:$0xff] %v19840_v32  ;;  %21927 = vst [vmem:[#allocation58_spill] sm:$0xff] %v19846_v38  ;;  %v19856_v54 = vpack.c.bf16 %v21930_v23, %v21929_v33  ;;  %v21933_v32 = vand.u32 4294901760, %v19738_v27  ;;  %v21937_v38 = vand.u32 4294901760, %v19505_v14  ;;  %v21938_v33 = vand.u32 4294901760, %v19510_v29 }
  0xaf   : > { %v1821_v19 = vand.u32 4294901760, %v1820_v0  ;;  %v21947_v8 = vand.u32 4294901760, %v21946_v3  ;;  %v21948_v37 = vand.u32 4294901760, %v19576_v9  ;;  %v21951_v50 = vand.u32 4294901760, %v19616_v22 }
  0xb0   : > { %21931 = vst [vmem:[#allocation21_spill] sm:$0xff] %v19856_v54  ;;  %v19862_v56 = vpack.c.bf16 %v21933_v32, %v21932_v30  ;;  %v1879_v23 = vsub.f32 %v19505_v14, %v21937_v38  ;;  %v1886_v54 = vsub.f32 %v19510_v29, %v21938_v33  ;;  %v2012_v32 = vsub.f32 %v19560_v44, %v21940_v26  ;;  %v21944_v33 = vld [vmem:[#allocation10_spill] sm:$0xff] }
  0xb1   : > { %v784_v38 = vrot.slane %v19747_v12, 2  ;;  %v21941_v30 = vand.u32 4294901760, %v19247_v47  ;;  %v17162_v26 = vpack.c.bf16 %v1873_v41, %v1866_v15  ;;  %v1893_v17 = vsub.f32 %v19576_v9, %v21948_v37  ;;  %v21959_v9 = vld [vmem:[#allocation15_spill] sm:$0xff]  ;;  %1822 = vmatprep.mubr.f32.mxu0 %v1821_v19 }
  0xb2   : > { %21934 = vst [vmem:[#allocation59_spill] sm:$0xff] %v19862_v56  ;;  %v21945_v56 = vand.u32 4294901760, %v21944_v33  ;;  %v21949_v47 = vand.u32 4294901760, %v19589_v36  ;;  %v1880_v0 = vand.u32 4294901760, %v1879_v23  ;;  %v2019_v33 = vsub.f32 %v19616_v22, %v21951_v50  ;;  %v21953_v23 = vld [vmem:[#allocation12_spill] sm:$0xff]  ;;  %v21957_v50 = vld [vmem:[#allocation14_spill] sm:$0xff] }
  0xb3   : > { %v19891_v49 = vpack.c.bf16 %v21942_v2, %v21941_v30  ;;  %v21950_v30 = vld [vmem:[#allocation35_spill] sm:$0xff]  ;;  %v1887_v2 = vand.u32 4294901760, %v1886_v54  ;;  %v17164_v37 = vpack.c.bf16 %v1999_v55, %v1992_v39  ;;  %v2006_v41 = vand.u32 4294901760, %v2005_v57 }
  0xb4   : > { %v19898_v45 = vpack.c.bf16 %v21947_v8, %v21945_v56  ;;  %v1900_v59 = vsub.f32 %v19589_v36, %v21949_v47  ;;  %17159 = vmatpush3.bf16.msra.mxu1 %v21950_v30  ;;  %v21952_v8 = vand.u32 4294901760, %v19628_v46  ;;  %v2013_v56 = vand.u32 4294901760, %v2012_v32  ;;  %v21955_v47 = vld [vmem:[#allocation13_spill] sm:$0xff] }
  0xb5   : > { %17161 = vmatprep.subr.bf16.mxu1 %v17160_v20  ;;  %v785_v3 = vadd.f32 %v784_v38, %v19747_v12  ;;  %17123 = vmatpush3.bf16.msra.mxu0 %v19891_v49  ;;  %v21954_v54 = vand.u32 4294901760, %v21953_v23  ;;  %v21956_v30 = vand.u32 4294901760, %v21955_v47  ;;  %v21958_v22 = vand.u32 4294901760, %v21957_v50  ;;  %v21965_v47 = vld [vmem:[#allocation16_spill] sm:$0xff]  ;;  %v21967_v50 = vld [vmem:[#allocation17_spill] sm:$0xff] }
  0xb6   : > { %v2026_v15 = vsub.f32 %v19628_v46, %v21952_v8  ;;  %v21960_v8 = vand.u32 4294901760, %v21959_v9  ;;  %17125 = vmatprep.subr.bf16.mxu0 %v19898_v45  ;;  %v1894_v21 = vand.u32 4294901760, %v1893_v17  ;;  %v1901_v20 = vand.u32 4294901760, %v1900_v59 }
  0xb7   : > { %v19920_v36 = vpack.c.bf16 %v21956_v30, %v21954_v54  ;;  %v21961_v12 = vand.u32 4294901760, %v19664_v35  ;;  %v21962_v55 = vand.u32 4294901760, %v19677_v43  ;;  %v17166_v32 = vpack.c.bf16 %v1887_v2, %v1880_v0  ;;  %v21969_v2 = vld [vmem:[#allocation18_spill] sm:$0xff] }
  0xb8   : > { %v19926_v46 = vpack.c.bf16 %v21960_v8, %v21958_v22  ;;  %17163 = vmatpush3.bf16.msra.mxu1 %v17162_v26  ;;  %v2020_v38 = vand.u32 4294901760, %v2019_v33  ;;  %v2027_v23 = vand.u32 4294901760, %v2026_v15  ;;  %v21963_v22 = vand.u32 4294901760, %v19687_v16  ;;  %v21971_v15 = vld [vmem:[#allocation19_spill] sm:$0xff] }
  0xb9   : > { %v1907_v39 = vsub.f32 %v19664_v35, %v21961_v12  ;;  %v1914_v57 = vsub.f32 %v19677_v43, %v21962_v55  ;;  %17165 = vmatprep.subr.bf16.mxu1 %v17164_v37  ;;  %v17168_v19 = vpack.c.bf16 %v2013_v56, %v2006_v41  ;;  %v786_v17 = vrot.slane %v785_v3, 1  ;;  %17127 = vmatpush3.bf16.msra.mxu0 %v19920_v36 }
  0xba   : > { %v2033_v9 = vsub.f32 %v19687_v16, %v21963_v22  ;;  %v21964_v59 = vand.u32 4294901760, %v19695_v25  ;;  %v21966_v30 = vand.u32 4294901760, %v21965_v47  ;;  %v21968_v26 = vand.u32 4294901760, %v21967_v50  ;;  %17129 = vmatprep.subr.bf16.mxu0 %v19926_v46 }
  0xbb   : > { %v21970_v33 = vand.u32 4294901760, %v21969_v2  ;;  %v21972_v37 = vand.u32 4294901760, %v21971_v15  ;;  %v17170_v56 = vpack.c.bf16 %v1901_v20, %v1894_v21  ;;  %v1908_v8 = vand.u32 4294901760, %v1907_v39 }
  0xbc   : > { %v2040_v54 = vsub.f32 %v19695_v25, %v21964_v59  ;;  %v19946_v0 = vpack.c.bf16 %v21968_v26, %v21966_v30  ;;  %v1915_v12 = vand.u32 4294901760, %v1914_v57  ;;  %17167 = vmatpush3.bf16.msra.mxu1 %v17166_v32  ;;  %v17172_v55 = vpack.c.bf16 %v2027_v23, %v2020_v38  ;;  %v21977_v57 = vld [vmem:[#allocation20_spill] sm:$0xff]  ;;  %v21979_v38 = vld [vmem:[#allocation25_spill] sm:$0xff] }
  0xbd   : > { %v19953_v41 = vpack.c.bf16 %v21972_v37, %v21970_v33  ;;  %v2034_v22 = vand.u32 4294901760, %v2033_v9  ;;  %v21973_v59 = vand.u32 4294901760, %v19701_v28  ;;  %v21974_v30 = vand.u32 4294901760, %v19708_v42  ;;  %17169 = vmatprep.subr.bf16.mxu1 %v17168_v19 }
  0xbe   : > { %v787_v26 = vadd.f32 %v786_v17, %v785_v3  ;;  %v2041_v2 = vand.u32 4294901760, %v2040_v54  ;;  %v21975_v33 = vand.u32 4294901760, %v19716_v11  ;;  %v21976_v20 = vand.u32 4294901760, %v19721_v10  ;;  %17131 = vmatpush3.bf16.msra.mxu0 %v19946_v0  ;;  %v21981_v3 = vld [vmem:[#allocation27_spill] sm:$0xff]  ;;  %v21983_v17 = vld [vmem:[#allocation28_spill] sm:$0xff] }
  0xbf   : > { %v1921_v47 = vsub.f32 %v19701_v28, %v21973_v59  ;;  %v1928_v50 = vsub.f32 %v19708_v42, %v21974_v30  ;;  %v21978_v32 = vand.u32 4294901760, %v21977_v57  ;;  %v21980_v23 = vand.u32 4294901760, %v21979_v38  ;;  %17133 = vmatprep.subr.bf16.mxu0 %v19953_v41 }
  0xc0   : > { %v2047_v21 = vsub.f32 %v19716_v11, %v21975_v33  ;;  %v2054_v39 = vsub.f32 %v19721_v10, %v21976_v20  ;;  %v21982_v19 = vand.u32 4294901760, %v21981_v3  ;;  %v21984_v54 = vand.u32 4294901760, %v21983_v17  ;;  %17171 = vmatpush3.bf16.msra.mxu1 %v17170_v56 }
  0xc1   : > { %v19972_v9 = vpack.c.bf16 %v21980_v23, %v21978_v32  ;;  %v17174_v37 = vpack.c.bf16 %v1915_v12, %v1908_v8  ;;  %v1922_v59 = vand.u32 4294901760, %v1921_v47  ;;  %v1929_v30 = vand.u32 4294901760, %v1928_v50  ;;  %17173 = vmatprep.subr.bf16.mxu1 %v17172_v55  ;;  %v21987_v8 = vld [vmem:[#allocation29_spill] sm:$0xff]  ;;  %v21989_v12 = vld [vmem:[#allocation30_spill] sm:$0xff] }
  0xc2   : > { %v19979_v15 = vpack.c.bf16 %v21984_v54, %v21982_v19  ;;  %v21985_v33 = vand.u32 4294901760, %v19729_v61  ;;  %v21986_v57 = vand.u32 4294901760, %v19738_v27  ;;  %v19987_v38 = vand.u32 4294901760, %v787_v26  ;;  %v21991_v19 = vld [vmem:[#allocation31_spill] sm:$0xff] }
  0xc3   : > { %v17176_v23 = vpack.c.bf16 %v2041_v2, %v2034_v22  ;;  %v2048_v3 = vand.u32 4294901760, %v2047_v21  ;;  %v2055_v17 = vand.u32 4294901760, %v2054_v39  ;;  %17135 = vmatpush3.bf16.msra.mxu0 %v19972_v9  ;;  %v21988_v56 = vand.u32 4294901760, %v21987_v8 }
  0xc4   : > { %v1935_v20 = vsub.f32 %v19729_v61, %v21985_v33  ;;  %v1942_v32 = vsub.f32 %v19738_v27, %v21986_v57  ;;  %v21990_v47 = vand.u32 4294901760, %v21989_v12  ;;  %17137 = vmatprep.subr.bf16.mxu0 %v19979_v15  ;;  %v21992_v54 = vand.u32 4294901760, %v21991_v19  ;;  %v21993_v33 = vld [vmem:[#allocation32_spill] sm:$0xff]  ;;  %17175 = vmatpush3.bf16.msra.mxu1 %v17174_v37 }
  0xc5   : > { %v21994_v57 = vand.u32 4294901760, %v21993_v33  ;;  %v17178_v22 = vpack.c.bf16 %v1929_v30, %v1922_v59  ;;  %v20004_v39 = vsub.f32 %v787_v26, %v19987_v38  ;;  %17177 = vmatprep.subr.bf16.mxu1 %v17176_v23  ;;  %v17180_v8 = vpack.c.bf16 %v2055_v17, %v2048_v3  ;;  %v22001_v59 = vld [vmem:[#allocation39_spill] sm:$0xff]  ;;  %v22003_v23 = vld [vmem:[#allocation40_spill] sm:$0xff]  ;;  %v22005_v17 = vld [vmem:[#allocation42_spill] sm:$0xff] }
  0xc6   : > { %v19994_v50 = vpack.c.bf16 %v21990_v47, %v21988_v56  ;;  %v1936_v2 = vand.u32 4294901760, %v1935_v20  ;;  %v1943_v21 = vand.u32 4294901760, %v1942_v32  ;;  %v21995_v56 = vld [vmem:[#allocation33_spill] sm:$0xff]  ;;  %v21997_v47 = vld [vmem:[#allocation34_spill] sm:$0xff]  ;;  %v22002_v30 = vand.u32 4294901760, %v22001_v59 }
  0xc7   : > { %v20001_v55 = vpack.c.bf16 %v21994_v57, %v21992_v54  ;;  %v21996_v12 = vand.u32 4294901760, %v21995_v56  ;;  %v21998_v27 = vand.u32 4294901760, %v21997_v47  ;;  %v21999_v54 = vld [vmem:[#allocation37_spill] sm:$0xff]  ;;  %v1825_v32 = vand.u32 4294901760, %v20004_v39  ;;  %v22008_v56 = vld [vmem:[#allocation44_spill] sm:$0xff] }
  0xc8   : > { %17139 = vmatpush3.bf16.msra.mxu0 %v19994_v50  ;;  %v22000_v37 = vand.u32 4294901760, %v21999_v54  ;;  %17179 = vmatpush3.bf16.msra.mxu1 %v17178_v22  ;;  %v17182_v26 = vpack.c.bf16 %v1943_v21, %v1936_v2  ;;  %v22004_v3 = vand.u32 4294901760, %v22003_v23  ;;  %v22007_v57 = vand.u32 4294901760, %v19639_v1  ;;  %v22010_v2 = vld [vmem:[#allocation45_spill] sm:$0xff] }
  0xc9   : > { %v20011_v19 = vpack.c.bf16 %v21998_v27, %v21996_v12  ;;  %17141 = vmatprep.subr.bf16.mxu0 %v20001_v55  ;;  %17181 = vmatprep.subr.bf16.mxu1 %v17180_v8  ;;  %v22006_v27 = vand.u32 4294901760, %v22005_v17  ;;  %v22009_v12 = vand.u32 4294901760, %v22008_v56  ;;  %v1826_v22 = vsub.f32 %v20004_v39, %v1825_v32  ;;  %v2584_v17 = vld [vmem:[%s22036_s29 + $0x8] sm:$0xff] }
  0xca   : > { %v20018_v20 = vpack.c.bf16 %v22002_v30, %v22000_v37  ;;  %v22011_v21 = vand.u32 4294901760, %v22010_v2  ;;  %v22012_v8 = vand.u32 4294901760, %v19671_v51  ;;  %v17184_v1 = vpack.c.bf16 %v19283_v31, %v19278_v6 }
  0xcb   : > { %v20026_v33 = vpack.c.bf16 %v22006_v27, %v22004_v3  ;;  %v20033_v47 = vpack.c.bf16 %v22009_v12, %v22007_v57  ;;  %v22013_v37 = vand.u32 4294901760, %v19745_v63  ;;  %v1827_v59 = vand.u32 4294901760, %v1826_v22  ;;  %v2583_v3 = vld [vmem:[%s22036_s29] sm:$0xff]  ;;  %v2586_v22 = vld [vmem:[%s22036_s29 + $0x18] sm:$0xff] }
  0xcc   : > { %17143 = vmatpush3.bf16.msra.mxu0 %v20011_v19  ;;  %17183 = vmatpush3.bf16.msra.mxu1 %v17182_v26  ;;  %v20044_v54 = vpack.c.bf16 %v22012_v8, %v22011_v21  ;;  %v17186_v51 = vpack.c.bf16 %v19308_v48, %v19303_v5  ;;  %v17188_v30 = vpack.c.bf16 %v19331_v58, %v19326_v34  ;;  %v22015_v34 = vld [vmem:[#allocation38_spill] sm:$0xff]  ;;  %v2593_v27 = vand.u32 4294901760, %v2583_v3 }
  0xcd   : > { %17145 = vmatprep.subr.bf16.mxu0 %v20018_v20  ;;  %17217 = vmatprep.subr.bf16.mxu1 %v21943_v62  ;;  %v17190_v6 = vpack.c.bf16 %v19354_v4, %v19347_v24  ;;  %v17192_v31 = vpack.c.bf16 %v19427_v7, %v19389_v13  ;;  %v17194_v5 = vpack.c.bf16 %v19459_v60, %v19446_v53  ;;  %v22014_v7 = vld [vmem:[#allocation36_spill] sm:$0xff]  ;;  %v22016_v24 = vld [vmem:[#allocation41_spill] sm:$0xff]  ;;  %v22017_v53 = vld [vmem:[#allocation43_spill] sm:$0xff] }
  0xce   : > { %v17196_v48 = vpack.c.bf16 %v19494_v18, %v19489_v40  ;;  %v17198_v13 = vpack.c.bf16 %v19510_v29, %v19505_v14  ;;  %v17200_v4 = vpack.c.bf16 %v19560_v44, %v19538_v52  ;;  %v17202_v58 = vpack.c.bf16 %v22015_v34, %v22014_v7  ;;  %v22019_v52 = vld [vmem:[#allocation22_spill] sm:$0xff] }
  0xcf   : > { %2060 = vmatmul.mubr.f32.vlgmr.msra.gmra.mrb[6].mxu1 %v19987_v38  ;;  %v17204_v60 = vpack.c.bf16 %v22017_v53, %v22016_v24  ;;  %v17206_v44 = vpack.c.bf16 %v19677_v43, %v19664_v35  ;;  %v17208_v40 = vpack.c.bf16 %v19695_v25, %v19687_v16  ;;  %v17210_v18 = vpack.c.bf16 %v19708_v42, %v19701_v28  ;;  %v22018_v35 = vld [vmem:[#allocation23_spill] sm:$0xff]  ;;  %v22020_v28 = vld [vmem:[#allocation24_spill] sm:$0xff]  ;;  %v22021_v25 = vld [vmem:[#allocation46_spill] sm:$0xff] }
  0xd0   : > { %17147 = vmatpush3.bf16.msra.mxu0 %v20026_v33  ;;  %17219 = vmatpush3.bf16.msra.mxu1 %v19891_v49  ;;  %v17212_v14 = vpack.c.bf16 %v19721_v10, %v19716_v11  ;;  %v17214_v29 = vpack.c.bf16 %v22018_v35, %v19729_v61  ;;  %v22022_v11 = vld [vmem:[#allocation47_spill] sm:$0xff]  ;;  %v22023_v43 = vld [vmem:[#allocation48_spill] sm:$0xff]  ;;  %v22024_v16 = vld [vmem:[#allocation49_spill] sm:$0xff]  ;;  %v20144_v57 = vsub.f32 %v2583_v3, %v2593_v27  ;;  %v18565_v34 = vmov 0.0|0.0  }
  0xd1   : > { %17149 = vmatprep.subr.bf16.mxu0 %v20033_v47  ;;  %2302 = vmatprep.mubr.f32.mxu1 %v22013_v37  ;;  %v22027_v10 = vld [vmem:[#allocation52_spill] sm:$0xff]  ;;  %v22028_v42 = vld [vmem:[#allocation53_spill] sm:$0xff]  ;;  %v22029_v61 = vld [vmem:[#allocation54_spill] sm:$0xff] }
  0xd2   : > { %17221 = vmatprep.subr.bf16.mxu1 %v19898_v45  ;;  %v2674_v21 = vand.u32 4294901760, %v20144_v57 }
  0xd4   : > { %17151 = vmatpush3.bf16.msra.mxu0 %v20044_v54  ;;  %17223 = vmatpush3.bf16.msra.mxu1 %v19920_v36 }
  0xd5   : > { %17185 = vmatprep.subr.bf16.mxu0 %v17184_v1  ;;  %17225 = vmatprep.subr.bf16.mxu1 %v19926_v46  ;;  %v2602_v1 = vand.u32 4294901760, %v2586_v22 }
  0xd7   : > { %1828 = vmatmul.mubr.f32.vlgmr.msra.gmra.mrb[6].mxu0 %v1827_v59  ;;  %v2675_v59 = vsub.f32 %v20144_v57, %v2674_v21 }
  0xd8   : > { %17187 = vmatpush3.bf16.msra.mxu0 %v17186_v51  ;;  %2195 = vmatprep.mubr.f32.mxu0 %v19745_v63  ;;  %v22030_v63 = vld [vmem:[#allocation55_spill] sm:$0xff] }
  0xd9   : > { %17189 = vmatprep.subr.bf16.mxu0 %v17188_v30  ;;  %17227 = vmatpush3.bf16.msra.mxu1 %v19946_v0 }
  0xda   : > { %17229 = vmatprep.subr.bf16.mxu1 %v19953_v41 }
  0xdc   : > { %17191 = vmatpush3.bf16.msra.mxu0 %v17190_v6  ;;  %v20160_v6 = vsub.f32 %v2586_v22, %v2602_v1 }
  0xdd   : > { %17193 = vmatprep.subr.bf16.mxu0 %v17192_v31  ;;  %17231 = vmatpush3.bf16.msra.mxu1 %v19972_v9 }
  0xde   : > { %17233 = vmatprep.subr.bf16.mxu1 %v19979_v15 }
  0xe0   : > { %17195 = vmatpush3.bf16.msra.mxu0 %v17194_v5  ;;  %v2676_v5 = vand.u32 4294901760, %v2675_v59 }
  0xe1   : > { %17197 = vmatprep.subr.bf16.mxu0 %v17196_v48  ;;  %17235 = vmatpush3.bf16.msra.mxu1 %v19994_v50 }
  0xe2   : > { %17237 = vmatprep.subr.bf16.mxu1 %v20001_v55 }
  0xe4   : > { %17199 = vmatpush3.bf16.msra.mxu0 %v17198_v13 }
  0xe5   : > { %17201 = vmatprep.subr.bf16.mxu0 %v17200_v4  ;;  %17239 = vmatpush3.bf16.msra.mxu1 %v20011_v19  ;;  %v2695_v4 = vand.u32 4294901760, %v20160_v6 }
  0xe6   : > { %17241 = vmatprep.subr.bf16.mxu1 %v20018_v20 }
  0xe7   : > { %v2696_v24 = vsub.f32 %v20160_v6, %v2695_v4 }
  0xe8   : > { %17203 = vmatpush3.bf16.msra.mxu0 %v17202_v58 }
  0xe9   : > { %17205 = vmatprep.subr.bf16.mxu0 %v17204_v60  ;;  %17243 = vmatpush3.bf16.msra.mxu1 %v20026_v33  ;;  %v2697_v60 = vand.u32 4294901760, %v2696_v24 }
  0xea   : > { %17245 = vmatprep.subr.bf16.mxu1 %v20033_v47 }
  0xec   : > { %17207 = vmatpush3.bf16.msra.mxu0 %v17206_v44  ;;  %v21721_v44 = vmov 0.0  }
  0xed   : > { %17209 = vmatprep.subr.bf16.mxu0 %v17208_v40  ;;  %17247 = vmatpush3.bf16.msra.mxu1 %v20044_v54 }
  0xee   : > { %17281 = vmatprep.subr.bf16.mxu1 %v21943_v62  ;;  %v22033_v62 = vld [vmem:[#allocation58_spill] sm:$0xff] }
  0xf0   : > { %17211 = vmatpush3.bf16.msra.mxu0 %v17210_v18  ;;  %2306 = vmatmul.mubr.f32.vlgmr.msra.gmra.mrb[8].mxu1 %v1825_v32 }
  0xf1   : > { %17213 = vmatprep.subr.bf16.mxu0 %v17212_v14  ;;  %17283 = vmatpush3.bf16.msra.mxu1 %v19891_v49  ;;  %v22032_v49 = vld [vmem:[#allocation57_spill] sm:$0xff] }
  0xf2   : > { %2576 = vmatprep.mubr.f32.mxu1 %v22019_v52  ;;  %17285 = vmatprep.subr.bf16.mxu1 %v19898_v45  ;;  %v22031_v45 = vld [vmem:[#allocation56_spill] sm:$0xff] }
  0xf4   : > { %17215 = vmatpush3.bf16.msra.mxu0 %v17214_v29 }
  0xf5   : > { %17249 = vmatprep.subr.bf16.mxu0 %v22020_v28  ;;  %17287 = vmatpush3.bf16.msra.mxu1 %v19920_v36  ;;  %v22025_v36 = vld [vmem:[#allocation50_spill] sm:$0xff] }
  0xf6   : > { %17289 = vmatprep.subr.bf16.mxu1 %v19926_v46  ;;  %v22026_v46 = vld [vmem:[#allocation51_spill] sm:$0xff] }
  0xf7   : > { %2198 = vmatmul.mubr.f32.vlgmr.msra.gmra.mrb[8].mxu0 %v20004_v39 }
  0xf8   : > { %17251 = vmatpush3.bf16.msra.mxu0 %v22021_v25  ;;  %2472 = vmatprep.mubr.f32.mxu0 %v22019_v52 }
  0xf9   : > { %17253 = vmatprep.subr.bf16.mxu0 %v22022_v11  ;;  %17291 = vmatpush3.bf16.msra.mxu1 %v19946_v0  ;;  %v22034_v0 = vld [vmem:[#allocation21_spill] sm:$0xff] }
  0xfa   : > { %17293 = vmatprep.subr.bf16.mxu1 %v19953_v41  ;;  %v22035_v41 = vld [vmem:[#allocation59_spill] sm:$0xff] }
  0xfc   : > { %17255 = vmatpush3.bf16.msra.mxu0 %v22023_v43 }
  0xfd   : > { %17257 = vmatprep.subr.bf16.mxu0 %v22024_v16  ;;  %17295 = vmatpush3.bf16.msra.mxu1 %v19972_v9 }
  0xfe   : > { %17297 = vmatprep.subr.bf16.mxu1 %v19979_v15 }
 0x100   : > { %17259 = vmatpush3.bf16.msra.mxu0 %v22025_v36 }
 0x101   : > { %17261 = vmatprep.subr.bf16.mxu0 %v22026_v46  ;;  %17299 = vmatpush3.bf16.msra.mxu1 %v19994_v50 }
 0x102   : > { %17301 = vmatprep.subr.bf16.mxu1 %v20001_v55 }
 0x104   : > { %17263 = vmatpush3.bf16.msra.mxu0 %v22027_v10 }
 0x105   : > { %17265 = vmatprep.subr.bf16.mxu0 %v22028_v42  ;;  %17303 = vmatpush3.bf16.msra.mxu1 %v20011_v19 }
 0x106   : > { %17305 = vmatprep.subr.bf16.mxu1 %v20018_v20 }
 0x108   : > { %17267 = vmatpush3.bf16.msra.mxu0 %v22029_v61 }
 0x109   : > { %17269 = vmatprep.subr.bf16.mxu0 %v22030_v63  ;;  %17307 = vmatpush3.bf16.msra.mxu1 %v20026_v33 }
 0x10a   : > { %17309 = vmatprep.subr.bf16.mxu1 %v20033_v47  ;;  %v2585_v47 = vld [vmem:[%s22036_s29 + $0x10] sm:$0xff]  ;;  %s22041_s29 = sld [smem:[#allocation61_spill]] }
 0x10c   : > { %17271 = vmatpush3.bf16.msra.mxu0 %v22031_v45 }
 0x10d   : > { %17273 = vmatprep.subr.bf16.mxu0 %v22032_v49  ;;  %17311 = vmatpush3.bf16.msra.mxu1 %v20044_v54  ;;  %v2599_v54 = vand.u32 4294901760, %v2585_v47 }
 0x10e   : > { %17312 = vmatprep.subr.bf16.mxu1 %v18565_v34 }
 0x10f   : > { %v20158_v30 = vsub.f32 %v2585_v47, %v2599_v54  ;;  %v20180_v29 = vpack.c.bf16 %v2602_v1, %v2599_v54  ;;  %v3079_v54 = vld [vmem:[%s22037_s26] sm:$0xff]  ;;  %s22042_s26 = sld [smem:[#allocation68_spill]] }
 0x110   : > { %17275 = vmatpush3.bf16.msra.mxu0 %v22033_v62  ;;  %2578 = vmatmul.mubr.f32.vlgmr.msra.gmra.mrb[10].mxu1 %v19987_v38  ;;  %v3086_v1 = vand.u32 4294901760, %v3079_v54  ;;  %s20293_s3 = scalar_lea.vmem %s22041_s29, %s15750_s30  ;;  %s18569_s30 = smov 10  }
 0x111   : > { %17277 = vmatprep.subr.bf16.mxu0 %v22034_v0  ;;  %v2688_v13 = vand.u32 4294901760, %v20158_v30  ;;  %16414 = vmatprep.mubr.msk.f32.mxu1 %vm18566_vm1, %v21721_v44  ;;  %v17328_v35 = vpack.c.bf16 %v20160_v6, %v20158_v30  ;;  %s18572_s29 = smov 8  }
 0x113   : > { %v2689_v58 = vsub.f32 %v20158_v30, %v2688_v13  ;;  %v17340_v43 = vpack.c.bf16 %v2695_v4, %v2688_v13  ;;  %v3163_v13 = vsub.f32 %v3079_v54, %v3086_v1 }
 0x114   : > { %17279 = vmatpush3.bf16.msra.mxu0 %v22035_v41 }
 0x115   : > { %17318 = vmatprep.subr.bf16.mxu0 %v18565_v34  ;;  %v2690_v53 = vand.u32 4294901760, %v2689_v58  ;;  %v3164_v58 = vand.u32 4294901760, %v3163_v13 }
 0x117   : > { %2474 = vmatmul.mubr.f32.vlgmr.msra.gmra.mrb[10].mxu0 %v19987_v38  ;;  %v2596_v38 = vand.u32 4294901760, %v2584_v17  ;;  %v17322_v14 = vpack.c.bf16 %v2697_v60, %v2690_v53  ;;  %v3165_v60 = vsub.f32 %v3163_v13, %v3164_v58 }
 0x118   : > { %16425 = vmatprep.mubr.msk.f32.mxu0 %vm18566_vm1, %v21721_v44 }
 0x119   : > { %v20146_v56 = vsub.f32 %v2584_v17, %v2596_v38  ;;  %v20171_v40 = vpack.c.bf16 %v2596_v38, %v2593_v27 }
 0x11b   : > { %v2681_v8 = vand.u32 4294901760, %v20146_v56  ;;  %v17325_v18 = vpack.c.bf16 %v20146_v56, %v20144_v57  ;;  %17314 = vmatpush3.bf16.msra.mxu1 %v20171_v40 }
 0x11c   : > { %17315 = vmatprep.subr.bf16.mxu1 %v18565_v34 }
 0x11d   : > { %v2682_v51 = vsub.f32 %v20146_v56, %v2681_v8  ;;  %v17337_v25 = vpack.c.bf16 %v2681_v8, %v2674_v21 }
 0x11f   : > { %v2683_v48 = vand.u32 4294901760, %v2682_v51  ;;  %17317 = vmatpush3.bf16.msra.mxu1 %v20180_v29  ;;  %v2587_v51 = vld [vmem:[%s22038_s0] sm:$0x1]  ;;  %s18571_s0 = smov 120  }
 0x120   : > { %16472 = vmatprep.subr.mxu1 %v21721_v44 }
 0x121   : > { %v17319_v7 = vpack.c.bf16 %v2683_v48, %v2676_v5 }
 0x123   : > { %17320 = vmatpush3.bf16.msra.mxu0 %v17319_v7 }
 0x124   : > { %17321 = vmatprep.subr.bf16.mxu0 %v18565_v34 }
 0x127   : > { %17323 = vmatpush3.bf16.msra.mxu0 %v17322_v14  ;;  %v3166_v14 = vand.u32 4294901760, %v3165_v60 }
 0x128   : > { %17324 = vmatprep.subr.bf16.mxu0 %v18565_v34 }
 0x137   : > { %v15819_v9 = vpop.f32.mrb[0].mxu1 }
 0x138   : > { %v15820_v15 = vpop.f32.mrb[1].mxu1 }
 0x139   : > { %v15821_v50 = vadd.f32 %v15820_v15, %v15819_v9 }
 0x140   : > { %v15784_v55 = vpop.f32.mrb[0].mxu0 }
 0x141   : > { %v15785_v39 = vpop.f32.mrb[1].mxu0 }
 0x142   : > { %v15786_v19 = vadd.f32 %v15785_v39, %v15784_v55 }
 0x144   : > { %v1200_v20 = vadd.f32 %v15821_v50, %v15786_v19 }
 0x157   : > { %v15889_v26 = vpop.f32.mrb[2].mxu1 }
 0x158   : > { %v15890_v32 = vpop.f32.mrb[3].mxu1 }
 0x159   : > { %v15891_v23 = vadd.f32 %v15890_v32, %v15889_v26 }
 0x160   : > { %v15854_v33 = vpop.f32.mrb[2].mxu0 }
 0x161   : > { %v15855_v12 = vpop.f32.mrb[3].mxu0 }
 0x162   : > { %v15856_v2 = vadd.f32 %v15855_v12, %v15854_v33 }
 0x164   : > { %v1338_v37 = vadd.f32 %v15856_v2, %v1200_v20 }
 0x166   : > { %v1446_v31 = vadd.f32 %v15891_v23, %v1338_v37 }
 0x17d   : > { %v15959_v52 = vpop.f32.mrb[4].mxu1 }
 0x17e   : > { %v15960_v28 = vpop.f32.mrb[5].mxu1 }
 0x17f   : > { %v15961_v11 = vadd.f32 %v15960_v28, %v15959_v52  ;;  %v3538_v52 = vld [vmem:[%s22039_s5 + $0x8] sm:$0xff]  ;;  %v3539_v28 = vld [vmem:[%s22039_s5 + $0x10] sm:$0xff] }
 0x180   : > { %v15924_v16 = vpop.f32.mrb[4].mxu0 }
 0x181   : > { %v15925_v36 = vpop.f32.mrb[5].mxu0 }
 0x182   : > { %v15926_v46 = vadd.f32 %v15925_v36, %v15924_v16  ;;  %v3552_v16 = vand.u32 4294901760, %v3539_v28 }
 0x184   : > { %v1614_v10 = vadd.f32 %v15926_v46, %v1446_v31 }
 0x186   : > { %v1718_v42 = vadd.f32 %v15961_v11, %v1614_v10  ;;  %v3549_v11 = vand.u32 4294901760, %v3538_v52 }
 0x1a2   : > { %v16029_v61 = vpop.f32.mrb[6].mxu1 }
 0x1a3   : > { %v16030_v63 = vpop.f32.mrb[7].mxu1 }
 0x1a4   : > { %v16031_v45 = vadd.f32 %v16030_v63, %v16029_v61  ;;  %v20250_v61 = vsub.f32 %v3539_v28, %v3552_v16 }
 0x1aa   : > { %v15994_v49 = vpop.f32.mrb[6].mxu0 }
 0x1ab   : > { %v15995_v62 = vpop.f32.mrb[7].mxu0 }
 0x1ac   : > { %v15996_v0 = vadd.f32 %v15995_v62, %v15994_v49 }
 0x1ae   : > { %v1830_v41 = vadd.f32 %v15996_v0, %v1718_v42  ;;  %v3633_v42 = vsub.f32 %v3538_v52, %v3549_v11 }
 0x1b0   : > { %v2062_v9 = vadd.f32 %v16031_v45, %v1830_v41  ;;  %v3634_v62 = vand.u32 4294901760, %v3633_v42 }
 0x1b2   : > { %v3635_v41 = vsub.f32 %v3633_v42, %v3634_v62 }
 0x1c3   : > { %v16099_v15 = vpop.f32.mrb[8].mxu1 }
 0x1c4   : > { %v16100_v50 = vpop.f32.mrb[9].mxu1 }
 0x1c5   : > { %v16101_v55 = vadd.f32 %v16100_v50, %v16099_v15  ;;  %v3636_v15 = vand.u32 4294901760, %v3635_v41  ;;  %v3641_v50 = vand.u32 4294901760, %v20250_v61 }
 0x1ca   : > { %v16064_v39 = vpop.f32.mrb[8].mxu0 }
 0x1cb   : > { %v16065_v19 = vpop.f32.mrb[9].mxu0 }
 0x1cc   : > { %v16066_v20 = vadd.f32 %v16065_v19, %v16064_v39  ;;  %v3642_v19 = vsub.f32 %v20250_v61, %v3641_v50 }
 0x1ce   : > { %v2200_v26 = vadd.f32 %v16066_v20, %v2062_v9 }
 0x1d0   : > { %v2308_v32 = vadd.f32 %v16101_v55, %v2200_v26  ;;  %v3643_v26 = vand.u32 4294901760, %v3642_v19  ;;  %v4550_v19 = vld [vmem:[%s20293_s3 + $0x78] sm:$0xff] }
 0x1e3   : > { %v16169_v23 = vpop.f32.mrb[10].mxu1 }
 0x1e4   : > { %v16170_v3 = vpop.f32.mrb[11].mxu1 }
 0x1e5   : > { %v16171_v17 = vadd.f32 %v16170_v3, %v16169_v23 }
 0x1ea   : > { %v16134_v27 = vpop.f32.mrb[10].mxu0 }
 0x1eb   : > { %v16135_v38 = vpop.f32.mrb[11].mxu0 }
 0x1ec   : > { %v16136_v33 = vadd.f32 %v16135_v38, %v16134_v27 }
 0x1ee   : > { %v2476_v57 = vadd.f32 %v16136_v33, %v2308_v32  ;;  %v3080_v33 = vld [vmem:[%s22040_s8] sm:$0x1]  ;;  %s18575_s8 = smov 114  }
 0x1f0   : > { %v2580_v56 = vadd.f32 %v16171_v17, %v2476_v57 }
 0x1f2   : > { %v2590_v12 = vsel %vm2588_vm2, %v2580_v56, 0  ;;  %v4581_v56 = vld [vmem:[%s21600_s12] sm:$0xff] }
 0x1f3   : > { %v2661_v47 = vand.u32 4294901760, %v2590_v12 }
 0x1f5   : > { %v2662_v22 = vsub.f32 %v2590_v12, %v2661_v47  ;;  %16426 = vmatmul.mubr.f32.vlgmr.msra.gmra.mrb[12].mxu0 %v2661_v47 }
 0x1f6   : > { %17326 = vmatpush3.bf16.msra.mxu0 %v17325_v18  ;;  %16436 = vmatprep.mubr.msk.f32.mxu0 %vm18566_vm1, %v21721_v44 }
 0x1f7   : > { %17327 = vmatprep.subr.bf16.mxu0 %v18565_v34  ;;  %v2663_v2 = vand.u32 4294901760, %v2662_v22 }
 0x1f9   : > { %v2664_v21 = vsub.f32 %v2662_v22, %v2663_v2 }
 0x1fa   : > { %17329 = vmatpush3.bf16.msra.mxu0 %v17328_v35 }
 0x1fb   : > { %v2665_v8 = vand.u32 4294901760, %v2664_v21  ;;  %17330 = vmatprep.subr.bf16.mxu0 %v18565_v34 }
 0x1fd   : > { %16415 = vmatmul.mubr.f32.vlgmr.msra.gmra.mrb[12].mxu1 %v2665_v8  ;;  %16437 = vmatmul.mubr.f32.vlgmr.msra.gmra.mrb[12].mxu0 %v2662_v22  ;;  %v18568_v22 = vmov 0  }
 0x1fe   : > { %17332 = vmatpush3.bf16.msra.mxu0 %v20171_v40  ;;  %16447 = vmatprep.mubr.msk.f32.mxu0 %vm18566_vm1, %v21721_v44 }
 0x1ff   : > { %17333 = vmatprep.subr.bf16.mxu0 %v18565_v34  ;;  %16474 = vmatprep.mubr.msk.f32.mxu1 %vm18566_vm1, %v21721_v44 }
 0x200   : > { %16473 = vmatpush3.msra.mxu1 %v3086_v1  ;;  %18455 = vset.pattern.permute.xlu0 %v18568_v22 }
 0x201   : > { %16477 = vmatprep.subr.mxu1 %v21721_v44  ;;  %18456 = vset.pattern.permute.xlu1 %v18568_v22 }
 0x202   : > { %17335 = vmatpush3.bf16.msra.mxu0 %v20180_v29  ;;  %4584 = vperm.xlu0 %18455, %v4581_v56  }
 0x203   : > { %17336 = vmatprep.subr.bf16.mxu0 %v18565_v34 }
 0x205   : > { %16448 = vmatmul.mubr.f32.vlgmr.msra.gmra.mrb[12].mxu0 %v2663_v2 }
 0x206   : > { %17338 = vmatpush3.bf16.msra.mxu0 %v17337_v25  ;;  %16458 = vmatprep.mubr.msk.f32.mxu0 %vm18566_vm1, %v21721_v44 }
 0x207   : > { %17339 = vmatprep.subr.bf16.mxu0 %v18565_v34 }
 0x20a   : > { %17341 = vmatpush3.bf16.msra.mxu0 %v17340_v43  ;;  %v3540_v43 = vld [vmem:[%s22039_s5 + $0x18] sm:$0xff] }
 0x20b   : > { %17342 = vmatprep.subr.bf16.mxu0 %v18565_v34  ;;  %v3555_v36 = vand.u32 4294901760, %v3540_v43 }
 0x20d   : > { %16459 = vmatmul.mubr.f32.vlgmr.msra.gmra.mrb[12].mxu0 %v2661_v47  ;;  %v20252_v63 = vsub.f32 %v3540_v43, %v3555_v36  ;;  %v20255_v45 = vpack.c.bf16 %v3555_v36, %v3552_v16 }
 0x20e   : > { %17344 = vmatpush3.bf16.msra.mxu0 %v20171_v40  ;;  %16469 = vmatprep.mubr.msk.f32.mxu0 %vm18566_vm1, %v21721_v44 }
 0x20f   : > { %17345 = vmatprep.subr.bf16.mxu0 %v18565_v34  ;;  %v3648_v55 = vand.u32 4294901760, %v20252_v63  ;;  %v17364_v17 = vpack.c.bf16 %v20252_v63, %v20250_v61  ;;  %v4545_v61 = vld [vmem:[%s20293_s3 + $0x50] sm:$0xff] }
 0x211   : > { %v3649_v20 = vsub.f32 %v20252_v63, %v3648_v55  ;;  %v20268_v38 = vpack.c.bf16 %v3648_v55, %v3641_v50  ;;  %v4546_v63 = vld [vmem:[%s20293_s3 + $0x58] sm:$0xff]  ;;  %v4569_v50 = vsel %vm4551_vm4, %v4545_v61, 0.0 }
 0x212   : > { %17347 = vmatpush3.bf16.msra.mxu0 %v20180_v29  ;;  %v3537_v29 = vld [vmem:[%s22039_s5] sm:$0xff]  ;;  %v4576_v55 = vsel %vm4551_vm4, %v4546_v63, 0.0 }
 0x213   : > { %17384 = vmatprep.subr.bf16.mxu0 %v18565_v34  ;;  %v3546_v25 = vand.u32 4294901760, %v3537_v29  ;;  %v3650_v32 = vand.u32 4294901760, %v3649_v20 }
 0x215   : > { %16470 = vmatmul.mubr.f32.vlgmr.msra.gmra.mrb[12].mxu0 %v2661_v47  ;;  %v20248_v46 = vpack.c.bf16 %v3549_v11, %v3546_v25  ;;  %v3626_v10 = vsub.f32 %v3537_v29, %v3546_v25  ;;  %v17358_v23 = vpack.c.bf16 %v3650_v32, %v3643_v26  ;;  %v4547_v11 = vld [vmem:[%s20293_s3 + $0x60] sm:$0xff] }
 0x216   : > { %16576 = vmatprep.mubr.msk.f32.mxu0 %vm18566_vm1, %v21721_v44 }
 0x217   : > { %v3627_v49 = vand.u32 4294901760, %v3626_v10  ;;  %v17361_v3 = vpack.c.bf16 %v3633_v42, %v3626_v10  ;;  %v4548_v42 = vld [vmem:[%s20293_s3 + $0x68] sm:$0xff] }
 0x219   : > { %v3628_v0 = vsub.f32 %v3626_v10, %v3627_v49  ;;  %v20266_v27 = vpack.c.bf16 %v3634_v62, %v3627_v49  ;;  %v4557_v62 = vsel %vm4551_vm4, %v4547_v11, 0.0  ;;  %v4037_v11 = vld [vmem:[%s21597_s9 + $0x8] sm:$0xff] }
 0x21b   : > { %v3629_v9 = vand.u32 4294901760, %v3628_v0 }
 0x21d   : > { %v17355_v39 = vpack.c.bf16 %v3636_v15, %v3629_v9  ;;  %v4564_v15 = vsel %vm4551_vm4, %v4548_v42, 0.0 }
 0x2d0   : > { %v2667_v37 = vpop.f32.mrb[12].mxu1 }
 0x2d1   : > { %v16416_v59 = vpop.f32.mrb[13].mxu1  ;;  %v2668_v30 = vadd.f32 %v2667_v37, %v2587_v51 }
 0x2e8   : > { %v3073_v6 = vpop.f32.mrb[12].mxu0 }
 0x2e9   : > { %v18123_v31 = vadd.f32 %v3073_v6, %v2668_v30  ;;  %v16471_v5 = vpop.f32.mrb[13].mxu0 }
 0x2ea   : > { %v4539_v5 = vld [vmem:[%s20293_s3 + $0x20] sm:$0xff] }
 0x2eb   : > { %v3077_v48 = vmul.f32 0.999995, %v18123_v31  ;;  %v4535_v31 = vld [vmem:[%s20293_s3] sm:$0xff] }
 0x2ed   : > { %v3078_v4 = vmax.f32 %v3077_v48, 0.0  ;;  %v4536_v48 = vld [vmem:[%s20293_s3 + $0x8] sm:$0xff] }
 0x2ef   : > { %v3083_v7 = vsel %vm3081_vm3, %v3078_v4, 0  ;;  %v4552_v4 = vsel %vm4551_vm4, %v4535_v31, 0.0 }
 0x2f0   : > { %v3151_v24 = vand.u32 4294901760, %v3083_v7 }
 0x2f2   : > { %v3152_v53 = vsub.f32 %v3083_v7, %v3151_v24  ;;  %v4553_v7 = vsel %vm4551_vm4, %v4539_v5, 0.0 }
 0x2f3   : > { %v4554_v29 = vadd.f32 %v4553_v7, %v4552_v4 }
 0x2f4   : > { %v3153_v40 = vand.u32 4294901760, %v3152_v53 }
 0x2f6   : > { %v3154_v18 = vsub.f32 %v3152_v53, %v3153_v40 }
 0x2f8   : > { %v3155_v35 = vand.u32 4294901760, %v3154_v18  ;;  %v4538_v18 = vld [vmem:[%s20293_s3 + $0x18] sm:$0xff] }
 0x2f9   : > { %v4573_v36 = vsel %vm4551_vm4, %v4538_v18, 0.0 }
 0x2fa   : > { %16475 = vmatmul.mubr.f32.vlgmr.msra.gmra.mrb[14].mxu1 %v3155_v35  ;;  %v4542_v35 = vld [vmem:[%s20293_s3 + $0x38] sm:$0xff] }
 0x2fb   : > { %16478 = vmatpush3.msra.mxu1 %v3166_v14  ;;  %16479 = vmatprep.mubr.msk.f32.mxu1 %vm18566_vm1, %v21721_v44  ;;  %v4541_v14 = vld [vmem:[%s20293_s3 + $0x30] sm:$0xff]  ;;  %v4574_v10 = vsel %vm4551_vm4, %v4542_v35, 0.0 }
 0x2fc   : > { %16482 = vmatprep.subr.mxu1 %v21721_v44  ;;  %v4567_v16 = vsel %vm4551_vm4, %v4541_v14, 0.0  ;;  %v4575_v9 = vadd.f32 %v4574_v10, %v4573_v36  ;;  %v4048_v36 = vand.u32 4294901760, %v4037_v11  ;;  %v4039_v10 = vld [vmem:[%s21597_s9 + $0x18] sm:$0xff] }
 0x2fd   : > { %v4054_v61 = vand.u32 4294901760, %v4039_v10 }
 0x302   : > { %16480 = vmatmul.mubr.f32.vlgmr.msra.gmra.mrb[14].mxu1 %v3151_v24 }
 0x303   : > { %16483 = vmatpush3.msra.mxu1 %v3163_v13  ;;  %16484 = vmatprep.mubr.msk.f32.mxu1 %vm18566_vm1, %v21721_v44  ;;  %v4540_v13 = vld [vmem:[%s20293_s3 + $0x28] sm:$0xff] }
 0x304   : > { %16487 = vmatprep.subr.mxu1 %v21721_v44  ;;  %v4560_v60 = vsel %vm4551_vm4, %v4540_v13, 0.0 }
 0x30a   : > { %16485 = vmatmul.mubr.f32.vlgmr.msra.gmra.mrb[14].mxu1 %v3152_v53  ;;  %v4559_v53 = vsel %vm4551_vm4, %v4536_v48, 0.0 }
 0x30b   : > { %16488 = vmatpush3.msra.mxu1 %v3086_v1  ;;  %16489 = vmatprep.mubr.msk.f32.mxu1 %vm18566_vm1, %v21721_v44  ;;  %v4561_v28 = vadd.f32 %v4560_v60, %v4559_v53 }
 0x30c   : > { %16492 = vmatprep.subr.mxu1 %v21721_v44 }
 0x312   : > { %16490 = vmatmul.mubr.f32.vlgmr.msra.gmra.mrb[14].mxu1 %v3153_v40  ;;  %v4537_v40 = vld [vmem:[%s20293_s3 + $0x10] sm:$0xff] }
 0x313   : > { %16493 = vmatpush3.msra.mxu1 %v3164_v58  ;;  %16494 = vmatprep.mubr.msk.f32.mxu1 %vm18566_vm1, %v21721_v44  ;;  %v4543_v58 = vld [vmem:[%s20293_s3 + $0x40] sm:$0xff]  ;;  %v4566_v43 = vsel %vm4551_vm4, %v4537_v40, 0.0 }
 0x314   : > { %16497 = vmatprep.subr.mxu1 %v21721_v44  ;;  %v4555_v52 = vsel %vm4551_vm4, %v4543_v58, 0.0  ;;  %v4568_v41 = vadd.f32 %v4567_v16, %v4566_v43  ;;  %v4038_v43 = vld [vmem:[%s21597_s9 + $0x10] sm:$0xff] }
 0x315   : > { %v4556_v49 = vadd.f32 %v4555_v52, %v4554_v29  ;;  %v4051_v42 = vand.u32 4294901760, %v4038_v43 }
 0x316   : > { %v4570_v32 = vadd.f32 %v4569_v50, %v4568_v41  ;;  %v4146_v41 = vsub.f32 %v4039_v10, %v4054_v61  ;;  %v5135_v10 = vld [vmem:[%s21601_s13] sm:$0xff] }
 0x317   : > { %v4558_v20 = vadd.f32 %v4557_v62, %v4556_v49  ;;  %v4132_v62 = vsub.f32 %v4037_v11, %v4048_v36 }
 0x319   : > { %v4133_v50 = vand.u32 4294901760, %v4132_v62 }
 0x31a   : > { %16495 = vmatmul.mubr.f32.vlgmr.msra.gmra.mrb[14].mxu1 %v3151_v24 }
 0x31b   : > { %16498 = vmatpush3.msra.mxu1 %v3086_v1  ;;  %16499 = vmatprep.mubr.msk.f32.mxu1 %vm18566_vm1, %v21721_v44 }
 0x31c   : > { %17348 = vmatprep.subr.bf16.mxu1 %v18565_v34 }
 0x322   : > { %16500 = vmatmul.mubr.f32.vlgmr.msra.gmra.mrb[14].mxu1 %v3151_v24  ;;  %v4544_v24 = vld [vmem:[%s20293_s3 + $0x48] sm:$0xff] }
 0x323   : > { %16510 = vmatprep.mubr.msk.f32.mxu1 %vm18566_vm1, %v21721_v44  ;;  %17350 = vmatpush3.bf16.msra.mxu1 %v20248_v46  ;;  %v4562_v25 = vsel %vm4551_vm4, %v4544_v24, 0.0 }
 0x324   : > { %17351 = vmatprep.subr.bf16.mxu1 %v18565_v34  ;;  %v4563_v0 = vadd.f32 %v4562_v25, %v4561_v28  ;;  %v4036_v25 = vld [vmem:[%s21597_s9] sm:$0xff] }
 0x325   : > { %v4045_v16 = vand.u32 4294901760, %v4036_v25 }
 0x326   : > { %v4565_v26 = vadd.f32 %v4564_v15, %v4563_v0  ;;  %v4139_v0 = vsub.f32 %v4038_v43, %v4051_v42 }
 0x327   : > { %17353 = vmatpush3.bf16.msra.mxu1 %v20255_v45  ;;  %v20404_v63 = vpack.c.bf16 %v4048_v36, %v4045_v16  ;;  %v4125_v49 = vsub.f32 %v4036_v25, %v4045_v16 }
 0x328   : > { %17354 = vmatprep.subr.bf16.mxu1 %v18565_v34  ;;  %v4594_v56 = vand.u32 4294901760, %v4565_v26 }
 0x329   : > { %17386 = vmatpush3.bf16.msra.mxu0 %v20404_v63  ;;  %v4126_v15 = vand.u32 4294901760, %v4125_v49 }
 0x32a   : > { %17387 = vmatprep.subr.bf16.mxu0 %v18565_v34 }
 0x3f5   : > { %v3527_v57 = vpop.f32.mrb[14].mxu1 }
 0x3f6   : > { %v18124_v12 = vadd.f32 %v3527_v57, %v3080_v33  ;;  %v16501_v47 = vpop.f32.mrb[15].mxu1  ;;  %v4580_v33 = vld [vmem:[%s21599_s11] sm:$0xff]  ;;  %v4591_v57 = vand.u32 4294901760, %v4558_v20 }
 0x3f7   : > { %v4588_v22 = vsel %vm2588_vm2, %v4580_v33, 0 }
 0x3f8   : > { %v15738_v2 = vmul.f32 -1.442695, %v18124_v12 }
 0x3fa   : > { %18459 = vpow2.f32 %v15738_v2  ;;  %v20350_v2 = vand.u32 4294901760, %v4588_v22 }
 0x404   : > { %v18460_v21 = vpop.eup %18459 }
 0x405   : > { %v3534_v8 = vadd.f32 1.0, %v18460_v21  ;;  %v4671_v21 = vsub.f32 %v4558_v20, %v4591_v57  ;;  %v4147_v20 = vand.u32 4294901760, %v4146_v41 }
 0x407   : > { %18461 = vrcp.f32 %v3534_v8  ;;  %v4678_v8 = vsub.f32 %v4565_v26, %v4594_v56 }
 0x409   : > { %v17433_v35 = vpack.c.bf16 %v4678_v8, %v4671_v21 }
 0x411   : > { %v18462_v54 = vpop.eup %18461 }
 0x412   : > { %v3543_v1 = vsel %vm2588_vm2, %v18462_v54, 0 }
 0x413   : > { %v20277_v37 = vand.u32 4294901760, %v3543_v1 }
 0x415   : > { %v20280_v59 = vsub.f32 %v3543_v1, %v20277_v37 }
 0x417   : > { %v3616_v51 = vand.u32 4294901760, %v20280_v59 }
 0x419   : > { %v3617_v30 = vsub.f32 %v20280_v59, %v3616_v51 }
 0x41b   : > { %v3618_v6 = vand.u32 4294901760, %v3617_v30  ;;  %v4672_v30 = vand.u32 4294901760, %v4671_v21 }
 0x41d   : > { %16511 = vmatmul.mubr.f32.vlgmr.msra.gmra.mrb[16].mxu1 %v3618_v6  ;;  %v4679_v6 = vand.u32 4294901760, %v4678_v8  ;;  %v4673_v5 = vsub.f32 %v4671_v21, %v4672_v30  ;;  %v3541_v21 = vld [vmem:[%s22042_s26] sm:$0x1]  ;;  %s18577_s26 = smov 126  }
 0x41e   : > { %17356 = vmatpush3.bf16.msra.mxu1 %v17355_v39  ;;  %16521 = vmatprep.mubr.msk.f32.mxu1 %vm18566_vm1, %v21721_v44  ;;  %v4549_v39 = vld [vmem:[%s20293_s3 + $0x70] sm:$0xff]  ;;  %s18573_s3 = smov 118  }
 0x41f   : > { %17357 = vmatprep.subr.bf16.mxu1 %v18565_v34  ;;  %v4680_v48 = vsub.f32 %v4678_v8, %v4679_v6  ;;  %v4674_v58 = vand.u32 4294901760, %v4673_v5  ;;  %v17445_v52 = vpack.c.bf16 %v4679_v6, %v4672_v30 }
 0x421   : > { %v4681_v24 = vand.u32 4294901760, %v4680_v48 }
 0x422   : > { %17359 = vmatpush3.bf16.msra.mxu1 %v17358_v23  ;;  %v4577_v23 = vadd.f32 %v4576_v55, %v4575_v9  ;;  %v20407_v9 = vpack.c.bf16 %v4054_v61, %v4051_v42  ;;  %v4127_v55 = vsub.f32 %v4125_v49, %v4126_v15  ;;  %v5119_v61 = vld [vmem:[%s21603_s15 + $0x10] sm:$0xff] }
 0x423   : > { %17360 = vmatprep.subr.bf16.mxu1 %v18565_v34  ;;  %v17427_v40 = vpack.c.bf16 %v4681_v24, %v4674_v58 }
 0x424   : > { %17389 = vmatpush3.bf16.msra.mxu0 %v20407_v9  ;;  %v4128_v26 = vand.u32 4294901760, %v4127_v55  ;;  %v5122_v55 = vld [vmem:[%s21603_s15 + $0x28] sm:$0xff] }
 0x425   : > { %16522 = vmatmul.mubr.f32.vlgmr.msra.gmra.mrb[16].mxu1 %v20277_v37  ;;  %17390 = vmatprep.subr.bf16.mxu0 %v18565_v34 }
 0x426   : > { %17362 = vmatpush3.bf16.msra.mxu1 %v17361_v3  ;;  %16532 = vmatprep.mubr.msk.f32.mxu1 %vm18566_vm1, %v21721_v44  ;;  %v4571_v3 = vsel %vm4551_vm4, %v4549_v39, 0.0  ;;  %v4134_v39 = vsub.f32 %v4132_v62, %v4133_v50 }
 0x427   : > { %17363 = vmatprep.subr.bf16.mxu1 %v18565_v34  ;;  %v4572_v12 = vadd.f32 %v4571_v3, %v4570_v32  ;;  %v4148_v3 = vsub.f32 %v4146_v41, %v4147_v20 }
 0x428   : > { %v4135_v32 = vand.u32 4294901760, %v4134_v39 }
 0x429   : > { %v4597_v54 = vand.u32 4294901760, %v4572_v12 }
 0x42a   : > { %17365 = vmatpush3.bf16.msra.mxu1 %v17364_v17  ;;  %v4578_v17 = vsel %vm4551_vm4, %v4550_v19, 0.0  ;;  %v4140_v19 = vand.u32 4294901760, %v4139_v0 }
 0x42b   : > { %17366 = vmatprep.subr.bf16.mxu1 %v18565_v34  ;;  %v4579_v47 = vadd.f32 %v4578_v17, %v4577_v23  ;;  %v17391_v17 = vpack.c.bf16 %v4135_v32, %v4128_v26 }
 0x42c   : > { %v4141_v23 = vsub.f32 %v4139_v0, %v4140_v19 }
 0x42d   : > { %16533 = vmatmul.mubr.f32.vlgmr.msra.gmra.mrb[16].mxu1 %v20280_v59  ;;  %v4600_v1 = vand.u32 4294901760, %v4579_v47  ;;  %v4685_v59 = vsub.f32 %v4572_v12, %v4597_v54  ;;  %v17397_v12 = vpack.c.bf16 %v4132_v62, %v4125_v49 }
 0x42e   : > { %17368 = vmatpush3.bf16.msra.mxu1 %v20248_v46  ;;  %16543 = vmatprep.mubr.msk.f32.mxu1 %vm18566_vm1, %v21721_v44  ;;  %v4142_v33 = vand.u32 4294901760, %v4141_v23  ;;  %v5124_v23 = vld [vmem:[%s21603_s15 + $0x38] sm:$0xff] }
 0x42f   : > { %17369 = vmatprep.subr.bf16.mxu1 %v18565_v34  ;;  %v4686_v13 = vand.u32 4294901760, %v4685_v59 }
 0x431   : > { %v4687_v53 = vsub.f32 %v4685_v59, %v4686_v13 }
 0x432   : > { %17371 = vmatpush3.bf16.msra.mxu1 %v20255_v45 }
 0x433   : > { %17372 = vmatprep.subr.bf16.mxu1 %v18565_v34  ;;  %v4688_v18 = vand.u32 4294901760, %v4687_v53 }
 0x435   : > { %16544 = vmatmul.mubr.f32.vlgmr.msra.gmra.mrb[16].mxu1 %v3616_v51  ;;  %v4692_v51 = vsub.f32 %v4579_v47, %v4600_v1  ;;  %v17400_v47 = vpack.c.bf16 %v4146_v41, %v4139_v0  ;;  %v5121_v0 = vld [vmem:[%s21603_s15 + $0x20] sm:$0xff]  ;;  %v5144_v41 = vsel %vm5142_vm7, %v5135_v10, 0 }
 0x436   : > { %17374 = vmatpush3.bf16.msra.mxu1 %v20266_v27  ;;  %16554 = vmatprep.mubr.msk.f32.mxu1 %vm18566_vm1, %v21721_v44  ;;  %v4660_v27 = vsub.f32 %v4588_v22, %v20350_v2  ;;  %v17409_v22 = vpack.c.bf16 %v4133_v50, %v4126_v15 }
 0x437   : > { %17375 = vmatprep.subr.bf16.mxu1 %v18565_v34  ;;  %v4693_v4 = vand.u32 4294901760, %v4692_v51  ;;  %v17436_v29 = vpack.c.bf16 %v4692_v51, %v4685_v59 }
 0x438   : > { %v4661_v31 = vand.u32 4294901760, %v4660_v27 }
 0x439   : > { %v4694_v60 = vsub.f32 %v4692_v51, %v4693_v4  ;;  %v17448_v28 = vpack.c.bf16 %v4693_v4, %v4686_v13  ;;  %v4585_v4 = vpop.permute.xlu0 %4584 }
 0x43a   : > { %17377 = vmatpush3.bf16.msra.mxu1 %v20268_v38  ;;  %v17421_v38 = vpack.c.bf16 %v4594_v56, %v4591_v57  ;;  %v4662_v7 = vsub.f32 %v4660_v27, %v4661_v31  ;;  %v4149_v57 = vand.u32 4294901760, %v4148_v3 }
 0x43b   : > { %17378 = vmatprep.subr.bf16.mxu1 %v18565_v34  ;;  %v4695_v14 = vand.u32 4294901760, %v4694_v60  ;;  %v5699_v60 = vld [vmem:[#allocation2] sm:$0x1] }
 0x43c   : > { %v17394_v56 = vpack.c.bf16 %v4149_v57, %v4142_v33 }
 0x43d   : > { %16555 = vmatmul.mubr.f32.vlgmr.msra.gmra.mrb[16].mxu1 %v20277_v37 }
 0x43e   : > { %17380 = vmatpush3.bf16.msra.mxu1 %v20248_v46  ;;  %16565 = vmatprep.mubr.msk.f32.mxu1 %vm18566_vm1, %v21721_v44  ;;  %v17424_v46 = vpack.c.bf16 %v4600_v1, %v4597_v54 }
 0x43f   : > { %17381 = vmatprep.subr.bf16.mxu1 %v18565_v34 }
 0x442   : > { %17383 = vmatpush3.bf16.msra.mxu1 %v20255_v45  ;;  %v4663_v45 = vand.u32 4294901760, %v4662_v7 }
 0x443   : > { %17420 = vmatprep.subr.bf16.mxu1 %v18565_v34 }
 0x445   : > { %16566 = vmatmul.mubr.f32.vlgmr.msra.gmra.mrb[16].mxu1 %v20277_v37  ;;  %v17430_v37 = vpack.c.bf16 %v4695_v14, %v4688_v18  ;;  %v5117_v18 = vld [vmem:[%s21603_s15] sm:$0xff] }
 0x446   : > { %17422 = vmatpush3.bf16.msra.mxu1 %v17421_v38  ;;  %16642 = vmatprep.mubr.msk.f32.mxu1 %vm18566_vm1, %v21721_v44 }
 0x447   : > { %17423 = vmatprep.subr.bf16.mxu1 %v18565_v34 }
 0x44a   : > { %17425 = vmatpush3.bf16.msra.mxu1 %v17424_v46 }
 0x44b   : > { %17426 = vmatprep.subr.bf16.mxu1 %v18565_v34 }
 0x44d   : > { %16643 = vmatmul.mubr.f32.vlgmr.msra.gmra.mrb[18].mxu1 %v4663_v45 }
 0x44e   : > { %17428 = vmatpush3.bf16.msra.mxu1 %v17427_v40  ;;  %16653 = vmatprep.mubr.msk.f32.mxu1 %vm18566_vm1, %v21721_v44 }
 0x44f   : > { %17429 = vmatprep.subr.bf16.mxu1 %v18565_v34 }
 0x452   : > { %17431 = vmatpush3.bf16.msra.mxu1 %v17430_v37  ;;  %v5118_v37 = vld [vmem:[%s21603_s15 + $0x8] sm:$0xff] }
 0x453   : > { %17432 = vmatprep.subr.bf16.mxu1 %v18565_v34 }
 0x455   : > { %16654 = vmatmul.mubr.f32.vlgmr.msra.gmra.mrb[18].mxu1 %v20350_v2 }
 0x456   : > { %17434 = vmatpush3.bf16.msra.mxu1 %v17433_v35  ;;  %16664 = vmatprep.mubr.msk.f32.mxu1 %vm18566_vm1, %v21721_v44 }
 0x457   : > { %17435 = vmatprep.subr.bf16.mxu1 %v18565_v34 }
 0x45a   : > { %17437 = vmatpush3.bf16.msra.mxu1 %v17436_v29 }
 0x45b   : > { %17438 = vmatprep.subr.bf16.mxu1 %v18565_v34 }
 0x45d   : > { %16665 = vmatmul.mubr.f32.vlgmr.msra.gmra.mrb[18].mxu1 %v4660_v27 }
 0x45e   : > { %17440 = vmatpush3.bf16.msra.mxu1 %v17421_v38  ;;  %16675 = vmatprep.mubr.msk.f32.mxu1 %vm18566_vm1, %v21721_v44 }
 0x45f   : > { %17441 = vmatprep.subr.bf16.mxu1 %v18565_v34 }
 0x462   : > { %17443 = vmatpush3.bf16.msra.mxu1 %v17424_v46 }
 0x463   : > { %17444 = vmatprep.subr.bf16.mxu1 %v18565_v34 }
 0x465   : > { %16676 = vmatmul.mubr.f32.vlgmr.msra.gmra.mrb[18].mxu1 %v4661_v31 }
 0x466   : > { %17446 = vmatpush3.bf16.msra.mxu1 %v17445_v52  ;;  %16686 = vmatprep.mubr.msk.f32.mxu1 %vm18566_vm1, %v21721_v44 }
 0x467   : > { %17447 = vmatprep.subr.bf16.mxu1 %v18565_v34 }
 0x46a   : > { %17449 = vmatpush3.bf16.msra.mxu1 %v17448_v28 }
 0x46b   : > { %17450 = vmatprep.subr.bf16.mxu1 %v18565_v34 }
 0x46d   : > { %16687 = vmatmul.mubr.f32.vlgmr.msra.gmra.mrb[18].mxu1 %v20350_v2 }
 0x46e   : > { %17452 = vmatpush3.bf16.msra.mxu1 %v17421_v38  ;;  %16697 = vmatprep.mubr.msk.f32.mxu1 %vm18566_vm1, %v21721_v44 }
 0x46f   : > { %17453 = vmatprep.subr.bf16.mxu1 %v18565_v34 }
 0x472   : > { %17455 = vmatpush3.bf16.msra.mxu1 %v17424_v46 }
 0x473   : > { %16826 = vmatprep.subr.mxu1 %v21721_v44 }
 0x475   : > { %16698 = vmatmul.mubr.f32.vlgmr.msra.gmra.mrb[18].mxu1 %v20350_v2  ;;  %v17412_v2 = vpack.c.bf16 %v4147_v20, %v4140_v19  ;;  %v20481_v19 = vand.u32 4294901760, %v5144_v41 }
 0x476   : > { %16828 = vmatprep.mubr.msk.f32.mxu1 %vm18566_vm1, %v21721_v44 }
 0x518   : > { %v4026_v8 = vpop.f32.mrb[16].mxu1 }
 0x519   : > { %v18125_v54 = vadd.f32 %v4026_v8, %v3541_v21  ;;  %v16567_v1 = vpop.f32.mrb[17].mxu1 }
 0x51b   : > { %v15739_v27 = vmul.f32 -1.442695, %v18125_v54 }
 0x51d   : > { %18463 = vpow2.f32 %v15739_v27 }
 0x527   : > { %v18464_v59 = vpop.eup %18463 }
 0x528   : > { %v4033_v51 = vadd.f32 1.0, %v18464_v59 }
 0x52a   : > { %18465 = vrcp.f32 %v4033_v51 }
 0x534   : > { %v18466_v30 = vpop.eup %18465 }
 0x535   : > { %v4042_v6 = vsel %vm2588_vm2, %v18466_v30, 0 }
 0x536   : > { %v4113_v38 = vand.u32 4294901760, %v4042_v6 }
 0x538   : > { %v4114_v31 = vsub.f32 %v4042_v6, %v4113_v38 }
 0x53a   : > { %v4115_v5 = vand.u32 4294901760, %v4114_v31 }
 0x53c   : > { %v4116_v48 = vsub.f32 %v4114_v31, %v4115_v5 }
 0x53e   : > { %v4117_v13 = vand.u32 4294901760, %v4116_v48 }
 0x540   : > { %16577 = vmatmul.mubr.f32.vlgmr.msra.gmra.mrb[14].mxu0 %v4117_v13 }
 0x541   : > { %17392 = vmatpush3.bf16.msra.mxu0 %v17391_v17  ;;  %16587 = vmatprep.mubr.msk.f32.mxu0 %vm18566_vm1, %v21721_v44 }
 0x542   : > { %17393 = vmatprep.subr.bf16.mxu0 %v18565_v34 }
 0x545   : > { %17395 = vmatpush3.bf16.msra.mxu0 %v17394_v56 }
 0x546   : > { %17396 = vmatprep.subr.bf16.mxu0 %v18565_v34 }
 0x548   : > { %v5071_v46 = vpop.f32.mrb[18].mxu1  ;;  %16588 = vmatmul.mubr.f32.vlgmr.msra.gmra.mrb[14].mxu0 %v4113_v38 }
 0x549   : > { %v18127_v7 = vadd.f32 %v5071_v46, %v4585_v4  ;;  %v16699_v58 = vpop.f32.mrb[19].mxu1  ;;  %17398 = vmatpush3.bf16.msra.mxu0 %v17397_v12  ;;  %16598 = vmatprep.mubr.msk.f32.mxu0 %vm18566_vm1, %v21721_v44  ;;  %v5123_v12 = vld [vmem:[%s21603_s15 + $0x30] sm:$0xff] }
 0x54a   : > { %17399 = vmatprep.subr.bf16.mxu0 %v18565_v34 }
 0x54b   : > { %v5075_v24 = vmul.f32 0.999995, %v18127_v7 }
 0x54d   : > { %v20423_v53 = vmax.f32 %v5075_v24, 0.0  ;;  %17401 = vmatpush3.bf16.msra.mxu0 %v17400_v47 }
 0x54e   : > { %17402 = vmatprep.subr.bf16.mxu0 %v18565_v34 }
 0x54f   : > { %5081 = vrot.lane.b32.xlu1 %v20423_v53, %s18569_s30  ;;  %5078 = vrot.lane.b32.xlu0 %v20423_v53, %s18570_s6  ;;  %s18578_s30 = smov 14   ;;  %v5130_v39 = vmul.f32 %v5121_v0, %v20423_v53  ;;  %s18582_s6 = smov 112  }
 0x550   : > { %16599 = vmatmul.mubr.f32.vlgmr.msra.gmra.mrb[14].mxu0 %v4114_v31 }
 0x551   : > { %17404 = vmatpush3.bf16.msra.mxu0 %v20404_v63  ;;  %16609 = vmatprep.mubr.msk.f32.mxu0 %vm18566_vm1, %v21721_v44  ;;  %v5159_v47 = vand.u32 4294901760, %v5130_v39 }
 0x552   : > { %17405 = vmatprep.subr.bf16.mxu0 %v18565_v34 }
 0x553   : > { %5086 = vrot.lane.b32.xlu1 %v20423_v53, %s18571_s0  ;;  %5089 = vrot.lane.b32.xlu0 %v20423_v53, %s18572_s29  ;;  %v20519_v7 = vsub.f32 %v5130_v39, %v5159_v47  ;;  %s22048_s0 = smov 96   ;;  %s18583_s29 = smov 80  }
 0x555   : > { %17407 = vmatpush3.bf16.msra.mxu0 %v20407_v9 }
 0x556   : > { %17408 = vmatprep.subr.bf16.mxu0 %v18565_v34 }
 0x557   : > { %5093 = vrot.lane.b32.xlu1 %v20423_v53, %s18573_s3  ;;  %5096 = vrot.lane.b32.xlu0 %v20423_v53, %s18574_s7 }
 0x558   : > { %16610 = vmatmul.mubr.f32.vlgmr.msra.gmra.mrb[14].mxu0 %v4115_v5  ;;  %v5125_v5 = vld [vmem:[%s21603_s15 + $0x40] sm:$0xff] }
 0x559   : > { %17410 = vmatpush3.bf16.msra.mxu0 %v17409_v22  ;;  %16620 = vmatprep.mubr.msk.f32.mxu0 %vm18566_vm1, %v21721_v44  ;;  %v20492_v22 = vsub.f32 %v5144_v41, %v20481_v19 }
 0x55a   : > { %17411 = vmatprep.subr.bf16.mxu0 %v18565_v34 }
 0x55b   : > { %5101 = vrot.lane.b32.xlu1 %v20423_v53, %s18575_s8  ;;  %5104 = vrot.lane.b32.xlu0 %v20423_v53, %s18576_s1  ;;  %v5222_v30 = vand.u32 4294901760, %v20492_v22  ;;  %s21718_s1 = smov 96  }
 0x55d   : > { %17413 = vmatpush3.bf16.msra.mxu0 %v17412_v2  ;;  %v5223_v58 = vsub.f32 %v20492_v22, %v5222_v30 }
 0x55e   : > { %17414 = vmatprep.subr.bf16.mxu0 %v18565_v34 }
 0x55f   : > { %5109 = vrot.lane.b32.xlu1 %v20423_v53, %s18577_s26  ;;  %5112 = vrot.lane.b32.xlu0 %v20423_v53, %s18578_s30  ;;  %s18580_s26 = smov 64   ;;  %s18581_s30 = smov 32  }
 0x560   : > { %16621 = vmatmul.mubr.f32.vlgmr.msra.gmra.mrb[14].mxu0 %v4113_v38 }
 0x561   : > { %17416 = vmatpush3.bf16.msra.mxu0 %v20404_v63  ;;  %16631 = vmatprep.mubr.msk.f32.mxu0 %vm18566_vm1, %v21721_v44 }
 0x562   : > { %17417 = vmatprep.subr.bf16.mxu0 %v18565_v34 }
 0x563   : > { %5702 = vperm.xlu0 %18455, %v5699_v60  }
 0x565   : > { %17419 = vmatpush3.bf16.msra.mxu0 %v20407_v9  ;;  %v5120_v9 = vld [vmem:[%s21603_s15 + $0x18] sm:$0xff] }
 0x566   : > { %17456 = vmatprep.subr.bf16.mxu0 %v18565_v34 }
 0x568   : > { %16632 = vmatmul.mubr.f32.vlgmr.msra.gmra.mrb[14].mxu0 %v4113_v38 }
 0x569   : > { %16718 = vmatprep.mubr.msk.f32.mxu0 %vm18566_vm1, %v21721_v44 }
 0x5c1   : > { %v5082_v45 = vpop.permute.xlu1 %5081  ;;  %v5079_v40 = vpop.permute.xlu0 %5078 }
 0x5c2   : > { %v5085_v14 = vsel %vm5084_vm5, %v5079_v40, %v5082_v45 }
 0x5c3   : > { %v5126_v35 = vmul.f32 %v5117_v18, %v5085_v14  ;;  %v5132_v1 = vmul.f32 %v5123_v12, %v5085_v14 }
 0x5c5   : > { %v5087_v29 = vpop.permute.xlu1 %5086  ;;  %v5090_v52 = vpop.permute.xlu0 %5089  ;;  %v5147_v11 = vand.u32 4294901760, %v5126_v35  ;;  %v5165_v48 = vand.u32 4294901760, %v5132_v1 }
 0x5c6   : > { %v5092_v28 = vsel %vm3081_vm3, %v5087_v29, %v5090_v52  ;;  %v5261_v29 = vand.u32 4294901760, %v20519_v7  ;;  %v5136_v52 = vld [vmem:[%s21602_s14] sm:$0xff] }
 0x5c7   : > { %v5127_v25 = vmul.f32 %v5118_v37, %v5092_v28  ;;  %v20494_v2 = vsub.f32 %v5126_v35, %v5147_v11  ;;  %v5133_v21 = vmul.f32 %v5124_v23, %v5092_v28  ;;  %v5224_v35 = vand.u32 4294901760, %v5223_v58  ;;  %5139 = vperm.xlu1 %18456, %v5136_v52  }
 0x5c8   : > { %v20543_v28 = vsub.f32 %v5132_v1, %v5165_v48 }
 0x5c9   : > { %v5150_v43 = vand.u32 4294901760, %v5127_v25  ;;  %v5094_v16 = vpop.permute.xlu1 %5093  ;;  %v5097_v36 = vpop.permute.xlu0 %5096  ;;  %v5233_v6 = vand.u32 4294901760, %v20494_v2  ;;  %v5168_v38 = vand.u32 4294901760, %v5133_v21 }
 0x5ca   : > { %v5100_v63 = vsel %vm5099_vm6, %v5094_v16, %v5097_v36 }
 0x5cb   : > { %v20464_v42 = vpack.c.bf16 %v5150_v43, %v5147_v11  ;;  %v5128_v15 = vmul.f32 %v5119_v61, %v5100_v63  ;;  %v20486_v17 = vsub.f32 %v5127_v25, %v5150_v43  ;;  %v5234_v24 = vsub.f32 %v20494_v2, %v5233_v6 }
 0x5cc   : > { %v20528_v53 = vpack.c.bf16 %v5168_v38, %v5165_v48  ;;  %v5134_v60 = vmul.f32 %v5125_v5, %v5100_v63  ;;  %v20531_v40 = vsub.f32 %v5133_v21, %v5168_v38  ;;  %v5275_v63 = vand.u32 4294901760, %v20543_v28 }
 0x5cd   : > { %v5102_v49 = vpop.permute.xlu1 %5101  ;;  %17458 = vmatpush3.bf16.msra.mxu0 %v20464_v42  ;;  %v5105_v62 = vpop.permute.xlu0 %5104  ;;  %v5153_v33 = vand.u32 4294901760, %v5128_v15  ;;  %v5240_v27 = vand.u32 4294901760, %v20486_v17  ;;  %v5235_v43 = vand.u32 4294901760, %v5234_v24 }
 0x5ce   : > { %17459 = vmatprep.subr.bf16.mxu0 %v18565_v34  ;;  %v5108_v50 = vsel %vm5107_vm8, %v5102_v49, %v5105_v62  ;;  %v20545_v25 = vand.u32 4294901760, %v5134_v60  ;;  %v5282_v16 = vand.u32 4294901760, %v20531_v40  ;;  %v5262_v62 = vsub.f32 %v20519_v7, %v5261_v29 }
 0x5cf   : > { %v5129_v20 = vmul.f32 %v5120_v9, %v5108_v50  ;;  %v20507_v31 = vsub.f32 %v5128_v15, %v5153_v33  ;;  %v5241_v13 = vsub.f32 %v20486_v17, %v5240_v27  ;;  %v5276_v50 = vsub.f32 %v20543_v28, %v5275_v63 }
 0x5d0   : > { %v5283_v0 = vsub.f32 %v20531_v40, %v5282_v16  ;;  %v5288_v41 = vsub.f32 %v5134_v60, %v20545_v25  ;;  %v17505_v21 = vpack.c.bf16 %v5240_v27, %v5233_v6 }
 0x5d1   : > { %v5110_v26 = vpop.permute.xlu1 %5109  ;;  %v5113_v32 = vpop.permute.xlu0 %5112  ;;  %v5156_v57 = vand.u32 4294901760, %v5129_v20  ;;  %v5247_v45 = vand.u32 4294901760, %v20507_v31  ;;  %v5242_v37 = vand.u32 4294901760, %v5241_v13 }
 0x5d2   : > { %v5116_v3 = vsel %vm5115_vm9, %v5110_v26, %v5113_v32  ;;  %v5289_v39 = vand.u32 4294901760, %v5288_v41  ;;  %v5284_v26 = vand.u32 4294901760, %v5283_v0  ;;  %v5277_v32 = vand.u32 4294901760, %v5276_v50 }
 0x5d3   : > { %v5131_v56 = vmul.f32 %v5122_v55, %v5116_v3  ;;  %v20496_v8 = vpack.c.bf16 %v5156_v57, %v5153_v33  ;;  %v20499_v59 = vsub.f32 %v5129_v20, %v5156_v57  ;;  %v5248_v11 = vsub.f32 %v20507_v31, %v5247_v45 }
 0x5d4   : > { %v17469_v10 = vpack.c.bf16 %v5242_v37, %v5235_v43  ;;  %v5263_v55 = vand.u32 4294901760, %v5262_v62  ;;  %v17478_v23 = vpack.c.bf16 %v5284_v26, %v5277_v32  ;;  %v5290_v3 = vsub.f32 %v5288_v41, %v5289_v39  ;;  %v6164_v37 = vld [vmem:[%s21606_s18] sm:$0xff] }
 0x5d5   : > { %v5162_v54 = vand.u32 4294901760, %v5131_v56  ;;  %17461 = vmatpush3.bf16.msra.mxu0 %v20496_v8  ;;  %v5254_v4 = vand.u32 4294901760, %v20499_v59  ;;  %v5249_v49 = vand.u32 4294901760, %v5248_v11  ;;  %v17481_v57 = vpack.c.bf16 %v20486_v17, %v20494_v2  ;;  %v4040_v2 = vld [vmem:[%s21598_s10] sm:$0x1] }
 0x5d6   : > { %17462 = vmatprep.subr.bf16.mxu0 %v18565_v34  ;;  %v5291_v33 = vand.u32 4294901760, %v5290_v3 }
 0x5d7   : > { %v20501_v51 = vpack.c.bf16 %v5162_v54, %v5159_v47  ;;  %v20516_v46 = vsub.f32 %v5131_v56, %v5162_v54  ;;  %v5255_v18 = vsub.f32 %v20499_v59, %v5254_v4  ;;  %v17484_v56 = vpack.c.bf16 %v20499_v59, %v20507_v31 }
 0x5d8   : > { %v17490_v47 = vpack.c.bf16 %v20531_v40, %v20543_v28  ;;  %v17508_v54 = vpack.c.bf16 %v5254_v4, %v5247_v45 }
 0x5d9   : > { %17464 = vmatpush3.bf16.msra.mxu0 %v20501_v51  ;;  %v5268_v14 = vand.u32 4294901760, %v20516_v46  ;;  %v5256_v61 = vand.u32 4294901760, %v5255_v18  ;;  %v17487_v12 = vpack.c.bf16 %v20516_v46, %v20519_v7 }
 0x5da   : > { %17465 = vmatprep.subr.bf16.mxu0 %v18565_v34 }
 0x5db   : > { %v5269_v36 = vsub.f32 %v20516_v46, %v5268_v14  ;;  %v17472_v9 = vpack.c.bf16 %v5256_v61, %v5249_v49  ;;  %v17511_v17 = vpack.c.bf16 %v5268_v14, %v5261_v29  ;;  %v6171_v29 = vand.u32 4294901760, %v6164_v37 }
 0x5dd   : > { %17467 = vmatpush3.bf16.msra.mxu0 %v20528_v53  ;;  %v5270_v15 = vand.u32 4294901760, %v5269_v36 }
 0x5de   : > { %16716 = vmatprep.subr.mxu0 %v21721_v44 }
 0x5df   : > { %v17475_v20 = vpack.c.bf16 %v5270_v15, %v5263_v55 }
 0x5e1   : > { %16717 = vmatpush3.msra.mxu0 %v20545_v25 }
 0x5e2   : > { %17468 = vmatprep.subr.bf16.mxu0 %v18565_v34  ;;  %16719 = vmatmul.mubr.f32.vlgmr.msra.gmra.mrb[16].mxu0 %v5224_v35  ;;  %v6165_v35 = vld [vmem:[%s21606_s18 + $0x8] sm:$0xff]  ;;  %v5703_v50 = vpop.permute.xlu0 %5702 }
 0x5e3   : > { %17470 = vmatpush3.bf16.msra.mxu0 %v17469_v10  ;;  %16739 = vmatprep.mubr.msk.f32.mxu0 %vm18566_vm1, %v21721_v44  ;;  %v6174_v52 = vand.u32 4294901760, %v6165_v35 }
 0x5e4   : > { %17471 = vmatprep.subr.bf16.mxu0 %v18565_v34 }
 0x5e5   : > { %v17529_v28 = vpack.c.bf16 %v6174_v52, %v6171_v29  ;;  %v6256_v11 = vsub.f32 %v6165_v35, %v6174_v52  ;;  %v7116_v35 = vld [vmem:[%s21611_s23 + $0x20] sm:$0xff] }
 0x5e7   : > { %17473 = vmatpush3.bf16.msra.mxu0 %v17472_v9 }
 0x5e8   : > { %17474 = vmatprep.subr.bf16.mxu0 %v18565_v34 }
 0x5eb   : > { %17476 = vmatpush3.bf16.msra.mxu0 %v17475_v20 }
 0x5ec   : > { %17477 = vmatprep.subr.bf16.mxu0 %v18565_v34 }
 0x5ef   : > { %17479 = vmatpush3.bf16.msra.mxu0 %v17478_v23 }
 0x5f0   : > { %16737 = vmatprep.subr.mxu0 %v21721_v44 }
 0x5f3   : > { %16738 = vmatpush3.msra.mxu0 %v5291_v33 }
 0x5f4   : > { %17480 = vmatprep.subr.bf16.mxu0 %v18565_v34  ;;  %16740 = vmatmul.mubr.f32.vlgmr.msra.gmra.mrb[16].mxu0 %v20481_v19 }
 0x5f5   : > { %17482 = vmatpush3.bf16.msra.mxu0 %v17481_v57  ;;  %16760 = vmatprep.mubr.msk.f32.mxu0 %vm18566_vm1, %v21721_v44 }
 0x5f6   : > { %17483 = vmatprep.subr.bf16.mxu0 %v18565_v34 }
 0x5f9   : > { %17485 = vmatpush3.bf16.msra.mxu0 %v17484_v56 }
 0x5fa   : > { %17486 = vmatprep.subr.bf16.mxu0 %v18565_v34 }
 0x5fd   : > { %17488 = vmatpush3.bf16.msra.mxu0 %v17487_v12 }
 0x5fe   : > { %17489 = vmatprep.subr.bf16.mxu0 %v18565_v34 }
 0x601   : > { %17491 = vmatpush3.bf16.msra.mxu0 %v17490_v47 }
 0x602   : > { %16758 = vmatprep.subr.mxu0 %v21721_v44 }
 0x605   : > { %16759 = vmatpush3.msra.mxu0 %v5288_v41  ;;  %v21720_v41 = vlaneseq }
 0x606   : > { %17492 = vmatprep.subr.bf16.mxu0 %v18565_v34  ;;  %16761 = vmatmul.mubr.f32.vlgmr.msra.gmra.mrb[16].mxu0 %v20492_v22  ;;  %v17514_v22 = vpack.c.bf16 %v5282_v16, %v5275_v63  ;;  %v6257_v16 = vand.u32 4294901760, %v6256_v11 }
 0x607   : > { %17494 = vmatpush3.bf16.msra.mxu0 %v20464_v42  ;;  %16781 = vmatprep.mubr.msk.f32.mxu0 %vm18566_vm1, %v21721_v44  ;;  %v20681_v9 = vshrl.u32 %v21720_v41, 7 }
 0x608   : > { %17495 = vmatprep.subr.bf16.mxu0 %v18565_v34  ;;  %v6258_v10 = vsub.f32 %v6256_v11, %v6257_v16 }
 0x609   : > { %22043 = vst [vmem:[#allocation26_spill] sm:$0xff] %v20681_v9  ;;  %v5707_v15 = vsub.s32 0, %v20681_v9 }
 0x60a   : > { %v6259_v63 = vand.u32 4294901760, %v6258_v10 }
 0x60b   : > { %17497 = vmatpush3.bf16.msra.mxu0 %v20496_v8  ;;  %v5708_v55 = vrot.slane %v5703_v50, %v5707_v15 }
 0x60c   : > { %17498 = vmatprep.subr.bf16.mxu0 %v18565_v34 }
 0x60f   : > { %17500 = vmatpush3.bf16.msra.mxu0 %v20501_v51 }
 0x610   : > { %17501 = vmatprep.subr.bf16.mxu0 %v18565_v34 }
 0x613   : > { %17503 = vmatpush3.bf16.msra.mxu0 %v20528_v53 }
 0x614   : > { %16779 = vmatprep.subr.mxu0 %v21721_v44 }
 0x617   : > { %16780 = vmatpush3.msra.mxu0 %v20545_v25 }
 0x618   : > { %17504 = vmatprep.subr.bf16.mxu0 %v18565_v34  ;;  %16782 = vmatmul.mubr.f32.vlgmr.msra.gmra.mrb[16].mxu0 %v5222_v30 }
 0x619   : > { %17506 = vmatpush3.bf16.msra.mxu0 %v17505_v21  ;;  %16802 = vmatprep.mubr.msk.f32.mxu0 %vm18566_vm1, %v21721_v44 }
 0x61a   : > { %17507 = vmatprep.subr.bf16.mxu0 %v18565_v34 }
 0x61d   : > { %17509 = vmatpush3.bf16.msra.mxu0 %v17508_v54 }
 0x61e   : > { %17510 = vmatprep.subr.bf16.mxu0 %v18565_v34 }
 0x621   : > { %17512 = vmatpush3.bf16.msra.mxu0 %v17511_v17  ;;  %v6635_v17 = vld [vmem:[%s21608_s20] sm:$0xf] }
 0x622   : > { %17513 = vmatprep.subr.bf16.mxu0 %v18565_v34 }
 0x625   : > { %17515 = vmatpush3.bf16.msra.mxu0 %v17514_v22  ;;  %v6642_v22 = vsel %vm766_vm0, %v6635_v17, 0 }
 0x626   : > { %16800 = vmatprep.subr.mxu0 %v21721_v44 }
 0x629   : > { %16801 = vmatpush3.msra.mxu0 %v5289_v39 }
 0x62a   : > { %17516 = vmatprep.subr.bf16.mxu0 %v18565_v34  ;;  %16803 = vmatmul.mubr.f32.vlgmr.msra.gmra.mrb[16].mxu0 %v20481_v19 }
 0x62b   : > { %17518 = vmatpush3.bf16.msra.mxu0 %v20464_v42  ;;  %16823 = vmatprep.mubr.msk.f32.mxu0 %vm18566_vm1, %v21721_v44 }
 0x62c   : > { %17519 = vmatprep.subr.bf16.mxu0 %v18565_v34 }
 0x62f   : > { %17521 = vmatpush3.bf16.msra.mxu0 %v20496_v8 }
 0x630   : > { %17522 = vmatprep.subr.bf16.mxu0 %v18565_v34 }
 0x633   : > { %17524 = vmatpush3.bf16.msra.mxu0 %v20501_v51 }
 0x634   : > { %17525 = vmatprep.subr.bf16.mxu0 %v18565_v34 }
 0x637   : > { %17527 = vmatpush3.bf16.msra.mxu0 %v20528_v53 }
 0x638   : > { %16821 = vmatprep.subr.mxu0 %v21721_v44 }
 0x63b   : > { %v4525_v42 = vpop.f32.mrb[14].mxu0  ;;  %16822 = vmatpush3.msra.mxu0 %v20545_v25  ;;  %v6249_v25 = vsub.f32 %v6164_v37, %v6171_v29  ;;  %v7112_v37 = vld [vmem:[%s21611_s23] sm:$0xff] }
 0x63c   : > { %v18126_v1 = vadd.f32 %v4525_v42, %v4040_v2  ;;  %v16633_v27 = vpop.f32.mrb[15].mxu0  ;;  %16824 = vmatmul.mubr.f32.vlgmr.msra.gmra.mrb[16].mxu0 %v20481_v19  ;;  %v5698_v19 = vld [vmem:[%s21604_s16] sm:$0x1]  ;;  %v6645_v2 = vand.u32 4294901760, %v6642_v22  ;;  %v7125_v52 = vand.u32 4294901760, %v7112_v37 }
 0x63d   : > { %7682 = vmatprep.mubr.f32.mxu0 %v21721_v44  ;;  %v5710_v6 = vsel %vm3081_vm3, %v5698_v19, 0  ;;  %v6250_v43 = vand.u32 4294901760, %v6249_v25  ;;  %v17535_v62 = vpack.c.bf16 %v6256_v11, %v6249_v25  ;;  %v7118_v11 = vld [vmem:[%s21611_s23 + $0x30] sm:$0xff] }
 0x63e   : > { %v15740_v8 = vmul.f32 -1.442695, %v18126_v1  ;;  %v5778_v38 = vand.u32 4294901760, %v5710_v6  ;;  %v6722_v19 = vsub.f32 %v6642_v22, %v6645_v2  ;;  %v7210_v50 = vsub.f32 %v7112_v37, %v7125_v52 }
 0x63f   : > { %v6251_v36 = vsub.f32 %v6249_v25, %v6250_v43  ;;  %v17541_v0 = vpack.c.bf16 %v6257_v16, %v6250_v43  ;;  %v7114_v25 = vld [vmem:[%s21611_s23 + $0x10] sm:$0xff] }
 0x640   : > { %18467 = vpow2.f32 %v15740_v8  ;;  %v5779_v31 = vsub.f32 %v5710_v6, %v5778_v38  ;;  %v7616_v16 = vand.u32 4294901760, %v7114_v25 }
 0x641   : > { %v6252_v61 = vand.u32 4294901760, %v6251_v36  ;;  %v7620_v36 = vand.u32 4294901760, %v7118_v11 }
 0x642   : > { %v5780_v48 = vand.u32 4294901760, %v5779_v31 }
 0x643   : > { %v17532_v49 = vpack.c.bf16 %v6259_v63, %v6252_v61 }
 0x644   : > { %v5781_v7 = vsub.f32 %v5779_v31, %v5780_v48 }
 0x646   : > { %v5140_v5 = vpop.permute.xlu1 %5139  ;;  %v5782_v53 = vand.u32 4294901760, %v5781_v7 }
 0x64a   : > { %v18468_v59 = vpop.eup %18467 }
 0x64b   : > { %v4532_v51 = vadd.f32 1.0, %v18468_v59 }
 0x64d   : > { %18469 = vrcp.f32 %v4532_v51 }
 0x657   : > { %v20645_v30 = vpop.eup %18469 }
 0x658   : > { %10180 = vrot.lane.b32.xlu0 %v20645_v30, %s21718_s1 }
 0x65c   : > { %12256 = vrot.lane.b32.xlu0 %v20645_v30, %s18580_s26  ;;  %s15751_s26 = sshll.u32 %s18735_s17, 6  ;;  %s18585_s17 = smov [#allocation3]  }
 0x65d   : > { %s18505_s7 = sshll.u32 %s18585_s17, 4  ;;  %s18506_s7 = int_to_ptr.vmem [resolvable:$false] %s18505_s7 }
 0x660   : > { %14332 = vrot.lane.b32.xlu0 %v20645_v30, %s18581_s30 }
 0x70f   : > { %v5692_v13 = vpop.f32.mrb[16].mxu0 }
 0x710   : > { %v18128_v4 = vadd.f32 %v5692_v13, %v5140_v5  ;;  %v16825_v46 = vpop.f32.mrb[17].mxu0 }
 0x712   : > { %v5696_v58 = vmul.f32 0.999995, %v18128_v4 }
 0x714   : > { %v5697_v24 = vmax.f32 %v5696_v58, 0.0 }
 0x716   : > { %v5713_v60 = vand.u32 4294901760, %v5697_v24 }
 0x718   : > { %v5790_v45 = vsub.f32 %v5697_v24, %v5713_v60  ;;  %16827 = vmatpush3.msra.mxu1 %v5713_v60  ;;  %v7113_v24 = vld [vmem:[%s21611_s23 + $0x8] sm:$0xff] }
 0x719   : > { %16829 = vmatmul.mubr.f32.vlgmr.msra.gmra.mrb[20].mxu1 %v5782_v53  ;;  %16831 = vmatprep.subr.mxu1 %v21721_v44  ;;  %v7117_v53 = vld [vmem:[%s21611_s23 + $0x28] sm:$0xff] }
 0x71a   : > { %v5791_v40 = vand.u32 4294901760, %v5790_v45  ;;  %16833 = vmatprep.mubr.msk.f32.mxu1 %vm18566_vm1, %v21721_v44 }
 0x71c   : > { %v5792_v18 = vsub.f32 %v5790_v45, %v5791_v40 }
 0x71e   : > { %v5793_v14 = vand.u32 4294901760, %v5792_v18  ;;  %v7119_v18 = vld [vmem:[%s21611_s23 + $0x38] sm:$0xff] }
 0x71f   : > { %v7618_v29 = vand.u32 4294901760, %v7119_v18 }
 0x720   : > { %16832 = vmatpush3.msra.mxu1 %v5793_v14 }
 0x721   : > { %16834 = vmatmul.mubr.f32.vlgmr.msra.gmra.mrb[20].mxu1 %v5778_v38  ;;  %16836 = vmatprep.subr.mxu1 %v21721_v44  ;;  %v7707_v15 = vsub.f32 %v7119_v18, %v7618_v29 }
 0x722   : > { %16837 = vmatpush3.msra.mxu1 %v5790_v45  ;;  %16838 = vmatprep.mubr.msk.f32.mxu1 %vm18566_vm1, %v21721_v44  ;;  %v7123_v45 = vand.u32 4294901760, %v7113_v24 }
 0x723   : > { %16841 = vmatprep.subr.mxu1 %v21721_v44 }
 0x724   : > { %v7204_v63 = vsub.f32 %v7113_v24, %v7123_v45 }
 0x729   : > { %16839 = vmatmul.mubr.f32.vlgmr.msra.gmra.mrb[20].mxu1 %v5779_v31  ;;  %v6723_v31 = vand.u32 4294901760, %v6722_v19 }
 0x72a   : > { %16842 = vmatpush3.msra.mxu1 %v5713_v60  ;;  %16843 = vmatprep.mubr.msk.f32.mxu1 %vm18566_vm1, %v21721_v44 }
 0x72b   : > { %16846 = vmatprep.subr.mxu1 %v21721_v44  ;;  %v6724_v13 = vsub.f32 %v6722_v19, %v6723_v31 }
 0x72d   : > { %v6725_v7 = vand.u32 4294901760, %v6724_v13 }
 0x731   : > { %16844 = vmatmul.mubr.f32.vlgmr.msra.gmra.mrb[20].mxu1 %v5780_v48 }
 0x732   : > { %16847 = vmatpush3.msra.mxu1 %v5791_v40  ;;  %16848 = vmatprep.mubr.msk.f32.mxu1 %vm18566_vm1, %v21721_v44  ;;  %v7127_v40 = vand.u32 4294901760, %v7117_v53 }
 0x733   : > { %16851 = vmatprep.subr.mxu1 %v21721_v44 }
 0x734   : > { %v20749_v43 = vpack.c.bf16 %v7127_v40, %v7123_v45 }
 0x739   : > { %16849 = vmatmul.mubr.f32.vlgmr.msra.gmra.mrb[20].mxu1 %v5778_v38 }
 0x73a   : > { %16852 = vmatpush3.msra.mxu1 %v5713_v60  ;;  %16853 = vmatprep.mubr.msk.f32.mxu1 %vm18566_vm1, %v21721_v44  ;;  %v7115_v60 = vld [vmem:[%s21611_s23 + $0x18] sm:$0xff] }
 0x73b   : > { %17528 = vmatprep.subr.bf16.mxu1 %v18565_v34  ;;  %v7614_v14 = vand.u32 4294901760, %v7115_v60 }
 0x73d   : > { %v20751_v10 = vpack.c.bf16 %v7618_v29, %v7614_v14 }
 0x73f   : > { %17571 = vmatprep.subr.bf16.mxu0 %v20751_v10 }
 0x741   : > { %16854 = vmatmul.mubr.f32.vlgmr.msra.gmra.mrb[20].mxu1 %v5778_v38 }
 0x742   : > { %16860 = vmatprep.mubr.msk.f32.mxu1 %vm18566_vm1, %v21721_v44  ;;  %17530 = vmatpush3.bf16.msra.mxu1 %v17529_v28 }
 0x743   : > { %17531 = vmatprep.subr.bf16.mxu1 %v18565_v34 }
 0x814   : > { %v6154_v39 = vpop.f32.mrb[20].mxu1 }
 0x815   : > { %v18129_v20 = vadd.f32 %v6154_v39, %v5708_v55  ;;  %v16855_v26 = vpop.f32.mrb[21].mxu1  ;;  %v7205_v55 = vand.u32 4294901760, %v7204_v63 }
 0x816   : > { %v7701_v26 = vsub.f32 %v7114_v25, %v7616_v16 }
 0x817   : > { %v15741_v32 = vmul.f32 -1.442695, %v18129_v20 }
 0x819   : > { %18471 = vpow2.f32 %v15741_v32 }
 0x823   : > { %v18472_v23 = vpop.eup %18471 }
 0x824   : > { %v6161_v3 = vadd.f32 1.0, %v18472_v23  ;;  %v7708_v23 = vand.u32 4294901760, %v7707_v15 }
 0x826   : > { %18473 = vrcp.f32 %v6161_v3  ;;  %v7211_v3 = vand.u32 4294901760, %v7210_v50 }
 0x828   : > { %v7212_v17 = vsub.f32 %v7210_v50, %v7211_v3 }
 0x830   : > { %v18474_v33 = vpop.eup %18473 }
 0x831   : > { %v6168_v57 = vsel %vm4551_vm4, %v18474_v33, 0  ;;  %v7713_v33 = vsub.f32 %v7118_v11, %v7620_v36 }
 0x832   : > { %v6237_v56 = vand.u32 4294901760, %v6168_v57 }
 0x833   : > { %v7714_v22 = vand.u32 4294901760, %v7713_v33 }
 0x834   : > { %v6238_v12 = vsub.f32 %v6168_v57, %v6237_v56  ;;  %v7206_v57 = vsub.f32 %v7204_v63, %v7205_v55 }
 0x836   : > { %v6239_v47 = vand.u32 4294901760, %v6238_v12 }
 0x838   : > { %v6240_v21 = vsub.f32 %v6238_v12, %v6239_v47 }
 0x83a   : > { %v6241_v54 = vand.u32 4294901760, %v6240_v21 }
 0x83c   : > { %16861 = vmatmul.mubr.f32.vlgmr.msra.gmra.mrb[22].mxu1 %v6241_v54  ;;  %v7709_v54 = vsub.f32 %v7707_v15, %v7708_v23 }
 0x83d   : > { %17533 = vmatpush3.bf16.msra.mxu1 %v17532_v49  ;;  %16867 = vmatprep.mubr.msk.f32.mxu1 %vm18566_vm1, %v21721_v44  ;;  %v7216_v49 = vsub.f32 %v7117_v53, %v7127_v40  ;;  %v6636_v40 = vld [vmem:[%s21609_s21] sm:$0x1] }
 0x83e   : > { %17534 = vmatprep.subr.bf16.mxu1 %v18565_v34 }
 0x83f   : > { %v7217_v39 = vand.u32 4294901760, %v7216_v49 }
 0x841   : > { %v20779_v24 = vpack.c.bf16 %v7217_v39, %v7205_v55  ;;  %v7099_v55 = vld [vmem:[%s21610_s22 + $0x18] sm:$0xff] }
 0x843   : > { %22044 = vst [vmem:[#allocation10_spill] sm:$0xff] %v20779_v24 }
 0x844   : > { %16868 = vmatmul.mubr.f32.vlgmr.msra.gmra.mrb[22].mxu1 %v6237_v56 }
 0x845   : > { %17536 = vmatpush3.bf16.msra.mxu1 %v17535_v62  ;;  %16874 = vmatprep.mubr.msk.f32.mxu1 %vm18566_vm1, %v21721_v44  ;;  %v20756_v62 = vpack.c.bf16 %v7620_v36, %v7616_v16 }
 0x846   : > { %17537 = vmatprep.subr.bf16.mxu1 %v18565_v34 }
 0x847   : > { %17573 = vmatpush1.bf16.msra.mxu0 %v20756_v62 }
 0x84c   : > { %16875 = vmatmul.mubr.f32.vlgmr.msra.gmra.mrb[22].mxu1 %v6238_v12 }
 0x84d   : > { %17539 = vmatpush3.bf16.msra.mxu1 %v17529_v28  ;;  %16881 = vmatprep.mubr.msk.f32.mxu1 %vm18566_vm1, %v21721_v44 }
 0x84e   : > { %17540 = vmatprep.subr.bf16.mxu1 %v18565_v34 }
 0x854   : > { %16882 = vmatmul.mubr.f32.vlgmr.msra.gmra.mrb[22].mxu1 %v6239_v47  ;;  %v7702_v47 = vand.u32 4294901760, %v7701_v26 }
 0x855   : > { %17542 = vmatpush3.bf16.msra.mxu1 %v17541_v0  ;;  %16888 = vmatprep.mubr.msk.f32.mxu1 %vm18566_vm1, %v21721_v44  ;;  %v7695_v0 = vsub.f32 %v7115_v60, %v7614_v14 }
 0x856   : > { %17543 = vmatprep.subr.bf16.mxu1 %v18565_v34  ;;  %v6166_v34 = vld [vmem:[%s21607_s19] sm:$0x1]  ;;  %v20785_v45 = vpack.c.bf16 %v7714_v22, %v7702_v47 }
 0x857   : > { %v7696_v32 = vand.u32 4294901760, %v7695_v0 }
 0x858   : > { %22047 = vst [vmem:[#allocation12_spill] sm:$0xff] %v20785_v45 }
 0x859   : > { %v7697_v21 = vsub.f32 %v7695_v0, %v7696_v32  ;;  %v20781_v53 = vpack.c.bf16 %v7708_v23, %v7696_v32  ;;  %v7096_v32 = vld [vmem:[%s21610_s22] sm:$0xff] }
 0x85a   : > { %v7100_v23 = vld [vmem:[%s21610_s22 + $0x20] sm:$0xff] }
 0x85b   : > { %22045 = vst [vmem:[#allocation11_spill] sm:$0xff] %v20781_v53 }
 0x85c   : > { %16889 = vmatmul.mubr.f32.vlgmr.msra.gmra.mrb[22].mxu1 %v6237_v56 }
 0x85d   : > { %17545 = vmatpush3.bf16.msra.mxu1 %v17529_v28  ;;  %16895 = vmatprep.mubr.msk.f32.mxu1 %vm18566_vm1, %v21721_v44  ;;  %v7129_v28 = vand.u32 4294901760, %v7116_v35 }
 0x85e   : > { %16898 = vmatprep.subr.mxu1 %v21721_v44 }
 0x85f   : > { %v20753_v61 = vpack.c.bf16 %v7129_v28, %v7125_v52  ;;  %v7222_v20 = vsub.f32 %v7116_v35, %v7129_v28 }
 0x861   : > { %v7223_v12 = vand.u32 4294901760, %v7222_v20 }
 0x863   : > { %v20783_v60 = vpack.c.bf16 %v7223_v12, %v7211_v3  ;;  %v7098_v3 = vld [vmem:[%s21610_s22 + $0x10] sm:$0xff] }
 0x864   : > { %16896 = vmatmul.mubr.f32.vlgmr.msra.gmra.mrb[22].mxu1 %v6237_v56  ;;  %v7218_v56 = vsub.f32 %v7216_v49, %v7217_v39 }
 0x865   : > { %16900 = vmatprep.mubr.msk.f32.mxu1 %vm18566_vm1, %v21721_v44  ;;  %16899 = vmatpush3.msra.mxu1 %v6645_v2  ;;  %22046 = vst [vmem:[#allocation35_spill] sm:$0xff] %v20783_v60 }
 0x866   : > { %16903 = vmatprep.subr.mxu1 %v21721_v44 }
 0x937   : > { %v6625_v42 = vpop.f32.mrb[22].mxu1 }
 0x938   : > { %v18130_v1 = vadd.f32 %v6625_v42, %v6166_v34  ;;  %v16897_v27 = vpop.f32.mrb[23].mxu1  ;;  %v7219_v34 = vand.u32 4294901760, %v7218_v56  ;;  %v7224_v42 = vsub.f32 %v7222_v20, %v7223_v12  ;;  %v7102_v56 = vld [vmem:[%s21610_s22 + $0x30] sm:$0xff]  ;;  %v7105_v12 = vld [vmem:[%s21610_s22 + $0x48] sm:$0xff] }
 0x939   : > { %v7698_v27 = vand.u32 4294901760, %v7697_v21 }
 0x93a   : > { %v15742_v8 = vmul.f32 -1.442695, %v18130_v1  ;;  %v7703_v1 = vsub.f32 %v7701_v26, %v7702_v47  ;;  %v7109_v47 = vld [vmem:[%s21610_s22 + $0x68] sm:$0xff] }
 0x93c   : > { %18475 = vpow2.f32 %v15742_v8  ;;  %v7710_v8 = vand.u32 4294901760, %v7709_v54 }
 0x946   : > { %v18476_v59 = vpop.eup %18475 }
 0x947   : > { %v6632_v51 = vadd.f32 1.0, %v18476_v59  ;;  %v7213_v59 = vand.u32 4294901760, %v7212_v17  ;;  %v8110_v17 = vand.u32 4294901760, %v7096_v32 }
 0x949   : > { %18477 = vrcp.f32 %v6632_v51  ;;  %v7715_v51 = vsub.f32 %v7713_v33, %v7714_v22  ;;  %v8114_v22 = vand.u32 4294901760, %v7100_v23 }
 0x953   : > { %v18478_v6 = vpop.eup %18477 }
 0x954   : > { %v6639_v38 = vsel %vm6637_vm10, %v18478_v6, 0  ;;  %v7225_v6 = vand.u32 4294901760, %v7224_v42  ;;  %v8657_v42 = vand.u32 4294901760, %v7102_v56 }
 0x955   : > { %v6710_v5 = vand.u32 4294901760, %v6639_v38 }
 0x957   : > { %v6711_v48 = vsub.f32 %v6639_v38, %v6710_v5  ;;  %v7704_v38 = vand.u32 4294901760, %v7703_v1  ;;  %v8116_v1 = vand.u32 4294901760, %v7105_v12 }
 0x959   : > { %v6712_v4 = vand.u32 4294901760, %v6711_v48 }
 0x95b   : > { %v6713_v46 = vsub.f32 %v6711_v48, %v6712_v4 }
 0x95d   : > { %v6714_v58 = vand.u32 4294901760, %v6713_v46  ;;  %v20773_v46 = vpack.c.bf16 %v7707_v15, %v7695_v0  ;;  %v8106_v0 = vsel %vm2588_vm2, %v20645_v30, 0  ;;  %v7101_v30 = vld [vmem:[%s21610_s22 + $0x28] sm:$0xff] }
 0x95e   : > { %v20811_v15 = vand.u32 4294901760, %v8106_v0 }
 0x95f   : > { %16901 = vmatmul.mubr.f32.vlgmr.msra.gmra.mrb[24].mxu1 %v6714_v58  ;;  %v20777_v58 = vpack.c.bf16 %v7713_v33, %v7701_v26  ;;  %v7103_v26 = vld [vmem:[%s21610_s22 + $0x38] sm:$0xff]  ;;  %v8112_v33 = vand.u32 4294901760, %v7101_v30 }
 0x960   : > { %16904 = vmatpush3.msra.mxu1 %v6725_v7  ;;  %16905 = vmatprep.mubr.msk.f32.mxu1 %vm18566_vm1, %v21721_v44  ;;  %v20775_v7 = vpack.c.bf16 %v7222_v20, %v7210_v50  ;;  %v7097_v50 = vld [vmem:[%s21610_s22 + $0x8] sm:$0xff]  ;;  %v20823_v39 = vsub.f32 %v8106_v0, %v20811_v15  ;;  %v8655_v21 = vand.u32 4294901760, %v7103_v26 }
 0x961   : > { %16908 = vmatprep.subr.mxu1 %v21721_v44  ;;  %v8108_v20 = vand.u32 4294901760, %v7097_v50 }
 0x962   : > { %v20853_v54 = vand.u32 4294901760, %v20823_v39 }
 0x967   : > { %16906 = vmatmul.mubr.f32.vlgmr.msra.gmra.mrb[24].mxu1 %v6710_v5 }
 0x968   : > { %16909 = vmatpush3.msra.mxu1 %v6722_v19  ;;  %16910 = vmatprep.mubr.msk.f32.mxu1 %vm18566_vm1, %v21721_v44 }
 0x969   : > { %16913 = vmatprep.subr.mxu1 %v21721_v44 }
 0x96f   : > { %16911 = vmatmul.mubr.f32.vlgmr.msra.gmra.mrb[24].mxu1 %v6711_v48  ;;  %v20766_v48 = vpack.c.bf16 %v7225_v6, %v7213_v59  ;;  %v7111_v59 = vld [vmem:[%s21610_s22 + $0x78] sm:$0xff]  ;;  %v20868_v6 = vsub.f32 %v7101_v30, %v8112_v33  ;;  %v20905_v30 = vsub.f32 %v7096_v32, %v8110_v17 }
 0x970   : > { %16914 = vmatpush3.msra.mxu1 %v6645_v2  ;;  %16915 = vmatprep.mubr.msk.f32.mxu1 %vm18566_vm1, %v21721_v44 }
 0x971   : > { %16918 = vmatprep.subr.mxu1 %v21721_v44  ;;  %v21724_v0 = vand.u32 4294901760, %v20868_v6 }
 0x977   : > { %16916 = vmatmul.mubr.f32.vlgmr.msra.gmra.mrb[24].mxu1 %v6712_v4  ;;  %v20771_v4 = vpack.c.bf16 %v7216_v49, %v7204_v63 }
 0x978   : > { %16919 = vmatpush3.msra.mxu1 %v6723_v31  ;;  %16920 = vmatprep.mubr.msk.f32.mxu1 %vm18566_vm1, %v21721_v44  ;;  %v20763_v31 = vpack.c.bf16 %v7710_v8, %v7698_v27  ;;  %v8120_v27 = vand.u32 4294901760, %v7109_v47  ;;  %v7107_v8 = vld [vmem:[%s21610_s22 + $0x58] sm:$0xff] }
 0x979   : > { %16923 = vmatprep.subr.mxu1 %v21721_v44 }
 0x97a   : > { %17575 = vmatprep.subr.bf16.mxu0 %v20763_v31  ;;  %v20921_v32 = vsub.f32 %v7109_v47, %v8120_v27 }
 0x97f   : > { %16921 = vmatmul.mubr.f32.vlgmr.msra.gmra.mrb[24].mxu1 %v6710_v5 }
 0x980   : > { %16924 = vmatpush3.msra.mxu1 %v6645_v2  ;;  %16925 = vmatprep.mubr.msk.f32.mxu1 %vm18566_vm1, %v21721_v44  ;;  %v7207_v2 = vand.u32 4294901760, %v7206_v57  ;;  %v8651_v57 = vand.u32 4294901760, %v7099_v55 }
 0x981   : > { %17547 = vmatprep.subr.bf16.mxu1 %v20749_v43 }
 0x982   : > { %v20761_v19 = vpack.c.bf16 %v7219_v34, %v7207_v2  ;;  %v20855_v2 = vsub.f32 %v7097_v50, %v8108_v20  ;;  %v8653_v34 = vand.u32 4294901760, %v7098_v3  ;;  %v20919_v50 = vsub.f32 %v7105_v12, %v8116_v1 }
 0x987   : > { %16926 = vmatmul.mubr.f32.vlgmr.msra.gmra.mrb[24].mxu1 %v6710_v5  ;;  %v7716_v5 = vand.u32 4294901760, %v7715_v51  ;;  %v20866_v51 = vld [vmem:[%s21610_s22 + $0x40] sm:$0xff] }
 0x988   : > { %7191 = vmatprep.mubr.f32.mxu1 %v21721_v44  ;;  %17549 = vmatpush1.bf16.msra.mxu1 %v20753_v61 }
 0x989   : > { %17551 = vmatprep.subr.bf16.mxu1 %v20761_v19  ;;  %v20769_v13 = vpack.c.bf16 %v7716_v5, %v7704_v38  ;;  %v20870_v38 = vsub.f32 %v7099_v55, %v8651_v57  ;;  %v20872_v5 = vpack.c.bf16 %v8112_v33, %v8108_v20  ;;  %v20907_v55 = vsub.f32 %v7100_v23, %v8114_v22 }
 0x98a   : > { %v20910_v33 = vsub.f32 %v7098_v3, %v8653_v34  ;;  %v8207_v3 = vsub.f32 %v20868_v6, %v21724_v0 }
 0x98c   : > { %v21729_v47 = vand.u32 4294901760, %v20910_v33 }
 0x98e   : > { %v8744_v0 = vsub.f32 %v20910_v33, %v21729_v47  ;;  %v22052_v47 = vand.u32 4294901760, %v20921_v32 }
 0xa5a   : > { %v7086_v18 = vpop.f32.mrb[24].mxu1 }
 0xa5b   : > { %v18131_v14 = vadd.f32 %v7086_v18, %v6636_v40  ;;  %v16927_v37 = vpop.f32.mrb[25].mxu1  ;;  %v20876_v18 = vsub.f32 %v7103_v26, %v8655_v21 }
 0xa5c   : > { %v8659_v37 = vand.u32 4294901760, %v7107_v8 }
 0xa5d   : > { %v15743_v35 = vmul.f32 -1.442695, %v18131_v14  ;;  %v20880_v14 = vpack.c.bf16 %v8655_v21, %v8651_v57  ;;  %v21723_v26 = vand.u32 4294901760, %v20876_v18  ;;  %v20912_v57 = vsub.f32 %v7102_v56, %v8657_v42 }
 0xa5e   : > { %v20923_v23 = vsub.f32 %v7107_v8, %v8659_v37  ;;  %v22049_v56 = vand.u32 4294901760, %v20870_v38 }
 0xa5f   : > { %18479 = vpow2.f32 %v15743_v35  ;;  %v8663_v35 = vand.u32 4294901760, %v7111_v59  ;;  %v8750_v12 = vsub.f32 %v20876_v18, %v21723_v26 }
 0xa61   : > { %v20914_v21 = vpack.c.bf16 %v8663_v35, %v8659_v37  ;;  %v8751_v26 = vand.u32 4294901760, %v8750_v12  ;;  %v22051_v12 = vand.u32 4294901760, %v20919_v50 }
 0xa69   : > { %v18480_v29 = vpop.eup %18479 }
 0xa6a   : > { %v7093_v52 = vadd.f32 1.0, %v18480_v29  ;;  %v7108_v29 = vld [vmem:[%s21610_s22 + $0x60] sm:$0xff] }
 0xa6b   : > { %v8122_v20 = vand.u32 4294901760, %v7108_v29 }
 0xa6c   : > { %18481 = vrcp.f32 %v7093_v52  ;;  %v21725_v52 = vand.u32 4294901760, %v20855_v2 }
 0xa76   : > { %v18482_v28 = vpop.eup %18481 }
 0xa77   : > { %9194 = vrot.lane.b32.xlu1 %v18482_v28, %s18582_s6  ;;  %v7121_v25 = vsel %vm4551_vm4, %v18482_v28, 0 }
 0xa78   : > { %v20791_v11 = vand.u32 4294901760, %v7121_v25 }
 0xa7a   : > { %v7193_v16 = vsub.f32 %v7121_v25, %v20791_v11  ;;  %v20890_v25 = vpack.c.bf16 %v8657_v42, %v8653_v34  ;;  %v21726_v34 = vand.u32 4294901760, %v20905_v30  ;;  %v21728_v42 = vand.u32 4294901760, %v20907_v55 }
 0xa7b   : > { %11270 = vrot.lane.b32.xlu1 %v18482_v28, %s22048_s0  ;;  %s21546_s0 = scalar_lea.hbm %s21612_s24, %s15751_s26 }
 0xa7c   : > { %v7194_v36 = vand.u32 4294901760, %v7193_v16 }
 0xa7e   : > { %v7195_v63 = vsub.f32 %v7193_v16, %v7194_v36 }
 0xa7f   : > { %13346 = vrot.lane.b32.xlu1 %v18482_v28, %s18583_s29  ;;  %v20888_v28 = vpack.c.bf16 %v8114_v22, %v8110_v17  ;;  %v20925_v17 = vsub.f32 %v7111_v59, %v8663_v35  ;;  %v8738_v22 = vsub.f32 %v20870_v38, %v22049_v56  ;;  %v20947_v59 = vsub.f32 %v7108_v29, %v8122_v20 }
 0xa80   : > { %v7196_v49 = vand.u32 4294901760, %v7195_v63  ;;  %v7106_v63 = vld [vmem:[%s21610_s22 + $0x50] sm:$0xff]  ;;  %v22050_v56 = vmov 0.0  }
 0xa81   : > { %v8661_v41 = vand.u32 4294901760, %v7106_v63  ;;  %v8739_v29 = vand.u32 4294901760, %v8738_v22 }
 0xa82   : > { %7197 = vmatmul.mubr.f32.vlgmr.msra.gmra.mrb[26].mxu1 %v7196_v49  ;;  %7688 = vmatmul.mubr.f32.vlgmr.msra.gmra.mrb[18].mxu0 %v7196_v49  ;;  %v7110_v49 = vld [vmem:[%s21610_s22 + $0x70] sm:$0xff] }
 0xa83   : > { %17553 = vmatpush1.bf16.msra.mxu1 %v20766_v48  ;;  %17577 = vmatpush1.bf16.msra.mxu0 %v20769_v13  ;;  %v8665_v40 = vand.u32 4294901760, %v7110_v49  ;;  %v20949_v37 = vsub.f32 %v7106_v63, %v8661_v41  ;;  %v8201_v63 = vsub.f32 %v20905_v30, %v21726_v34 }
 0xa84   : > { %7287 = vmatprep.mubr.f32.mxu1 %v21721_v44  ;;  %7778 = vmatprep.mubr.f32.mxu0 %v21721_v44 }
 0xa85   : > { %17555 = vmatprep.subr.bf16.mxu1 %v20771_v4  ;;  %17579 = vmatprep.subr.bf16.mxu0 %v20773_v46  ;;  %v20951_v35 = vsub.f32 %v7110_v49, %v8665_v40  ;;  %v8213_v49 = vsub.f32 %v20907_v55, %v21728_v42  ;;  %v8219_v42 = vsub.f32 %v20919_v50, %v22051_v12  ;;  %v8202_v9 = vand.u32 4294901760, %v8201_v63 }
 0xa86   : > { %v20997_v12 = vpack.c.bf16 %v8751_v26, %v8739_v29 }
 0xa87   : > { %v22058_v26 = vand.u32 4294901760, %v20951_v35 }
 0xa8a   : > { %7289 = vmatmul.mubr.f32.vlgmr.msra.gmra.mrb[26].mxu1 %v20791_v11  ;;  %7780 = vmatmul.mubr.f32.vlgmr.msra.gmra.mrb[18].mxu0 %v20791_v11 }
 0xa8b   : > { %17557 = vmatpush1.bf16.msra.mxu1 %v20775_v7  ;;  %17581 = vmatpush1.bf16.msra.mxu0 %v20777_v58 }
 0xa8c   : > { %7367 = vmatprep.mubr.f32.mxu1 %v21721_v44  ;;  %7858 = vmatprep.mubr.f32.mxu0 %v21721_v44 }
 0xa8d   : > { %17559 = vmatprep.subr.bf16.mxu1 %v20749_v43  ;;  %17583 = vmatprep.subr.bf16.mxu0 %v20751_v10 }
 0xa92   : > { %7370 = vmatmul.mubr.f32.vlgmr.msra.gmra.mrb[26].mxu1 %v7193_v16  ;;  %7861 = vmatmul.mubr.f32.vlgmr.msra.gmra.mrb[18].mxu0 %v7193_v16  ;;  %v20892_v16 = vpack.c.bf16 %v8120_v27, %v8116_v1  ;;  %v21732_v1 = vand.u32 4294901760, %v20912_v57 }
 0xa93   : > { %17561 = vmatpush1.bf16.msra.mxu1 %v20753_v61  ;;  %17585 = vmatpush1.bf16.msra.mxu0 %v20756_v62 }
 0xa94   : > { %7444 = vmatprep.mubr.f32.mxu1 %v21721_v44  ;;  %7935 = vmatprep.mubr.f32.mxu0 %v21721_v44 }
 0xa95   : > { %17563 = vmatprep.subr.bf16.mxu1 %v20779_v24  ;;  %17587 = vmatprep.subr.bf16.mxu0 %v20781_v53 }
 0xa9a   : > { %7448 = vmatmul.mubr.f32.vlgmr.msra.gmra.mrb[26].mxu1 %v7194_v36  ;;  %7939 = vmatmul.mubr.f32.vlgmr.msra.gmra.mrb[18].mxu0 %v7194_v36  ;;  %v8118_v36 = vand.u32 4294901760, %v20866_v51 }
 0xa9b   : > { %17565 = vmatpush1.bf16.msra.mxu1 %v20783_v60  ;;  %17589 = vmatpush1.bf16.msra.mxu0 %v20785_v45  ;;  %v8231_v45 = vsub.f32 %v20921_v32, %v22052_v47  ;;  %v8214_v60 = vand.u32 4294901760, %v8213_v49  ;;  %v8745_v47 = vand.u32 4294901760, %v8744_v0  ;;  %v8220_v0 = vand.u32 4294901760, %v8219_v42 }
 0xa9c   : > { %7530 = vmatprep.mubr.f32.mxu1 %v21721_v44  ;;  %8021 = vmatprep.mubr.f32.mxu0 %v21721_v44  ;;  %v8195_v44 = vsub.f32 %v20855_v2, %v21725_v52  ;;  %v20943_v27 = vsub.f32 %v20866_v51, %v8118_v36  ;;  %v8756_v52 = vsub.f32 %v20912_v57, %v21732_v1  ;;  %v22053_v1 = vand.u32 4294901760, %v20923_v23 }
 0xa9d   : > { %17567 = vmatprep.subr.bf16.mxu1 %v20749_v43  ;;  %17591 = vmatprep.subr.bf16.mxu0 %v20751_v10  ;;  %v20974_v22 = vpack.c.bf16 %v8122_v20, %v8118_v36  ;;  %v22054_v36 = vand.u32 4294901760, %v20925_v17  ;;  %v20991_v51 = vpack.c.bf16 %v8665_v40, %v8661_v41  ;;  %v22056_v41 = vand.u32 4294901760, %v20947_v59 }
 0xa9e   : > { %v8196_v8 = vand.u32 4294901760, %v8195_v44  ;;  %v8208_v44 = vand.u32 4294901760, %v8207_v3  ;;  %v8762_v3 = vsub.f32 %v20923_v23, %v22053_v1  ;;  %v8757_v53 = vand.u32 4294901760, %v8756_v52 }
 0xa9f   : > { %v8774_v20 = vsub.f32 %v20925_v17, %v22054_v36  ;;  %v22055_v1 = vand.u32 4294901760, %v20943_v27  ;;  %v8237_v40 = vsub.f32 %v20947_v59, %v22056_v41  ;;  %v8780_v52 = vsub.f32 %v20951_v35, %v22058_v26 }
 0xaa0   : > { %v20993_v34 = vpack.c.bf16 %v8208_v44, %v8196_v8  ;;  %v22057_v8 = vand.u32 4294901760, %v20949_v37  ;;  %v8232_v44 = vand.u32 4294901760, %v8231_v45  ;;  %v8763_v29 = vand.u32 4294901760, %v8762_v3 }
 0xaa1   : > { %v8225_v24 = vsub.f32 %v20943_v27, %v22055_v1  ;;  %v8775_v63 = vand.u32 4294901760, %v8774_v20  ;;  %v21017_v49 = vpack.c.bf16 %v8214_v60, %v8202_v9  ;;  %v21019_v36 = vpack.c.bf16 %v8757_v53, %v8745_v47 }
 0xaa2   : > { %7532 = vmatmul.mubr.f32.vlgmr.msra.gmra.mrb[26].mxu1 %v20791_v11  ;;  %8023 = vmatmul.mubr.f32.vlgmr.msra.gmra.mrb[18].mxu0 %v20791_v11  ;;  %v8238_v41 = vand.u32 4294901760, %v8237_v40  ;;  %v8781_v26 = vand.u32 4294901760, %v8780_v52  ;;  %v22059_v45 = vsub.f32 %v20823_v39, %v20853_v54  ;;  %v21028_v9 = vpack.c.bf16 %v8232_v44, %v8220_v0 }
 0xaa3   : > { %17569 = vmatpush1.bf16.msra.mxu1 %v20753_v61  ;;  %17593 = vmatpush1.bf16.msra.mxu0 %v20756_v62  ;;  %v8226_v1 = vand.u32 4294901760, %v8225_v24  ;;  %v21030_v53 = vpack.c.bf16 %v8775_v63, %v8763_v29  ;;  %v21042_v3 = vpack.c.bf16 %v20868_v6, %v20855_v2  ;;  %v21046_v20 = vpack.c.bf16 %v20876_v18, %v20870_v38 }
 0xaa4   : > { %7606 = vmatprep.mubr.f32.mxu1 %v22050_v56  ;;  %8097 = vmatprep.mubr.f32.mxu0 %v22050_v56  ;;  %v8185_v42 = vand.u32 4294901760, %v22059_v45  ;;  %v21054_v47 = vpack.c.bf16 %v20907_v55, %v20905_v30  ;;  %v21058_v40 = vpack.c.bf16 %v20912_v57, %v20910_v33  ;;  %v21068_v52 = vpack.c.bf16 %v20925_v17, %v20923_v23 }
 0xaa5   : > { %17595 = vmatprep.subr.bf16.mxu1 %v20872_v5  ;;  %17643 = vmatprep.subr.bf16.mxu0 %v20880_v14  ;;  %v21034_v24 = vpack.c.bf16 %v8238_v41, %v8226_v1  ;;  %v21076_v0 = vpack.c.bf16 %v20947_v59, %v20943_v27  ;;  %v21080_v44 = vpack.c.bf16 %v20951_v35, %v20949_v37  ;;  %v22060_v29 = vand.u32 4294901760, %v20855_v2 }
 0xaa6   : > { %v22061_v63 = vand.u32 4294901760, %v20868_v6  ;;  %v22062_v41 = vand.u32 4294901760, %v20870_v38  ;;  %v22065_v2 = vand.u32 4294901760, %v20907_v55  ;;  %v22066_v38 = vand.u32 4294901760, %v20910_v33 }
 0xaa7   : > { %v22071_v55 = vand.u32 4294901760, %v20925_v17  ;;  %v22073_v33 = vand.u32 4294901760, %v20947_v59 }
 0xaa8   : > { %v21100_v1 = vpack.c.bf16 %v22061_v63, %v22060_v29  ;;  %v22069_v29 = vand.u32 4294901760, %v20921_v32 }
 0xaaa   : > { %7608 = vmatmul.mubr.f32.vlgmr.msra.gmra.mrb[26].mxu1 %v20791_v11  ;;  %8099 = vmatmul.mubr.f32.vlgmr.msra.gmra.mrb[18].mxu0 %v20791_v11  ;;  %v8768_v11 = vsub.f32 %v20949_v37, %v22057_v8 }
 0xaab   : > { %17597 = vmatpush1.bf16.msra.mxu1 %v20888_v28  ;;  %17645 = vmatpush1.bf16.msra.mxu0 %v20890_v25 }
 0xaac   : > { %17599 = vmatprep.subr.bf16.mxu1 %v20892_v16  ;;  %17647 = vmatprep.subr.bf16.mxu0 %v20914_v21  ;;  %v8769_v8 = vand.u32 4294901760, %v8768_v11  ;;  %v21064_v11 = vpack.c.bf16 %v20921_v32, %v20919_v50  ;;  %v22074_v32 = vand.u32 4294901760, %v20949_v37 }
 0xaad   : > { %8180 = vmatprep.mubr.f32.mxu1 %v22050_v56  ;;  %8723 = vmatprep.mubr.f32.mxu0 %v22050_v56 }
 0xaae   : > { %v21036_v60 = vpack.c.bf16 %v8781_v26, %v8769_v8  ;;  %v22063_v8 = vand.u32 4294901760, %v20876_v18  ;;  %v22067_v18 = vand.u32 4294901760, %v20912_v57 }
 0xaaf   : > { %17601 = vmatpush1.bf16.msra.mxu1 %v20974_v22  ;;  %17649 = vmatpush1.bf16.msra.mxu0 %v20991_v51 }
 0xab0   : > { %17603 = vmatprep.subr.bf16.mxu1 %v20993_v34  ;;  %17651 = vmatprep.subr.bf16.mxu0 %v20997_v12  ;;  %v21106_v26 = vpack.c.bf16 %v22063_v8, %v22062_v41  ;;  %v21122_v45 = vpack.c.bf16 %v22067_v18, %v22066_v38  ;;  %v10181_v38 = vpop.permute.xlu0 %10180  ;;  %v22078_v18 = vld [vmem:[#allocation35_spill] sm:$0xff] }
 0xab2   : > { %8186 = vmatmul.mubr.f32.vlgmr.msra.gmra.mrb[26].mxu1 %v8185_v42  ;;  %8729 = vmatmul.mubr.f32.vlgmr.msra.gmra.mrb[18].mxu0 %v8185_v42  ;;  %v22068_v42 = vand.u32 4294901760, %v20919_v50  ;;  %v22072_v50 = vand.u32 4294901760, %v20943_v27 }
 0xab3   : > { %17605 = vmatpush1.bf16.msra.mxu1 %v21017_v49  ;;  %17653 = vmatpush1.bf16.msra.mxu0 %v21019_v36 }
 0xab4   : > { %17607 = vmatprep.subr.bf16.mxu1 %v21028_v9  ;;  %17655 = vmatprep.subr.bf16.mxu0 %v21030_v53  ;;  %v21130_v63 = vpack.c.bf16 %v22069_v29, %v22068_v42  ;;  %v21146_v57 = vpack.c.bf16 %v22073_v33, %v22072_v50  ;;  %v22079_v42 = vld [vmem:[#allocation12_spill] sm:$0xff]  ;;  %v10182_v29 = vsel %vm2588_vm2, %v10181_v38, 0 }
 0xab5   : > { %8296 = vmatprep.mubr.f32.mxu1 %v22050_v56  ;;  %8839 = vmatprep.mubr.f32.mxu0 %v22050_v56 }
 0xab7   : > { %17609 = vmatpush1.bf16.msra.mxu1 %v21034_v24  ;;  %17657 = vmatpush1.bf16.msra.mxu0 %v21036_v60 }
 0xab8   : > { %17611 = vmatprep.subr.bf16.mxu1 %v21042_v3  ;;  %17659 = vmatprep.subr.bf16.mxu0 %v21046_v20 }
 0xaba   : > { %8298 = vmatmul.mubr.f32.vlgmr.msra.gmra.mrb[26].mxu1 %v20811_v15  ;;  %8841 = vmatmul.mubr.f32.vlgmr.msra.gmra.mrb[18].mxu0 %v20811_v15 }
 0xabb   : > { %17613 = vmatpush1.bf16.msra.mxu1 %v21054_v47  ;;  %17661 = vmatpush1.bf16.msra.mxu0 %v21058_v40 }
 0xabc   : > { %17615 = vmatprep.subr.bf16.mxu1 %v21064_v11  ;;  %17663 = vmatprep.subr.bf16.mxu0 %v21068_v52 }
 0xabd   : > { %8384 = vmatprep.mubr.f32.mxu1 %v22050_v56  ;;  %8927 = vmatprep.mubr.f32.mxu0 %v22050_v56 }
 0xabf   : > { %17617 = vmatpush1.bf16.msra.mxu1 %v21076_v0  ;;  %17665 = vmatpush1.bf16.msra.mxu0 %v21080_v44 }
 0xac0   : > { %17619 = vmatprep.subr.bf16.mxu1 %v20872_v5  ;;  %17667 = vmatprep.subr.bf16.mxu0 %v20880_v14 }
 0xac2   : > { %8387 = vmatmul.mubr.f32.vlgmr.msra.gmra.mrb[26].mxu1 %v20823_v39  ;;  %8930 = vmatmul.mubr.f32.vlgmr.msra.gmra.mrb[18].mxu0 %v20823_v39  ;;  %v22064_v39 = vand.u32 4294901760, %v20905_v30  ;;  %v22070_v30 = vand.u32 4294901760, %v20923_v23  ;;  %v22075_v23 = vand.u32 4294901760, %v20951_v35 }
 0xac3   : > { %17621 = vmatpush1.bf16.msra.mxu1 %v20888_v28  ;;  %17669 = vmatpush1.bf16.msra.mxu0 %v20890_v25 }
 0xac4   : > { %17623 = vmatprep.subr.bf16.mxu1 %v20892_v16  ;;  %17671 = vmatprep.subr.bf16.mxu0 %v20914_v21  ;;  %v21116_v6 = vpack.c.bf16 %v22065_v2, %v22064_v39  ;;  %v21136_v41 = vpack.c.bf16 %v22071_v55, %v22070_v30  ;;  %v21152_v17 = vpack.c.bf16 %v22075_v23, %v22074_v32  ;;  %v22076_v39 = vld [vmem:[#allocation10_spill] sm:$0xff]  ;;  %v22077_v2 = vld [vmem:[#allocation11_spill] sm:$0xff]  ;;  %v21208_v30 = vand.u32 4294901760, %v10182_v29 }
 0xac5   : > { %8465 = vmatprep.mubr.f32.mxu1 %v22050_v56  ;;  %9008 = vmatprep.mubr.f32.mxu0 %v22050_v56 }
 0xac6   : > { %v10258_v55 = vsub.f32 %v10182_v29, %v21208_v30 }
 0xac7   : > { %17625 = vmatpush1.bf16.msra.mxu1 %v20974_v22  ;;  %17673 = vmatpush1.bf16.msra.mxu0 %v20991_v51 }
 0xac8   : > { %17627 = vmatprep.subr.bf16.mxu1 %v21100_v1  ;;  %17675 = vmatprep.subr.bf16.mxu0 %v21106_v26  ;;  %v10259_v50 = vand.u32 4294901760, %v10258_v55 }
 0xaca   : > { %8469 = vmatmul.mubr.f32.vlgmr.msra.gmra.mrb[26].mxu1 %v20853_v54  ;;  %9012 = vmatmul.mubr.f32.vlgmr.msra.gmra.mrb[18].mxu0 %v20853_v54  ;;  %v10260_v33 = vsub.f32 %v10258_v55, %v10259_v50 }
 0xacb   : > { %17629 = vmatpush1.bf16.msra.mxu1 %v21116_v6  ;;  %17677 = vmatpush1.bf16.msra.mxu0 %v21122_v45 }
 0xacc   : > { %17631 = vmatprep.subr.bf16.mxu1 %v21130_v63  ;;  %17679 = vmatprep.subr.bf16.mxu0 %v21136_v41  ;;  %v10261_v32 = vand.u32 4294901760, %v10260_v33 }
 0xacd   : > { %8563 = vmatprep.mubr.f32.mxu1 %v22050_v56  ;;  %9106 = vmatprep.mubr.f32.mxu0 %v22050_v56 }
 0xacf   : > { %17633 = vmatpush1.bf16.msra.mxu1 %v21146_v57  ;;  %17681 = vmatpush1.bf16.msra.mxu0 %v21152_v17 }
 0xad0   : > { %17635 = vmatprep.subr.bf16.mxu1 %v20872_v5  ;;  %17683 = vmatprep.subr.bf16.mxu0 %v20880_v14 }
 0xad2   : > { %8565 = vmatmul.mubr.f32.vlgmr.msra.gmra.mrb[26].mxu1 %v20811_v15  ;;  %9108 = vmatmul.mubr.f32.vlgmr.msra.gmra.mrb[18].mxu0 %v20811_v15 }
 0xad3   : > { %17637 = vmatpush1.bf16.msra.mxu1 %v20888_v28  ;;  %17685 = vmatpush1.bf16.msra.mxu0 %v20890_v25 }
 0xad4   : > { %17639 = vmatprep.subr.bf16.mxu1 %v20892_v16  ;;  %17687 = vmatprep.subr.bf16.mxu0 %v20914_v21 }
 0xad5   : > { %8643 = vmatprep.mubr.f32.mxu1 %v22050_v56  ;;  %9186 = vmatprep.mubr.f32.mxu0 %v22050_v56 }
 0xad7   : > { %17641 = vmatpush1.bf16.msra.mxu1 %v20974_v22  ;;  %17689 = vmatpush1.bf16.msra.mxu0 %v20991_v51 }
 0xad8   : > { %17691 = vmatprep.subr.bf16.mxu1 %v20749_v43  ;;  %17715 = vmatprep.subr.bf16.mxu0 %v20751_v10 }
 0xada   : > { %8645 = vmatmul.mubr.f32.vlgmr.msra.gmra.mrb[26].mxu1 %v20811_v15  ;;  %9188 = vmatmul.mubr.f32.vlgmr.msra.gmra.mrb[18].mxu0 %v20811_v15 }
 0xadb   : > { %17693 = vmatpush1.bf16.msra.mxu1 %v20753_v61  ;;  %17717 = vmatpush1.bf16.msra.mxu0 %v20756_v62 }
 0xadc   : > { %9266 = vmatprep.mubr.f32.mxu1 %v22050_v56  ;;  %9757 = vmatprep.mubr.f32.mxu0 %v22050_v56 }
 0xadd   : > { %17695 = vmatprep.subr.bf16.mxu1 %v20761_v19  ;;  %17719 = vmatprep.subr.bf16.mxu0 %v20763_v31 }
 0xae9   : > { %v9195_v54 = vpop.permute.xlu1 %9194 }
 0xaea   : > { %v9196_v27 = vsel %vm4551_vm4, %v9195_v54, 0 }
 0xaeb   : > { %v9267_v59 = vand.u32 4294901760, %v9196_v27 }
 0xaed   : > { %v9268_v37 = vsub.f32 %v9196_v27, %v9267_v59  ;;  %v11271_v23 = vpop.permute.xlu1 %11270 }
 0xaee   : > { %v11272_v54 = vsel %vm4551_vm4, %v11271_v23, 0 }
 0xaef   : > { %v9269_v35 = vand.u32 4294901760, %v9268_v37  ;;  %v21262_v27 = vand.u32 4294901760, %v11272_v54 }
 0xaf1   : > { %v9270_v8 = vsub.f32 %v9268_v37, %v9269_v35 }
 0xaf3   : > { %v9271_v15 = vand.u32 4294901760, %v9270_v8 }
 0xaf5   : > { %9272 = vmatmul.mubr.f32.vlgmr.msra.gmra.mrb[28].mxu1 %v9271_v15  ;;  %9763 = vmatmul.mubr.f32.vlgmr.msra.gmra.mrb[20].mxu0 %v9271_v15  ;;  %v12257_v15 = vpop.permute.xlu0 %12256 }
 0xaf6   : > { %17697 = vmatpush1.bf16.msra.mxu1 %v20766_v48  ;;  %17721 = vmatpush1.bf16.msra.mxu0 %v20769_v13  ;;  %v12258_v38 = vsel %vm2588_vm2, %v12257_v15, 0 }
 0xaf7   : > { %9362 = vmatprep.mubr.f32.mxu1 %v22050_v56  ;;  %9853 = vmatprep.mubr.f32.mxu0 %v22050_v56  ;;  %v21320_v29 = vand.u32 4294901760, %v12258_v38 }
 0xaf8   : > { %17699 = vmatprep.subr.bf16.mxu1 %v20771_v4  ;;  %17723 = vmatprep.subr.bf16.mxu0 %v20773_v46 }
 0xafd   : > { %9364 = vmatmul.mubr.f32.vlgmr.msra.gmra.mrb[28].mxu1 %v9267_v59  ;;  %9855 = vmatmul.mubr.f32.vlgmr.msra.gmra.mrb[20].mxu0 %v9267_v59 }
 0xafe   : > { %17701 = vmatpush1.bf16.msra.mxu1 %v20775_v7  ;;  %17725 = vmatpush1.bf16.msra.mxu0 %v20777_v58 }
 0xaff   : > { %9442 = vmatprep.mubr.f32.mxu1 %v22050_v56  ;;  %9933 = vmatprep.mubr.f32.mxu0 %v22050_v56 }
 0xb00   : > { %17703 = vmatprep.subr.bf16.mxu1 %v20749_v43  ;;  %17727 = vmatprep.subr.bf16.mxu0 %v20751_v10 }
 0xb05   : > { %9445 = vmatmul.mubr.f32.vlgmr.msra.gmra.mrb[28].mxu1 %v9268_v37  ;;  %9936 = vmatmul.mubr.f32.vlgmr.msra.gmra.mrb[20].mxu0 %v9268_v37 }
 0xb06   : > { %17705 = vmatpush1.bf16.msra.mxu1 %v20753_v61  ;;  %17729 = vmatpush1.bf16.msra.mxu0 %v20756_v62 }
 0xb07   : > { %9519 = vmatprep.mubr.f32.mxu1 %v22050_v56  ;;  %10010 = vmatprep.mubr.f32.mxu0 %v22050_v56 }
 0xb08   : > { %17707 = vmatprep.subr.bf16.mxu1 %v22076_v39  ;;  %17731 = vmatprep.subr.bf16.mxu0 %v22077_v2 }
 0xb0d   : > { %9523 = vmatmul.mubr.f32.vlgmr.msra.gmra.mrb[28].mxu1 %v9269_v35  ;;  %10014 = vmatmul.mubr.f32.vlgmr.msra.gmra.mrb[20].mxu0 %v9269_v35 }
 0xb0e   : > { %17709 = vmatpush1.bf16.msra.mxu1 %v22078_v18  ;;  %17733 = vmatpush1.bf16.msra.mxu0 %v22079_v42 }
 0xb0f   : > { %9605 = vmatprep.mubr.f32.mxu1 %v22050_v56  ;;  %10096 = vmatprep.mubr.f32.mxu0 %v22050_v56 }
 0xb10   : > { %17711 = vmatprep.subr.bf16.mxu1 %v20749_v43  ;;  %17735 = vmatprep.subr.bf16.mxu0 %v20751_v10 }
 0xb15   : > { %9607 = vmatmul.mubr.f32.vlgmr.msra.gmra.mrb[28].mxu1 %v9267_v59  ;;  %10098 = vmatmul.mubr.f32.vlgmr.msra.gmra.mrb[20].mxu0 %v9267_v59 }
 0xb16   : > { %17713 = vmatpush1.bf16.msra.mxu1 %v20753_v61  ;;  %17737 = vmatpush1.bf16.msra.mxu0 %v20756_v62 }
 0xb17   : > { %9681 = vmatprep.mubr.f32.mxu1 %v22050_v56  ;;  %10172 = vmatprep.mubr.f32.mxu0 %v22050_v56 }
 0xb18   : > { %17739 = vmatprep.subr.bf16.mxu1 %v20872_v5  ;;  %17787 = vmatprep.subr.bf16.mxu0 %v20880_v14 }
 0xb1d   : > { %9683 = vmatmul.mubr.f32.vlgmr.msra.gmra.mrb[28].mxu1 %v9267_v59  ;;  %10174 = vmatmul.mubr.f32.vlgmr.msra.gmra.mrb[20].mxu0 %v9267_v59  ;;  %v11344_v59 = vsub.f32 %v11272_v54, %v21262_v27 }
 0xb1e   : > { %17741 = vmatpush1.bf16.msra.mxu1 %v20888_v28  ;;  %17789 = vmatpush1.bf16.msra.mxu0 %v20890_v25 }
 0xb1f   : > { %17743 = vmatprep.subr.bf16.mxu1 %v20892_v16  ;;  %17791 = vmatprep.subr.bf16.mxu0 %v20914_v21  ;;  %v11345_v37 = vand.u32 4294901760, %v11344_v59 }
 0xb20   : > { %10256 = vmatprep.mubr.f32.mxu1 %v22050_v56  ;;  %10799 = vmatprep.mubr.f32.mxu0 %v22050_v56 }
 0xb21   : > { %v11346_v35 = vsub.f32 %v11344_v59, %v11345_v37 }
 0xb22   : > { %17745 = vmatpush1.bf16.msra.mxu1 %v20974_v22  ;;  %17793 = vmatpush1.bf16.msra.mxu0 %v20991_v51 }
 0xb23   : > { %17747 = vmatprep.subr.bf16.mxu1 %v20993_v34  ;;  %17795 = vmatprep.subr.bf16.mxu0 %v20997_v12  ;;  %v11347_v8 = vand.u32 4294901760, %v11346_v35 }
 0xb25   : > { %10262 = vmatmul.mubr.f32.vlgmr.msra.gmra.mrb[28].mxu1 %v10261_v32  ;;  %10805 = vmatmul.mubr.f32.vlgmr.msra.gmra.mrb[20].mxu0 %v10261_v32  ;;  %v13347_v32 = vpop.permute.xlu1 %13346 }
 0xb26   : > { %17749 = vmatpush1.bf16.msra.mxu1 %v21017_v49  ;;  %17797 = vmatpush1.bf16.msra.mxu0 %v21019_v36  ;;  %v13348_v23 = vsel %vm4551_vm4, %v13347_v32, 0 }
 0xb27   : > { %17751 = vmatprep.subr.bf16.mxu1 %v21028_v9  ;;  %17799 = vmatprep.subr.bf16.mxu0 %v21030_v53  ;;  %v21378_v54 = vand.u32 4294901760, %v13348_v23 }
 0xb28   : > { %10372 = vmatprep.mubr.f32.mxu1 %v22050_v56  ;;  %10915 = vmatprep.mubr.f32.mxu0 %v22050_v56 }
 0xb2a   : > { %17753 = vmatpush1.bf16.msra.mxu1 %v21034_v24  ;;  %17801 = vmatpush1.bf16.msra.mxu0 %v21036_v60 }
 0xb2b   : > { %17755 = vmatprep.subr.bf16.mxu1 %v21042_v3  ;;  %17803 = vmatprep.subr.bf16.mxu0 %v21046_v20 }
 0xb2d   : > { %10374 = vmatmul.mubr.f32.vlgmr.msra.gmra.mrb[28].mxu1 %v21208_v30  ;;  %10917 = vmatmul.mubr.f32.vlgmr.msra.gmra.mrb[20].mxu0 %v21208_v30 }
 0xb2e   : > { %17757 = vmatpush1.bf16.msra.mxu1 %v21054_v47  ;;  %17805 = vmatpush1.bf16.msra.mxu0 %v21058_v40 }
 0xb2f   : > { %17759 = vmatprep.subr.bf16.mxu1 %v21064_v11  ;;  %17807 = vmatprep.subr.bf16.mxu0 %v21068_v52 }
 0xb30   : > { %10460 = vmatprep.mubr.f32.mxu1 %v22050_v56  ;;  %11003 = vmatprep.mubr.f32.mxu0 %v22050_v56 }
 0xb32   : > { %17761 = vmatpush1.bf16.msra.mxu1 %v21076_v0  ;;  %17809 = vmatpush1.bf16.msra.mxu0 %v21080_v44 }
 0xb33   : > { %17763 = vmatprep.subr.bf16.mxu1 %v20872_v5  ;;  %17811 = vmatprep.subr.bf16.mxu0 %v20880_v14 }
 0xb35   : > { %10463 = vmatmul.mubr.f32.vlgmr.msra.gmra.mrb[28].mxu1 %v10258_v55  ;;  %11006 = vmatmul.mubr.f32.vlgmr.msra.gmra.mrb[20].mxu0 %v10258_v55 }
 0xb36   : > { %17765 = vmatpush1.bf16.msra.mxu1 %v20888_v28  ;;  %17813 = vmatpush1.bf16.msra.mxu0 %v20890_v25 }
 0xb37   : > { %17767 = vmatprep.subr.bf16.mxu1 %v20892_v16  ;;  %17815 = vmatprep.subr.bf16.mxu0 %v20914_v21 }
 0xb38   : > { %10541 = vmatprep.mubr.f32.mxu1 %v22050_v56  ;;  %11084 = vmatprep.mubr.f32.mxu0 %v22050_v56 }
 0xb3a   : > { %17769 = vmatpush1.bf16.msra.mxu1 %v20974_v22  ;;  %17817 = vmatpush1.bf16.msra.mxu0 %v20991_v51 }
 0xb3b   : > { %17771 = vmatprep.subr.bf16.mxu1 %v21100_v1  ;;  %17819 = vmatprep.subr.bf16.mxu0 %v21106_v26 }
 0xb3d   : > { %10545 = vmatmul.mubr.f32.vlgmr.msra.gmra.mrb[28].mxu1 %v10259_v50  ;;  %11088 = vmatmul.mubr.f32.vlgmr.msra.gmra.mrb[20].mxu0 %v10259_v50 }
 0xb3e   : > { %17773 = vmatpush1.bf16.msra.mxu1 %v21116_v6  ;;  %17821 = vmatpush1.bf16.msra.mxu0 %v21122_v45 }
 0xb3f   : > { %17775 = vmatprep.subr.bf16.mxu1 %v21130_v63  ;;  %17823 = vmatprep.subr.bf16.mxu0 %v21136_v41 }
 0xb40   : > { %10639 = vmatprep.mubr.f32.mxu1 %v22050_v56  ;;  %11182 = vmatprep.mubr.f32.mxu0 %v22050_v56 }
 0xb42   : > { %17777 = vmatpush1.bf16.msra.mxu1 %v21146_v57  ;;  %17825 = vmatpush1.bf16.msra.mxu0 %v21152_v17 }
 0xb43   : > { %17779 = vmatprep.subr.bf16.mxu1 %v20872_v5  ;;  %17827 = vmatprep.subr.bf16.mxu0 %v20880_v14 }
 0xb45   : > { %10641 = vmatmul.mubr.f32.vlgmr.msra.gmra.mrb[28].mxu1 %v21208_v30  ;;  %11184 = vmatmul.mubr.f32.vlgmr.msra.gmra.mrb[20].mxu0 %v21208_v30 }
 0xb46   : > { %17781 = vmatpush1.bf16.msra.mxu1 %v20888_v28  ;;  %17829 = vmatpush1.bf16.msra.mxu0 %v20890_v25 }
 0xb47   : > { %17783 = vmatprep.subr.bf16.mxu1 %v20892_v16  ;;  %17831 = vmatprep.subr.bf16.mxu0 %v20914_v21 }
 0xb48   : > { %10719 = vmatprep.mubr.f32.mxu1 %v22050_v56  ;;  %11262 = vmatprep.mubr.f32.mxu0 %v22050_v56 }
 0xb4a   : > { %17785 = vmatpush1.bf16.msra.mxu1 %v20974_v22  ;;  %17833 = vmatpush1.bf16.msra.mxu0 %v20991_v51 }
 0xb4b   : > { %17835 = vmatprep.subr.bf16.mxu1 %v20749_v43  ;;  %17859 = vmatprep.subr.bf16.mxu0 %v20751_v10 }
 0xb4d   : > { %10721 = vmatmul.mubr.f32.vlgmr.msra.gmra.mrb[28].mxu1 %v21208_v30  ;;  %11264 = vmatmul.mubr.f32.vlgmr.msra.gmra.mrb[20].mxu0 %v21208_v30  ;;  %v12334_v30 = vsub.f32 %v12258_v38, %v21320_v29 }
 0xb4e   : > { %17837 = vmatpush1.bf16.msra.mxu1 %v20753_v61  ;;  %17861 = vmatpush1.bf16.msra.mxu0 %v20756_v62 }
 0xb4f   : > { %11342 = vmatprep.mubr.f32.mxu1 %v22050_v56  ;;  %11833 = vmatprep.mubr.f32.mxu0 %v22050_v56  ;;  %v12335_v55 = vand.u32 4294901760, %v12334_v30 }
 0xb50   : > { %17839 = vmatprep.subr.bf16.mxu1 %v20761_v19  ;;  %17863 = vmatprep.subr.bf16.mxu0 %v20763_v31 }
 0xb51   : > { %11348 = vmatmul.mubr.f32.vlgmr.msra.gmra.mrb[30].mxu1 %v11347_v8  ;;  %11839 = vmatmul.mubr.f32.vlgmr.msra.gmra.mrb[22].mxu0 %v11347_v8  ;;  %v12336_v50 = vsub.f32 %v12334_v30, %v12335_v55 }
 0xb52   : > { %17841 = vmatpush1.bf16.msra.mxu1 %v20766_v48  ;;  %17865 = vmatpush1.bf16.msra.mxu0 %v20769_v13 }
 0xb53   : > { %11438 = vmatprep.mubr.f32.mxu1 %v22050_v56  ;;  %11929 = vmatprep.mubr.f32.mxu0 %v22050_v56  ;;  %v12337_v33 = vand.u32 4294901760, %v12336_v50 }
 0xb54   : > { %17843 = vmatprep.subr.bf16.mxu1 %v20771_v4  ;;  %17867 = vmatprep.subr.bf16.mxu0 %v20773_v46 }
 0xb59   : > { %11440 = vmatmul.mubr.f32.vlgmr.msra.gmra.mrb[30].mxu1 %v21262_v27  ;;  %11931 = vmatmul.mubr.f32.vlgmr.msra.gmra.mrb[22].mxu0 %v21262_v27 }
 0xb5a   : > { %17845 = vmatpush1.bf16.msra.mxu1 %v20775_v7  ;;  %17869 = vmatpush1.bf16.msra.mxu0 %v20777_v58 }
 0xb5b   : > { %11518 = vmatprep.mubr.f32.mxu1 %v22050_v56  ;;  %12009 = vmatprep.mubr.f32.mxu0 %v22050_v56 }
 0xb5c   : > { %17847 = vmatprep.subr.bf16.mxu1 %v20749_v43  ;;  %17871 = vmatprep.subr.bf16.mxu0 %v20751_v10 }
 0xb61   : > { %11521 = vmatmul.mubr.f32.vlgmr.msra.gmra.mrb[30].mxu1 %v11344_v59  ;;  %12012 = vmatmul.mubr.f32.vlgmr.msra.gmra.mrb[22].mxu0 %v11344_v59 }
 0xb62   : > { %17849 = vmatpush1.bf16.msra.mxu1 %v20753_v61  ;;  %17873 = vmatpush1.bf16.msra.mxu0 %v20756_v62 }
 0xb63   : > { %11595 = vmatprep.mubr.f32.mxu1 %v22050_v56  ;;  %12086 = vmatprep.mubr.f32.mxu0 %v22050_v56 }
 0xb64   : > { %17851 = vmatprep.subr.bf16.mxu1 %v22076_v39  ;;  %17875 = vmatprep.subr.bf16.mxu0 %v22077_v2 }
 0xb69   : > { %11599 = vmatmul.mubr.f32.vlgmr.msra.gmra.mrb[30].mxu1 %v11345_v37  ;;  %12090 = vmatmul.mubr.f32.vlgmr.msra.gmra.mrb[22].mxu0 %v11345_v37 }
 0xb6a   : > { %17853 = vmatpush1.bf16.msra.mxu1 %v22078_v18  ;;  %17877 = vmatpush1.bf16.msra.mxu0 %v22079_v42 }
 0xb6b   : > { %11681 = vmatprep.mubr.f32.mxu1 %v22050_v56  ;;  %12172 = vmatprep.mubr.f32.mxu0 %v22050_v56 }
 0xb6c   : > { %17855 = vmatprep.subr.bf16.mxu1 %v20749_v43  ;;  %17879 = vmatprep.subr.bf16.mxu0 %v20751_v10 }
 0xb71   : > { %11683 = vmatmul.mubr.f32.vlgmr.msra.gmra.mrb[30].mxu1 %v21262_v27  ;;  %12174 = vmatmul.mubr.f32.vlgmr.msra.gmra.mrb[22].mxu0 %v21262_v27 }
 0xb72   : > { %17857 = vmatpush1.bf16.msra.mxu1 %v20753_v61  ;;  %17881 = vmatpush1.bf16.msra.mxu0 %v20756_v62 }
 0xb73   : > { %11757 = vmatprep.mubr.f32.mxu1 %v22050_v56  ;;  %12248 = vmatprep.mubr.f32.mxu0 %v22050_v56 }
 0xb74   : > { %17883 = vmatprep.subr.bf16.mxu1 %v20872_v5  ;;  %17931 = vmatprep.subr.bf16.mxu0 %v20880_v14 }
 0xb79   : > { %11759 = vmatmul.mubr.f32.vlgmr.msra.gmra.mrb[30].mxu1 %v21262_v27  ;;  %12250 = vmatmul.mubr.f32.vlgmr.msra.gmra.mrb[22].mxu0 %v21262_v27  ;;  %v13420_v27 = vsub.f32 %v13348_v23, %v21378_v54 }
 0xb7a   : > { %17885 = vmatpush1.bf16.msra.mxu1 %v20888_v28  ;;  %17933 = vmatpush1.bf16.msra.mxu0 %v20890_v25 }
 0xb7b   : > { %17887 = vmatprep.subr.bf16.mxu1 %v20892_v16  ;;  %17935 = vmatprep.subr.bf16.mxu0 %v20914_v21  ;;  %v13421_v59 = vand.u32 4294901760, %v13420_v27 }
 0xb7c   : > { %12332 = vmatprep.mubr.f32.mxu1 %v22050_v56  ;;  %12875 = vmatprep.mubr.f32.mxu0 %v22050_v56 }
 0xb7d   : > { %v13422_v37 = vsub.f32 %v13420_v27, %v13421_v59 }
 0xb7e   : > { %17889 = vmatpush1.bf16.msra.mxu1 %v20974_v22  ;;  %17937 = vmatpush1.bf16.msra.mxu0 %v20991_v51 }
 0xb7f   : > { %17891 = vmatprep.subr.bf16.mxu1 %v20993_v34  ;;  %17939 = vmatprep.subr.bf16.mxu0 %v20997_v12  ;;  %v13423_v35 = vand.u32 4294901760, %v13422_v37 }
 0xb81   : > { %12338 = vmatmul.mubr.f32.vlgmr.msra.gmra.mrb[30].mxu1 %v12337_v33  ;;  %12881 = vmatmul.mubr.f32.vlgmr.msra.gmra.mrb[22].mxu0 %v12337_v33 }
 0xb82   : > { %17893 = vmatpush1.bf16.msra.mxu1 %v21017_v49  ;;  %17941 = vmatpush1.bf16.msra.mxu0 %v21019_v36 }
 0xb83   : > { %17895 = vmatprep.subr.bf16.mxu1 %v21028_v9  ;;  %17943 = vmatprep.subr.bf16.mxu0 %v21030_v53 }
 0xb84   : > { %12448 = vmatprep.mubr.f32.mxu1 %v22050_v56  ;;  %12991 = vmatprep.mubr.f32.mxu0 %v22050_v56 }
 0xb86   : > { %17897 = vmatpush1.bf16.msra.mxu1 %v21034_v24  ;;  %17945 = vmatpush1.bf16.msra.mxu0 %v21036_v60 }
 0xb87   : > { %17899 = vmatprep.subr.bf16.mxu1 %v21042_v3  ;;  %17947 = vmatprep.subr.bf16.mxu0 %v21046_v20 }
 0xb89   : > { %12450 = vmatmul.mubr.f32.vlgmr.msra.gmra.mrb[30].mxu1 %v21320_v29  ;;  %12993 = vmatmul.mubr.f32.vlgmr.msra.gmra.mrb[22].mxu0 %v21320_v29 }
 0xb8a   : > { %17901 = vmatpush1.bf16.msra.mxu1 %v21054_v47  ;;  %17949 = vmatpush1.bf16.msra.mxu0 %v21058_v40 }
 0xb8b   : > { %17903 = vmatprep.subr.bf16.mxu1 %v21064_v11  ;;  %17951 = vmatprep.subr.bf16.mxu0 %v21068_v52 }
 0xb8c   : > { %12536 = vmatprep.mubr.f32.mxu1 %v22050_v56  ;;  %13079 = vmatprep.mubr.f32.mxu0 %v22050_v56 }
 0xb8e   : > { %17905 = vmatpush1.bf16.msra.mxu1 %v21076_v0  ;;  %17953 = vmatpush1.bf16.msra.mxu0 %v21080_v44 }
 0xb8f   : > { %17907 = vmatprep.subr.bf16.mxu1 %v20872_v5  ;;  %17955 = vmatprep.subr.bf16.mxu0 %v20880_v14 }
 0xb91   : > { %12539 = vmatmul.mubr.f32.vlgmr.msra.gmra.mrb[30].mxu1 %v12334_v30  ;;  %13082 = vmatmul.mubr.f32.vlgmr.msra.gmra.mrb[22].mxu0 %v12334_v30 }
 0xb92   : > { %17909 = vmatpush1.bf16.msra.mxu1 %v20888_v28  ;;  %17957 = vmatpush1.bf16.msra.mxu0 %v20890_v25 }
 0xb93   : > { %17911 = vmatprep.subr.bf16.mxu1 %v20892_v16  ;;  %17959 = vmatprep.subr.bf16.mxu0 %v20914_v21 }
 0xb94   : > { %12617 = vmatprep.mubr.f32.mxu1 %v22050_v56  ;;  %13160 = vmatprep.mubr.f32.mxu0 %v22050_v56 }
 0xb96   : > { %17913 = vmatpush1.bf16.msra.mxu1 %v20974_v22  ;;  %17961 = vmatpush1.bf16.msra.mxu0 %v20991_v51 }
 0xb97   : > { %17915 = vmatprep.subr.bf16.mxu1 %v21100_v1  ;;  %17963 = vmatprep.subr.bf16.mxu0 %v21106_v26 }
 0xb99   : > { %12621 = vmatmul.mubr.f32.vlgmr.msra.gmra.mrb[30].mxu1 %v12335_v55  ;;  %13164 = vmatmul.mubr.f32.vlgmr.msra.gmra.mrb[22].mxu0 %v12335_v55 }
 0xb9a   : > { %17917 = vmatpush1.bf16.msra.mxu1 %v21116_v6  ;;  %17965 = vmatpush1.bf16.msra.mxu0 %v21122_v45 }
 0xb9b   : > { %17919 = vmatprep.subr.bf16.mxu1 %v21130_v63  ;;  %17967 = vmatprep.subr.bf16.mxu0 %v21136_v41 }
 0xb9c   : > { %12715 = vmatprep.mubr.f32.mxu1 %v22050_v56  ;;  %13258 = vmatprep.mubr.f32.mxu0 %v22050_v56 }
 0xb9e   : > { %17921 = vmatpush1.bf16.msra.mxu1 %v21146_v57  ;;  %17969 = vmatpush1.bf16.msra.mxu0 %v21152_v17 }
 0xb9f   : > { %17923 = vmatprep.subr.bf16.mxu1 %v20872_v5  ;;  %17971 = vmatprep.subr.bf16.mxu0 %v20880_v14 }
 0xba1   : > { %12717 = vmatmul.mubr.f32.vlgmr.msra.gmra.mrb[30].mxu1 %v21320_v29  ;;  %13260 = vmatmul.mubr.f32.vlgmr.msra.gmra.mrb[22].mxu0 %v21320_v29 }
 0xba2   : > { %17925 = vmatpush1.bf16.msra.mxu1 %v20888_v28  ;;  %17973 = vmatpush1.bf16.msra.mxu0 %v20890_v25 }
 0xba3   : > { %17927 = vmatprep.subr.bf16.mxu1 %v20892_v16  ;;  %17975 = vmatprep.subr.bf16.mxu0 %v20914_v21 }
 0xba4   : > { %12795 = vmatprep.mubr.f32.mxu1 %v22050_v56  ;;  %13338 = vmatprep.mubr.f32.mxu0 %v22050_v56 }
 0xba6   : > { %17929 = vmatpush1.bf16.msra.mxu1 %v20974_v22  ;;  %17977 = vmatpush1.bf16.msra.mxu0 %v20991_v51 }
 0xba7   : > { %17979 = vmatprep.subr.bf16.mxu1 %v20749_v43  ;;  %18003 = vmatprep.subr.bf16.mxu0 %v20751_v10 }
 0xba9   : > { %12797 = vmatmul.mubr.f32.vlgmr.msra.gmra.mrb[30].mxu1 %v21320_v29  ;;  %13340 = vmatmul.mubr.f32.vlgmr.msra.gmra.mrb[22].mxu0 %v21320_v29 }
 0xbaa   : > { %17981 = vmatpush1.bf16.msra.mxu1 %v20753_v61  ;;  %18005 = vmatpush1.bf16.msra.mxu0 %v20756_v62 }
 0xbab   : > { %13418 = vmatprep.mubr.f32.mxu1 %v22050_v56  ;;  %13909 = vmatprep.mubr.f32.mxu0 %v22050_v56 }
 0xbac   : > { %17983 = vmatprep.subr.bf16.mxu1 %v20761_v19  ;;  %18007 = vmatprep.subr.bf16.mxu0 %v20763_v31  ;;  %v14333_v19 = vpop.permute.xlu0 %14332 }
 0xbad   : > { %v21409_v8 = vpop.f32.mrb[26].mxu1  ;;  %v21411_v15 = vpop.f32.mrb[18].mxu0  ;;  %13424 = vmatmul.mubr.f32.vlgmr.msra.gmra.mrb[32].mxu1 %v13423_v35  ;;  %13915 = vmatmul.mubr.f32.vlgmr.msra.gmra.mrb[24].mxu0 %v13423_v35  ;;  %v14334_v31 = vsel %vm2588_vm2, %v14333_v19, 0 }
 0xbae   : > { %v21413_v38 = vpop.f32.mrb[27].mxu1  ;;  %v21415_v29 = vpop.f32.mrb[19].mxu0  ;;  %17985 = vmatpush1.bf16.msra.mxu1 %v20766_v48  ;;  %18009 = vmatpush1.bf16.msra.mxu0 %v20769_v13  ;;  %v21444_v48 = vand.u32 4294901760, %v14334_v31 }
 0xbaf   : > { %13514 = vmatprep.mubr.f32.mxu1 %v22050_v56  ;;  %14005 = vmatprep.mubr.f32.mxu0 %v22050_v56 }
 0xbb0   : > { %17987 = vmatprep.subr.bf16.mxu1 %v20771_v4  ;;  %18011 = vmatprep.subr.bf16.mxu0 %v20773_v46  ;;  %v14410_v13 = vsub.f32 %v14334_v31, %v21444_v48 }
 0xbb5   : > { %13516 = vmatmul.mubr.f32.vlgmr.msra.gmra.mrb[32].mxu1 %v21378_v54  ;;  %14007 = vmatmul.mubr.f32.vlgmr.msra.gmra.mrb[24].mxu0 %v21378_v54 }
 0xbb6   : > { %17989 = vmatpush1.bf16.msra.mxu1 %v20775_v7  ;;  %18013 = vmatpush1.bf16.msra.mxu0 %v20777_v58 }
 0xbb7   : > { %13594 = vmatprep.mubr.f32.mxu1 %v22050_v56  ;;  %14085 = vmatprep.mubr.f32.mxu0 %v22050_v56 }
 0xbb8   : > { %17991 = vmatprep.subr.bf16.mxu1 %v20749_v43  ;;  %18015 = vmatprep.subr.bf16.mxu0 %v20751_v10 }
 0xbbd   : > { %13597 = vmatmul.mubr.f32.vlgmr.msra.gmra.mrb[32].mxu1 %v13420_v27  ;;  %14088 = vmatmul.mubr.f32.vlgmr.msra.gmra.mrb[24].mxu0 %v13420_v27 }
 0xbbe   : > { %17993 = vmatpush1.bf16.msra.mxu1 %v20753_v61  ;;  %18017 = vmatpush1.bf16.msra.mxu0 %v20756_v62 }
 0xbbf   : > { %13671 = vmatprep.mubr.f32.mxu1 %v22050_v56  ;;  %14162 = vmatprep.mubr.f32.mxu0 %v22050_v56 }
 0xbc0   : > { %17995 = vmatprep.subr.bf16.mxu1 %v22076_v39  ;;  %18019 = vmatprep.subr.bf16.mxu0 %v22077_v2 }
 0xbc5   : > { %13675 = vmatmul.mubr.f32.vlgmr.msra.gmra.mrb[32].mxu1 %v13421_v59  ;;  %14166 = vmatmul.mubr.f32.vlgmr.msra.gmra.mrb[24].mxu0 %v13421_v59 }
 0xbc6   : > { %17997 = vmatpush1.bf16.msra.mxu1 %v22078_v18  ;;  %18021 = vmatpush1.bf16.msra.mxu0 %v22079_v42 }
 0xbc7   : > { %13757 = vmatprep.mubr.f32.mxu1 %v22050_v56  ;;  %14248 = vmatprep.mubr.f32.mxu0 %v22050_v56 }
 0xbc8   : > { %17999 = vmatprep.subr.bf16.mxu1 %v20749_v43  ;;  %18023 = vmatprep.subr.bf16.mxu0 %v20751_v10  ;;  %v14411_v43 = vand.u32 4294901760, %v14410_v13 }
 0xbca   : > { %v14412_v10 = vsub.f32 %v14410_v13, %v14411_v43 }
 0xbcd   : > { %13759 = vmatmul.mubr.f32.vlgmr.msra.gmra.mrb[32].mxu1 %v21378_v54  ;;  %14250 = vmatmul.mubr.f32.vlgmr.msra.gmra.mrb[24].mxu0 %v21378_v54 }
 0xbce   : > { %18001 = vmatpush1.bf16.msra.mxu1 %v20753_v61  ;;  %18025 = vmatpush1.bf16.msra.mxu0 %v20756_v62  ;;  %v14413_v61 = vand.u32 4294901760, %v14412_v10 }
 0xbcf   : > { %13833 = vmatprep.mubr.f32.mxu1 %v22050_v56  ;;  %14324 = vmatprep.mubr.f32.mxu0 %v22050_v56 }
 0xbd0   : > { %18027 = vmatprep.subr.bf16.mxu1 %v20872_v5  ;;  %18075 = vmatprep.subr.bf16.mxu0 %v20880_v14 }
 0xbd5   : > { %13835 = vmatmul.mubr.f32.vlgmr.msra.gmra.mrb[32].mxu1 %v21378_v54  ;;  %14326 = vmatmul.mubr.f32.vlgmr.msra.gmra.mrb[24].mxu0 %v21378_v54 }
 0xbd6   : > { %18029 = vmatpush1.bf16.msra.mxu1 %v20888_v28  ;;  %18077 = vmatpush1.bf16.msra.mxu0 %v20890_v25 }
 0xbd7   : > { %18031 = vmatprep.subr.bf16.mxu1 %v20892_v16  ;;  %18079 = vmatprep.subr.bf16.mxu0 %v20914_v21 }
 0xbd8   : > { %14408 = vmatprep.mubr.f32.mxu1 %v22050_v56  ;;  %14951 = vmatprep.mubr.f32.mxu0 %v22050_v56 }
 0xbda   : > { %18033 = vmatpush1.bf16.msra.mxu1 %v20974_v22  ;;  %18081 = vmatpush1.bf16.msra.mxu0 %v20991_v51 }
 0xbdb   : > { %18035 = vmatprep.subr.bf16.mxu1 %v20993_v34  ;;  %18083 = vmatprep.subr.bf16.mxu0 %v20997_v12 }
 0xbdd   : > { %14414 = vmatmul.mubr.f32.vlgmr.msra.gmra.mrb[32].mxu1 %v14413_v61  ;;  %14957 = vmatmul.mubr.f32.vlgmr.msra.gmra.mrb[24].mxu0 %v14413_v61 }
 0xbde   : > { %18037 = vmatpush1.bf16.msra.mxu1 %v21017_v49  ;;  %18085 = vmatpush1.bf16.msra.mxu0 %v21019_v36 }
 0xbdf   : > { %18039 = vmatprep.subr.bf16.mxu1 %v21028_v9  ;;  %18087 = vmatprep.subr.bf16.mxu0 %v21030_v53 }
 0xbe0   : > { %14524 = vmatprep.mubr.f32.mxu1 %v22050_v56  ;;  %15067 = vmatprep.mubr.f32.mxu0 %v22050_v56 }
 0xbe2   : > { %18041 = vmatpush1.bf16.msra.mxu1 %v21034_v24  ;;  %18089 = vmatpush1.bf16.msra.mxu0 %v21036_v60 }
 0xbe3   : > { %18043 = vmatprep.subr.bf16.mxu1 %v21042_v3  ;;  %18091 = vmatprep.subr.bf16.mxu0 %v21046_v20 }
 0xbe5   : > { %14526 = vmatmul.mubr.f32.vlgmr.msra.gmra.mrb[32].mxu1 %v21444_v48  ;;  %15069 = vmatmul.mubr.f32.vlgmr.msra.gmra.mrb[24].mxu0 %v21444_v48 }
 0xbe6   : > { %18045 = vmatpush1.bf16.msra.mxu1 %v21054_v47  ;;  %18093 = vmatpush1.bf16.msra.mxu0 %v21058_v40 }
 0xbe7   : > { %18047 = vmatprep.subr.bf16.mxu1 %v21064_v11  ;;  %18095 = vmatprep.subr.bf16.mxu0 %v21068_v52 }
 0xbe8   : > { %14612 = vmatprep.mubr.f32.mxu1 %v22050_v56  ;;  %15155 = vmatprep.mubr.f32.mxu0 %v22050_v56 }
 0xbea   : > { %18049 = vmatpush1.bf16.msra.mxu1 %v21076_v0  ;;  %18097 = vmatpush1.bf16.msra.mxu0 %v21080_v44 }
 0xbeb   : > { %18051 = vmatprep.subr.bf16.mxu1 %v20872_v5  ;;  %18099 = vmatprep.subr.bf16.mxu0 %v20880_v14 }
 0xbed   : > { %14615 = vmatmul.mubr.f32.vlgmr.msra.gmra.mrb[32].mxu1 %v14410_v13  ;;  %15158 = vmatmul.mubr.f32.vlgmr.msra.gmra.mrb[24].mxu0 %v14410_v13 }
 0xbee   : > { %18053 = vmatpush1.bf16.msra.mxu1 %v20888_v28  ;;  %18101 = vmatpush1.bf16.msra.mxu0 %v20890_v25 }
 0xbef   : > { %18055 = vmatprep.subr.bf16.mxu1 %v20892_v16  ;;  %18103 = vmatprep.subr.bf16.mxu0 %v20914_v21 }
 0xbf0   : > { %14693 = vmatprep.mubr.f32.mxu1 %v22050_v56  ;;  %15236 = vmatprep.mubr.f32.mxu0 %v22050_v56 }
 0xbf2   : > { %18057 = vmatpush1.bf16.msra.mxu1 %v20974_v22  ;;  %18105 = vmatpush1.bf16.msra.mxu0 %v20991_v51 }
 0xbf3   : > { %18059 = vmatprep.subr.bf16.mxu1 %v21100_v1  ;;  %18107 = vmatprep.subr.bf16.mxu0 %v21106_v26 }
 0xbf5   : > { %14697 = vmatmul.mubr.f32.vlgmr.msra.gmra.mrb[32].mxu1 %v14411_v43  ;;  %15240 = vmatmul.mubr.f32.vlgmr.msra.gmra.mrb[24].mxu0 %v14411_v43 }
 0xbf6   : > { %18061 = vmatpush1.bf16.msra.mxu1 %v21116_v6  ;;  %18109 = vmatpush1.bf16.msra.mxu0 %v21122_v45 }
 0xbf7   : > { %18063 = vmatprep.subr.bf16.mxu1 %v21130_v63  ;;  %18111 = vmatprep.subr.bf16.mxu0 %v21136_v41 }
 0xbf8   : > { %14791 = vmatprep.mubr.f32.mxu1 %v22050_v56  ;;  %15334 = vmatprep.mubr.f32.mxu0 %v22050_v56 }
 0xbfa   : > { %18065 = vmatpush1.bf16.msra.mxu1 %v21146_v57  ;;  %18113 = vmatpush1.bf16.msra.mxu0 %v21152_v17 }
 0xbfb   : > { %18067 = vmatprep.subr.bf16.mxu1 %v20872_v5  ;;  %18115 = vmatprep.subr.bf16.mxu0 %v20880_v14 }
 0xbfd   : > { %14793 = vmatmul.mubr.f32.vlgmr.msra.gmra.mrb[32].mxu1 %v21444_v48  ;;  %15336 = vmatmul.mubr.f32.vlgmr.msra.gmra.mrb[24].mxu0 %v21444_v48 }
 0xbfe   : > { %18069 = vmatpush1.bf16.msra.mxu1 %v20888_v28  ;;  %18117 = vmatpush1.bf16.msra.mxu0 %v20890_v25 }
 0xbff   : > { %18071 = vmatprep.subr.bf16.mxu1 %v20892_v16  ;;  %18119 = vmatprep.subr.bf16.mxu0 %v20914_v21 }
 0xc00   : > { %14871 = vmatprep.mubr.f32.mxu1 %v22050_v56  ;;  %15414 = vmatprep.mubr.f32.mxu0 %v22050_v56 }
 0xc02   : > { %18073 = vmatpush1.bf16.msra.mxu1 %v20974_v22  ;;  %18121 = vmatpush1.bf16.msra.mxu0 %v20991_v51 }
 0xc05   : > { %14873 = vmatmul.mubr.f32.vlgmr.msra.gmra.mrb[32].mxu1 %v21444_v48  ;;  %15416 = vmatmul.mubr.f32.vlgmr.msra.gmra.mrb[24].mxu0 %v21444_v48 }
 0xc20   : > { %v10722_v62 = vpop.f32.mrb[28].mxu1  ;;  %v11265_v4 = vpop.f32.mrb[20].mxu0 }
 0xc21   : > { %v15426_v46 = vrot.slane %v10722_v62, 7  ;;  %v15428_v7 = vrot.slane %v11265_v4, 7  ;;  %v10724_v58 = vpop.f32.mrb[29].mxu1  ;;  %v11267_v5 = vpop.f32.mrb[21].mxu0 }
 0xc22   : > { %v15427_v14 = vrot.slane %v10724_v58, 7  ;;  %v15429_v28 = vrot.slane %v11267_v5, 7 }
 0xc23   : > { %v15459_v25 = vsel %vm15458_vm11, %v21409_v8, %v15426_v46  ;;  %v15461_v16 = vsel %vm15458_vm11, %v21411_v15, %v15428_v7 }
 0xc24   : > { %v15460_v21 = vsel %vm15458_vm11, %v21413_v38, %v15427_v14  ;;  %v15462_v34 = vsel %vm15458_vm11, %v21415_v29, %v15429_v28 }
 0xc7c   : > { %v12798_v56 = vpop.f32.mrb[30].mxu1  ;;  %v13341_v51 = vpop.f32.mrb[22].mxu0 }
 0xc7d   : > { %v15438_v22 = vrot.slane %v12798_v56, 6  ;;  %v15440_v12 = vrot.slane %v13341_v51, 6  ;;  %v12800_v49 = vpop.f32.mrb[31].mxu1  ;;  %v13343_v36 = vpop.f32.mrb[23].mxu0 }
 0xc7e   : > { %v15439_v9 = vrot.slane %v12800_v49, 6  ;;  %v15441_v53 = vrot.slane %v13343_v36, 6 }
 0xc7f   : > { %v15464_v24 = vsel %vm15463_vm12, %v15459_v25, %v15438_v22  ;;  %v15466_v60 = vsel %vm15463_vm12, %v15461_v16, %v15440_v12 }
 0xc80   : > { %v15465_v3 = vsel %vm15463_vm12, %v15460_v21, %v15439_v9  ;;  %v15467_v20 = vsel %vm15463_vm12, %v15462_v34, %v15441_v53 }
 0xcd8   : > { %v14874_v47 = vpop.f32.mrb[32].mxu1  ;;  %v15417_v40 = vpop.f32.mrb[24].mxu0 }
 0xcd9   : > { %v15450_v11 = vrot.slane %v14874_v47, 5  ;;  %v15452_v52 = vrot.slane %v15417_v40, 5  ;;  %v14876_v0 = vpop.f32.mrb[33].mxu1  ;;  %v15419_v44 = vpop.f32.mrb[25].mxu0 }
 0xcda   : > { %v15451_v1 = vrot.slane %v14876_v0, 5  ;;  %v15453_v26 = vrot.slane %v15419_v44, 5 }
 0xcdb   : > { %v15469_v6 = vsel %vm15468_vm13, %v15464_v24, %v15450_v11  ;;  %v15471_v45 = vsel %vm15468_vm13, %v15466_v60, %v15452_v52 }
 0xcdc   : > { %v15473_v63 = vsel %vm766_vm0, %v15469_v6, -inf  ;;  %v15487_v41 = vsel %vm766_vm0, %v15471_v45, -inf  ;;  %v15470_v57 = vsel %vm15468_vm13, %v15465_v3, %v15451_v1  ;;  %v15472_v17 = vsel %vm15468_vm13, %v15467_v20, %v15453_v26 }
 0xcdd   : > { %v15474_v39 = vrot.slane %v15473_v63, 4  ;;  %v15488_v2 = vrot.slane %v15487_v41, 4  ;;  %v15480_v18 = vsel %vm766_vm0, %v15470_v57, -inf  ;;  %v15494_v42 = vsel %vm766_vm0, %v15472_v17, -inf }
 0xcde   : > { %v15481_v30 = vrot.slane %v15480_v18, 4  ;;  %v15495_v55 = vrot.slane %v15494_v42, 4 }
 0xcdf   : > { %v15475_v50 = vmax.f32 %v15473_v63, %v15474_v39  ;;  %v15489_v33 = vmax.f32 %v15487_v41, %v15488_v2 }
 0xce0   : > { %v15482_v32 = vmax.f32 %v15480_v18, %v15481_v30  ;;  %v15496_v23 = vmax.f32 %v15494_v42, %v15495_v55 }
 0xce1   : > { %v15476_v54 = vrot.slane %v15475_v50, 2  ;;  %v15490_v27 = vrot.slane %v15489_v33, 2 }
 0xce2   : > { %v15483_v59 = vrot.slane %v15482_v32, 2  ;;  %v15497_v37 = vrot.slane %v15496_v23, 2 }
 0xce3   : > { %v15477_v35 = vmax.f32 %v15475_v50, %v15476_v54  ;;  %v15491_v8 = vmax.f32 %v15489_v33, %v15490_v27 }
 0xce4   : > { %v15484_v15 = vmax.f32 %v15482_v32, %v15483_v59  ;;  %v15498_v38 = vmax.f32 %v15496_v23, %v15497_v37 }
 0xce5   : > { %v15478_v29 = vrot.slane %v15477_v35, 1  ;;  %v15492_v19 = vrot.slane %v15491_v8, 1 }
 0xce6   : > { %v15485_v31 = vrot.slane %v15484_v15, 1  ;;  %v15499_v48 = vrot.slane %v15498_v38, 1 }
 0xce7   : > { %v15479_v13 = vmax.f32 %v15477_v35, %v15478_v29  ;;  %v15493_v43 = vmax.f32 %v15491_v8, %v15492_v19 }
 0xce8   : > { %v15486_v10 = vmax.f32 %v15484_v15, %v15485_v31  ;;  %v15500_v61 = vmax.f32 %v15498_v38, %v15499_v48 }
 0xce9   : > { %v15501_v62 = vsub.f32 %v15469_v6, %v15479_v13  ;;  %v15503_v4 = vsub.f32 %v15471_v45, %v15493_v43 }
 0xcea   : > { %v15502_v46 = vsub.f32 %v15470_v57, %v15486_v10  ;;  %v15504_v7 = vsub.f32 %v15472_v17, %v15500_v61 }
 0xceb   : > { %v15505_v58 = vmul.f32 1.442695, %v15501_v62  ;;  %v15509_v5 = vmul.f32 1.442695, %v15503_v4 }
 0xcec   : > { %v15507_v14 = vmul.f32 1.442695, %v15502_v46  ;;  %v15511_v28 = vmul.f32 1.442695, %v15504_v7  ;;  %v18499_v46 = vld [vmem:[%s19043_s4] sm:$0xff] }
 0xced   : > { %18483 = vpow2.f32 %v15505_v58  ;;  %v18500_v58 = vld [vmem:[%s19043_s4 + $0x8] sm:$0xff]  ;;  %s745_s4 = sand.u32 1, %s18555_s28  }
 0xcee   : > { %18485 = vpow2.f32 %v15509_v5  ;;  %s15733_s8 = sshll.u32 %s745_s4, 2  ;;  %s15644_s29 = scalar_lea.sflag [#allocation4], %s745_s4 }
 0xcef   : > { %18487 = vpow2.f32 %v15507_v14  ;;  %s747_s30 = scalar_lea.vmem [#allocation3], %s15733_s8  ;;  %s18507_s8 = scalar_lea.vmem %s18506_s7, 128 }
 0xcf0   : > { %18489 = vpow2.f32 %v15511_v28  ;;  %s15658_s5 = sshll.u32 %s747_s30, 4  ;;  %s21548_s5 = int_to_ptr.vmem [resolvable:$true] %s15658_s5 }
 0xcf1   : > { %s18501_s3 = scalar_lea.vmem %s21548_s5, 64  ;;  %p18508_p0 = scmp.lt.s32.totalorder %s21548_s5, %s18506_s7 }
 0xcf2   : > { %p18502_p11 = scmp.ne.s32.totalorder %s21548_s5, %s18501_s3  ;;  %p18509_p1 = scmp.lt.s32.totalorder %s18507_s8, %s18501_s3 }
 0xcf4   : > { %p18503_p12 = pnand %p18502_p11, %p18752_p5  ;;  %p18510_p2 = por %p18509_p1, %p18508_p0 }
 0xcf6   : > { %p18504_p13 = pneg %p18503_p12 }
 0xcf7   : > { %v18484_v25 = vpop.eup %18483 }
 0xcf8   : > { %v18486_v16 = vpop.eup %18485  ;;  %v15513_v21 = vsel %vm766_vm0, %v18484_v25, 0.0  ;;  %p18511_p3 = pnand %p18510_p2, %p18504_p13 }
 0xcf9   : > { %v18488_v34 = vpop.eup %18487  ;;  %v15514_v56 = vrot.slane %v15513_v21, 4  ;;  %v15527_v51 = vsel %vm766_vm0, %v18486_v16, 0.0 }
 0xcfa   : > { %v18490_v22 = vpop.eup %18489  ;;  %v15528_v12 = vrot.slane %v15527_v51, 4  ;;  %v15520_v49 = vsel %vm766_vm0, %v18488_v34, 0.0 }
 0xcfb   : > { %v15515_v36 = vadd.f32 %v15514_v56, %v15513_v21  ;;  %v15521_v9 = vrot.slane %v15520_v49, 4  ;;  %v15534_v53 = vsel %vm766_vm0, %v18490_v22, 0.0 }
 0xcfc   : > { %v15529_v24 = vadd.f32 %v15528_v12, %v15527_v51  ;;  %v15535_v60 = vrot.slane %v15534_v53, 4 }
 0xcfd   : > { %v15516_v3 = vrot.slane %v15515_v36, 2  ;;  %v15522_v20 = vadd.f32 %v15521_v9, %v15520_v49  ;;  %v18584_v9 = vmov 1966171168  }
 0xcfe   : > { %v15530_v47 = vrot.slane %v15529_v24, 2  ;;  %v15536_v40 = vadd.f32 %v15535_v60, %v15534_v53  ;;  %v15616_v53 = vunpack.c.l.s4 %v18584_v9 }
 0xcff   : > { %v15517_v11 = vadd.f32 %v15516_v3, %v15515_v36  ;;  %v15523_v52 = vrot.slane %v15522_v20, 2 }
 0xd00   : > { %v15531_v0 = vadd.f32 %v15530_v47, %v15529_v24  ;;  %v15537_v44 = vrot.slane %v15536_v40, 2 }
 0xd01   : > { %v15518_v1 = vrot.slane %v15517_v11, 1  ;;  %v15524_v26 = vadd.f32 %v15523_v52, %v15522_v20 }
 0xd02   : > { %v15532_v6 = vrot.slane %v15531_v0, 1  ;;  %v15538_v45 = vadd.f32 %v15537_v44, %v15536_v40 }
 0xd03   : > { %v15519_v63 = vadd.f32 %v15518_v1, %v15517_v11  ;;  %v15525_v41 = vrot.slane %v15524_v26, 1 }
 0xd04   : > { %v15533_v57 = vadd.f32 %v15532_v6, %v15531_v0  ;;  %v15539_v17 = vrot.slane %v15538_v45, 1  ;;  %v15617_v0 = vunpack.c.0.s8 %v15616_v53 }
 0xd05   : > { %18491 = vrcp.f32 %v15519_v63  ;;  %v15526_v39 = vadd.f32 %v15525_v41, %v15524_v26  ;;  %v22080_v41 = vld [vmem:[#allocation26_spill] sm:$0xff] }
 0xd06   : > { %18493 = vrcp.f32 %v15533_v57  ;;  %v15540_v2 = vadd.f32 %v15539_v17, %v15538_v45 }
 0xd07   : > { %18495 = vrcp.f32 %v15526_v39 }
 0xd08   : > { %18497 = vrcp.f32 %v15540_v2 }
 0xd0f   : > { %v18492_v18 = vpop.eup %18491 }
 0xd10   : > { %v18494_v42 = vpop.eup %18493  ;;  %v15545_v30 = vmul.f32 %v18492_v18, %v15519_v63 }
 0xd11   : > { %v18496_v55 = vpop.eup %18495  ;;  %v15547_v50 = vmul.f32 %v18494_v42, %v15533_v57  ;;  %v15620_v57 = vsub.s32 %v15617_v0, %v22080_v41 }
 0xd12   : > { %v18498_v33 = vpop.eup %18497  ;;  %v15549_v32 = vsub.f32 2.0, %v15545_v30  ;;  %v15546_v23 = vmul.f32 %v18496_v55, %v15526_v39 }
 0xd13   : > { %v15551_v54 = vsub.f32 2.0, %v15547_v50  ;;  %v15548_v27 = vmul.f32 %v18498_v33, %v15540_v2 }
 0xd14   : > { %v15553_v59 = vmul.f32 %v18492_v18, %v15549_v32  ;;  %v15550_v37 = vsub.f32 2.0, %v15546_v23  ;;  %v22081_v32 = vlaneseq }
 0xd15   : > { %v15555_v35 = vmul.f32 %v18494_v42, %v15551_v54  ;;  %v15552_v8 = vsub.f32 2.0, %v15548_v27 }
 0xd16   : > { %v15557_v15 = vmul.f32 %v18484_v25, %v15553_v59  ;;  %v15554_v38 = vmul.f32 %v18496_v55, %v15550_v37  ;;  %vm15640_vm14 = vcmp.lt.s32.totalorder %v22081_v32, 512 }
 0xd17   : > { %v15559_v29 = vmul.f32 %v18486_v16, %v15555_v35  ;;  %v15556_v19 = vmul.f32 %v18498_v33, %v15552_v8 }
 0xd18   : > { %v15561_v31 = vadd.f32 1.0, %v15557_v15  ;;  %v15558_v48 = vmul.f32 %v18488_v34, %v15554_v38 }
 0xd19   : > { %v15563_v13 = vadd.f32 1.0, %v15559_v29  ;;  %v15560_v43 = vmul.f32 %v18490_v22, %v15556_v19 }
 0xd1a   : > { %v15562_v10 = vadd.f32 1.0, %v15558_v48 }
 0xd1b   : > { %v15564_v61 = vadd.f32 1.0, %v15560_v43 }
 0xd1c   : > { %v15569_v62 = vcombine.low %v15561_v31, %v15562_v10 }
 0xd1d   : > { %v15570_v4 = vcombine.low %v15563_v13, %v15564_v61 }
 0xd1e   : > { %v15573_v7 = vmul.f32 %v18499_v46, %v15569_v62 }
 0xd1f   : > { %v15574_v5 = vmul.f32 %v18500_v58, %v15570_v4 }
 0xd20   : > { %v15577_v14 = vcombine.high %v15573_v7, %v15573_v7  ;;  %v15581_v28 = vsel %vm766_vm0, %v15573_v7, 0.0 }
 0xd21   : > { %v15578_v21 = vcombine.high %v15574_v5, %v15574_v5  ;;  %v15582_v25 = vrot.slane %v15581_v28, 4  ;;  %v15595_v16 = vsel %vm766_vm0, %v15574_v5, 0.0 }
 0xd22   : > { %v15588_v56 = vsel %vm766_vm0, %v15577_v14, 0.0  ;;  %v15596_v34 = vrot.slane %v15595_v16, 4 }
 0xd23   : > { %v15583_v51 = vadd.f32 %v15582_v25, %v15581_v28  ;;  %v15589_v22 = vrot.slane %v15588_v56, 4  ;;  %v15602_v12 = vsel %vm766_vm0, %v15578_v21, 0.0 }
 0xd24   : > { %v15597_v49 = vadd.f32 %v15596_v34, %v15595_v16  ;;  %v15603_v36 = vrot.slane %v15602_v12, 4 }
 0xd25   : > { %v15584_v24 = vrot.slane %v15583_v51, 2  ;;  %v15590_v60 = vadd.f32 %v15589_v22, %v15588_v56 }
 0xd26   : > { %v15598_v3 = vrot.slane %v15597_v49, 2  ;;  %v15604_v20 = vadd.f32 %v15603_v36, %v15602_v12 }
 0xd27   : > { %v15585_v47 = vadd.f32 %v15584_v24, %v15583_v51  ;;  %v15591_v40 = vrot.slane %v15590_v60, 2 }
 0xd28   : > { %v15599_v11 = vadd.f32 %v15598_v3, %v15597_v49  ;;  %v15605_v52 = vrot.slane %v15604_v20, 2 }
 0xd29   : > { %v15586_v44 = vrot.slane %v15585_v47, 1  ;;  %v15592_v1 = vadd.f32 %v15591_v40, %v15590_v60 }
 0xd2a   : > { %v15600_v26 = vrot.slane %v15599_v11, 1  ;;  %v15606_v6 = vadd.f32 %v15605_v52, %v15604_v20 }
 0xd2b   : > { %v15593_v45 = vrot.slane %v15592_v1, 1  ;;  %v15587_v17 = vadd.f32 %v15586_v44, %v15585_v47 }
 0xd2c   : > { %v15607_v63 = vrot.slane %v15606_v6, 1  ;;  %v15601_v2 = vadd.f32 %v15600_v26, %v15599_v11 }
 0xd2d   : > { %v15594_v39 = vadd.f32 %v15593_v45, %v15592_v1 }
 0xd2e   : > { %v15608_v18 = vadd.f32 %v15607_v63, %v15606_v6 }
 0xd2f   : > { %v15613_v42 = vcombine.low %v15587_v17, %v15594_v39 }
 0xd30   : > { %v15614_v30 = vcombine.low %v15601_v2, %v15608_v18 }
 0xd31   : > { %v15621_v55 = vrot.slane %v15613_v42, %v15620_v57 }
 0xd32   : > { %v15628_v50 = vrot.slane %v15614_v30, %v15620_v57 }
 0xd34   : > { %v15629_v33 = vcombine.low %v15621_v55, %v15628_v50 }
 0xd36   : > { %v15636_v23 = vrot.slane %v15629_v33, %v15620_v57 }
 0xd38   : > { %15642 = vst.msk [vmem:[%s747_s30] sm:$0xf] %vm15640_vm14, %v15636_v23 }
 0xd39   : > { %18514 = shalt.err (!%p18511_p3)
}
 0xd3a   : > { %s18515_s4 = scalar_lea.hbm %s21546_s0, 64  ;;  %s18519_s1 = scalar_lea.hbm %s21612_s24, 128 }
 0xd3b   : > { %p18516_p4 = scmp.ne.s32.totalorder %s21546_s0, %s18515_s4  ;;  %p18520_p9 = scmp.lt.u32.totalorder %s21546_s0, %s21612_s24 }
 0xd3c   : > { %p18521_p10 = scmp.lt.u32.totalorder %s18519_s1, %s18515_s4  ;;  %p18523_p12 = scmp.lt.u32.totalorder %s18515_s4, %s21546_s0 }
 0xd3d   : > { %p18517_p7 = pnand %p18516_p4, %p18752_p5 }
 0xd3e   : > { %p18522_p11 = por %p18521_p10, %p18520_p9 }
 0xd3f   : > { %p18518_p8 = pneg %p18517_p7 }
 0xd40   : > { %p18524_p13 = por %p18523_p12, %p18522_p11 }
 0xd42   : > { %p18525_p0 = pnand %p18524_p13, %p18518_p8 }
 0xd44   : > { %18528 = shalt.err (!%p18525_p0)
}
 0xd45   : > { %18396 = dma.vmem_to_hbm [thread:$0]  (%p18752_p5), %s21548_s5, 64, %s21546_s0, %s15644_s29  }
 0xd46 PF: > { %p18402_p1 = scmp.ge.s32.totalorder %s18563_s2, 2  ;;  %s15670_s7 = sand.u32 1, %s18551_s27  }
 0xd47   : > { %s15671_s8 = scalar_lea.sflag [#allocation4], %s15670_s7 }
 0xd48   : > { %p18399_p2 = pnand %p18402_p1, %p18756_p6 }
 0xd4a   : > { %18546 = dma.done.wait (!%p18399_p2), %s15671_s8, 64  }
 0xd4b   : > { %18548 = vsyncadd (!%p18399_p2), %s15671_s8, 4294967232  ;;  %s22083_s2 = sld [smem:[#allocation7_spill]]  ;;  %s22084_s4 = sld [smem:[#allocation6_spill]] }
 0xd4c   : > { %s22085_s6 = sld [smem:[#allocation8_spill]]  ;;  %s22086_s27 = smov %s18555_s28 }
 0xd51   : > { %p36_p3 = scmp.ge.s32.totalorder %s22083_s2, 4   ;;  %s22087_s28 = smov %s22084_s4 }
 0xd53   :  { %38 = sbr.rel (!%p36_p3) target bundleno = 13 (0xd), region = 154 }
 0xd5a   :  { %15676 = vsyncpa [#allocation4], 1 }
 0xd5b   :  { %15678 = vsyncpa [#allocation4 + $0x1], 1 }

</bundles_post_ra>
